<compile_context>
chip_gen: v5e
topology: v5e:2x2
jax: 0.10.0
libtpu: 0.0.40
codegen_flags: <defaults>
</compile_context>

<pallas_src>
import functools

import jax
import jax.numpy as jnp
from jax.experimental import pallas as pl
from jax.experimental.pallas import tpu as pltpu

LANE = 128  # TPU vreg lane width


def _squash(s):
    # squash along the last (Dout) axis; matches the PyTorch `squash` (incl. the 1e-8).
    sq = jnp.sum(s * s, axis=-1, keepdims=True)
    return sq / (1.0 + sq) / (jnp.sqrt(sq) + 1e-8) * s


# ---------------------------------------------------------------------------
# Pallas kernel: x_hat + dynamic routing + squash, fully fused, Bt batches / step
# ---------------------------------------------------------------------------

def _dense_capsule_kernel(x_ref, w_ref, o_ref, xh_ref, *, routings, bt, i_chunk):
    # x_ref : (Bt, Din, I_pad)          w_ref : (Din, J, Dout, I_pad)
    # o_ref : (Bt, J, Dout)             xh_ref: VMEM scratch (J, Dout, I_pad)
    d_in, j_caps, d_out, i_pad = w_ref.shape
    n_chunks = i_pad // i_chunk
    inv_j = 1.0 / j_caps

    for bi in range(bt):                                       # small static batch tile
        x = x_ref[bi]                                          # (Din, I_pad) -- tiny, keep in vregs

        # ---- Pass 0: x_hat -> VMEM scratch (128-lane chunks) + iteration-0 weighted sum ----
        # iteration-0 coupling c = softmax(0) = 1/J, so s0 = (1/J) * sum_i x_hat (no exps needed).
        s = jnp.zeros((j_caps, d_out), dtype=jnp.float32)
        for ci in range(n_chunks):
            lo = ci * i_chunk
            xh_c = w_ref[0, :, :, lo:lo + i_chunk] * x[0:1, lo:lo + i_chunk][None]
            for n in range(1, d_in):                           # Din=8, unrolled VPU contraction
                xh_c = xh_c + (w_ref[n, :, :, lo:lo + i_chunk]
                               * x[n:n + 1, lo:lo + i_chunk][None])
            xh_ref[:, :, lo:lo + i_chunk] = xh_c               # stage chunk in VMEM
            s = s + jnp.sum(xh_c, axis=-1)                     # lane reduce over I-chunk
        out = _squash(s * inv_j)                               # iteration-0 output (J, Dout)

        # per-chunk routing logits, start at zero (padded columns stay 0 forever)
        logits = [jnp.zeros((j_caps, i_chunk), dtype=jnp.float32) for _ in range(n_chunks)]

        # ---- Routing iterations 1 .. routings-1 ----
        # Fuse the agreement update (uses previous `out`) with this iteration's weighted sum so
        # each x_hat chunk is read from VMEM exactly once per iteration.
        for _r in range(1, routings):
            s = jnp.zeros((j_caps, d_out), dtype=jnp.float32)
            for ci in range(n_chunks):
                lo = ci * i_chunk
                xh_c = xh_ref[:, :, lo:lo + i_chunk]           # (J, Dout, chunk)
                # agreement from previous iteration's output: reduce over Dout (sublane)
                logits[ci] = logits[ci] + jnp.sum(xh_c * out[:, :, None], axis=1)
                # softmax over the output-capsule axis J (sublane reduce), per column i
                e = jnp.exp(logits[ci] - jnp.max(logits[ci], axis=0, keepdims=True))
                c = e / jnp.sum(e, axis=0, keepdims=True)      # (J, chunk)
                # weighted sum over input capsules (lane reduce over the I-chunk)
                s = s + jnp.sum(xh_c * c[:, None, :], axis=-1)
            out = _squash(s)

        o_ref[bi] = out


# ---------------------------------------------------------------------------
# One-time parameter prep (module init) and wrapper
# ---------------------------------------------------------------------------

def prepare_weight(weight):
    """One-time parameter preparation (call at module init, NOT per forward):
    (J, I, Dout, Din) -> lane-dense (Din, J, Dout, I_pad), I zero-padded to a multiple of 128.
    Zero pads are inert: padded x_hat columns are 0, contributing 0 to both the weighted sums
    and the routing-logit updates (the per-column softmax cannot leak padding across columns)."""
    j, i, d_out, d_in = weight.shape
    i_pad = ((i + LANE - 1) // LANE) * LANE
    w_r = jnp.transpose(weight, (3, 0, 2, 1)).astype(jnp.float32)   # (Din, J, Dout, I)
    if i_pad != i:
        w_r = jnp.pad(w_r, ((0, 0), (0, 0), (0, 0), (0, i_pad - i)))
    return w_r


def _pick_batch_tile(batch, max_bt=8):
    """Largest divisor of `batch` <= max_bt that still leaves >= 2 grid steps
    (keeps both v7x TensorCores busy) while amortizing the ~0.35us per-grid-step overhead."""
    best = 1
    for cand in range(1, max_bt + 1):
        if batch % cand == 0 and (batch // cand >= 2 or batch == 1):
            best = cand
    return best


@functools.partial(jax.jit, static_argnames=("routings",))
def dense_capsule_forward(x, w_prepped, *, routings=3):
    """
    x         : (B, num_caps_in, num_dims_in)                       float32 (PyTorch layout)
    w_prepped : (num_dims_in, num_caps_out, num_dims_out, I_pad)    float32 (from prepare_weight)
    returns   : (B, num_caps_out, num_dims_out)                     float32
    """
    B, i_caps, d_in = x.shape
    d_in_w, j_caps, d_out, i_pad = w_prepped.shape
    assert d_in == d_in_w and i_pad % LANE == 0 and i_caps <= i_pad

    # Lane-dense input layout (B, Din, I_pad); this per-call shuffle touches only x (small).
    x_r = jnp.transpose(x, (0, 2, 1))
    if i_pad != i_caps:
        x_r = jnp.pad(x_r, ((0, 0), (0, 0), (0, i_pad - i_caps)))

    bt = _pick_batch_tile(B)
    grid = (B // bt,)
    i_chunk = LANE

    # Explicit VMEM budget: resident single-buffered weight + double-buffered x/out + x_hat scratch.
    needed = (w_prepped.size * 4
              + 2 * bt * d_in * i_pad * 4
              + 2 * bt * j_caps * d_out * 4
              + j_caps * d_out * i_pad * 4)
    vmem_limit = int(min(max(2 * needed, 16 << 20), 64 << 20))

    flops = B * (2 * d_in + 4 * (routings - 1) + 1) * j_caps * d_out * i_pad
    transcendentals = B * (routings - 1) * j_caps * i_pad
    bytes_accessed = 4 * (w_prepped.size + x_r.size + B * j_caps * d_out)

    out = pl.pallas_call(
        functools.partial(_dense_capsule_kernel, routings=routings, bt=bt, i_chunk=i_chunk),
        out_shape=jax.ShapeDtypeStruct((B, j_caps, d_out), jnp.float32),
        grid=grid,
        in_specs=[
            pl.BlockSpec((bt, d_in, i_pad), lambda b: (b, 0, 0)),
            # Constant index_map -> weight block DMA'd once and stays resident across batch steps;
            # single-buffered since it is never re-fetched (halves its VMEM footprint).
            pl.BlockSpec((d_in, j_caps, d_out, i_pad), lambda b: (0, 0, 0, 0),
                         pipeline_mode=pl.Buffered(1)),
        ],
        out_specs=pl.BlockSpec((bt, j_caps, d_out), lambda b: (b, 0, 0)),
        scratch_shapes=[pltpu.VMEM((j_caps, d_out, i_pad), jnp.float32)],
        compiler_params=pltpu.CompilerParams(
            dimension_semantics=("parallel",),
            vmem_limit_bytes=vmem_limit,
        ),
        cost_estimate=pl.CostEstimate(
            flops=flops,
            transcendentals=transcendentals,
            bytes_accessed=bytes_accessed,
        ),
    )(x_r, w_prepped)
    return out


# ---------------------------------------------------------------------------
# Plain-JAX reference (matches the PyTorch module)
# ---------------------------------------------------------------------------

def _reference(x, weight, routings):
    # x: (B, I, Din), weight: (J, I, Dout, Din)
    x_hat = jnp.einsum("jidn,bin->bjid", weight, x)            # (B, J, I, Dout)
    B = x.shape[0]
    J, I = weight.shape[0], weight.shape[1]
    logits = jnp.zeros((B, J, I), dtype=jnp.float32)
    out = None
    for r in range(routings):
        c = jax.nn.softmax(logits, axis=1)                     # over J
        s = jnp.sum(c[..., None] * x_hat, axis=2)              # (B, J, Dout)
        sq = jnp.sum(s * s, axis=-1, keepdims=True)
        out = sq / (1.0 + sq) / (jnp.sqrt(sq) + 1e-8) * s
        if r < routings - 1:
            logits = logits + jnp.sum(out[:, :, None, :] * x_hat, axis=-1)
    return out


# ---------------------------------------------------------------------------
# Main
# ---------------------------------------------------------------------------

if __name__ == "__main__":
    # Small DenseCapsule config: 144 input capsules (dim 8) -> 10 output capsules (dim 16).
    B = 2
    num_caps_in, num_dims_in = 144, 8
    num_caps_out, num_dims_out = 10, 16
    routings = 3

    key = jax.random.PRNGKey(0)
    kx, kw = jax.random.split(key)
    x = jax.random.normal(kx, (B, num_caps_in, num_dims_in), dtype=jnp.float32)
    weight = 0.01 * jax.random.normal(
        kw, (num_caps_out, num_caps_in, num_dims_out, num_dims_in), dtype=jnp.float32)

    # One-time parameter prep (layout + zero-pad) hoisted out of the per-call path.
    w_prepped = jax.block_until_ready(prepare_weight(weight))

    out = dense_capsule_forward(x, w_prepped, routings=routings)
    out = jax.block_until_ready(out)

    ref = jax.block_until_ready(_reference(x, weight, routings))

    assert out.shape == (B, num_caps_out, num_dims_out), out.shape
    assert bool(jnp.all(jnp.isfinite(out)))
    max_err = float(jnp.max(jnp.abs(out - ref)))
    assert max_err < 1e-4, f"mismatch vs reference: {max_err}"

    print("KERNEL_OK")
</pallas_src>

<mosaic_0001>
module attributes {stable_mosaic.version = 11 : i64} {
  func.func @_dense_capsule_kernel(%arg0: i32, %arg1: memref<1x8x256xf32, #tpu.memory_space<vmem>>, %arg2: memref<8x10x16x256xf32, #tpu.memory_space<vmem>>, %arg3: memref<1x10x16xf32, #tpu.memory_space<vmem>>, %arg4: memref<10x16x256xf32, #tpu.memory_space<vmem>>) attributes {dimension_semantics = [#tpu.dimension_semantics<parallel>], iteration_bounds = array<i64: 2>, scalar_prefetch = 0 : i64, scratch_operands = 1 : i64, tpu.core_type = #tpu.core_type<tc>, window_params = [{transform_indices = @transform_0, window_bounds = array<i64: 1, 8, 256>}, {pipeline_mode = #tpu.pipeline_mode<synchronous>, transform_indices = @transform_1, window_bounds = array<i64: 8, 10, 16, 256>}, {transform_indices = @transform_2, window_bounds = array<i64: 1, 10, 16>}]} {
    %c0 = arith.constant 0 : index
    %c0_0 = arith.constant 0 : index
    %c0_1 = arith.constant 0 : index
    %0 = vector.load %arg1[%c0, %c0_0, %c0_1] : memref<1x8x256xf32, #tpu.memory_space<vmem>>, vector<1x8x256xf32>
    %1 = vector.shape_cast %0 : vector<1x8x256xf32> to vector<8x256xf32>
    %cst = arith.constant 0.000000e+00 : f32
    %2 = vector.broadcast %cst : f32 to vector<10x16xf32>
    %c0_2 = arith.constant 0 : index
    %c0_3 = arith.constant 0 : index
    %c0_4 = arith.constant 0 : index
    %c0_5 = arith.constant 0 : index
    %3 = vector.load %arg2[%c0_2, %c0_3, %c0_4, %c0_5] : memref<8x10x16x256xf32, #tpu.memory_space<vmem>>, vector<1x10x16x128xf32>
    %4 = vector.shape_cast %3 : vector<1x10x16x128xf32> to vector<10x16x128xf32>
    %5 = vector.extract_strided_slice %1 {offsets = [0, 0], sizes = [1, 128], strides = [1, 1]} : vector<8x256xf32> to vector<1x128xf32>
    %6 = vector.shape_cast %5 : vector<1x128xf32> to vector<1x1x128xf32>
    %7 = vector.broadcast %6 : vector<1x1x128xf32> to vector<10x16x128xf32>
    %8 = arith.mulf %4, %7 : vector<10x16x128xf32>
    %c1 = arith.constant 1 : index
    %c0_6 = arith.constant 0 : index
    %c0_7 = arith.constant 0 : index
    %c0_8 = arith.constant 0 : index
    %9 = vector.load %arg2[%c1, %c0_6, %c0_7, %c0_8] : memref<8x10x16x256xf32, #tpu.memory_space<vmem>>, vector<1x10x16x128xf32>
    %10 = vector.shape_cast %9 : vector<1x10x16x128xf32> to vector<10x16x128xf32>
    %11 = vector.extract_strided_slice %1 {offsets = [1, 0], sizes = [1, 128], strides = [1, 1]} : vector<8x256xf32> to vector<1x128xf32>
    %12 = vector.shape_cast %11 : vector<1x128xf32> to vector<1x1x128xf32>
    %13 = vector.broadcast %12 : vector<1x1x128xf32> to vector<10x16x128xf32>
    %14 = arith.mulf %10, %13 : vector<10x16x128xf32>
    %15 = arith.addf %8, %14 : vector<10x16x128xf32>
    %c2 = arith.constant 2 : index
    %c0_9 = arith.constant 0 : index
    %c0_10 = arith.constant 0 : index
    %c0_11 = arith.constant 0 : index
    %16 = vector.load %arg2[%c2, %c0_9, %c0_10, %c0_11] : memref<8x10x16x256xf32, #tpu.memory_space<vmem>>, vector<1x10x16x128xf32>
    %17 = vector.shape_cast %16 : vector<1x10x16x128xf32> to vector<10x16x128xf32>
    %18 = vector.extract_strided_slice %1 {offsets = [2, 0], sizes = [1, 128], strides = [1, 1]} : vector<8x256xf32> to vector<1x128xf32>
    %19 = vector.shape_cast %18 : vector<1x128xf32> to vector<1x1x128xf32>
    %20 = vector.broadcast %19 : vector<1x1x128xf32> to vector<10x16x128xf32>
    %21 = arith.mulf %17, %20 : vector<10x16x128xf32>
    %22 = arith.addf %15, %21 : vector<10x16x128xf32>
    %c3 = arith.constant 3 : index
    %c0_12 = arith.constant 0 : index
    %c0_13 = arith.constant 0 : index
    %c0_14 = arith.constant 0 : index
    %23 = vector.load %arg2[%c3, %c0_12, %c0_13, %c0_14] : memref<8x10x16x256xf32, #tpu.memory_space<vmem>>, vector<1x10x16x128xf32>
    %24 = vector.shape_cast %23 : vector<1x10x16x128xf32> to vector<10x16x128xf32>
    %25 = vector.extract_strided_slice %1 {offsets = [3, 0], sizes = [1, 128], strides = [1, 1]} : vector<8x256xf32> to vector<1x128xf32>
    %26 = vector.shape_cast %25 : vector<1x128xf32> to vector<1x1x128xf32>
    %27 = vector.broadcast %26 : vector<1x1x128xf32> to vector<10x16x128xf32>
    %28 = arith.mulf %24, %27 : vector<10x16x128xf32>
    %29 = arith.addf %22, %28 : vector<10x16x128xf32>
    %c4 = arith.constant 4 : index
    %c0_15 = arith.constant 0 : index
    %c0_16 = arith.constant 0 : index
    %c0_17 = arith.constant 0 : index
    %30 = vector.load %arg2[%c4, %c0_15, %c0_16, %c0_17] : memref<8x10x16x256xf32, #tpu.memory_space<vmem>>, vector<1x10x16x128xf32>
    %31 = vector.shape_cast %30 : vector<1x10x16x128xf32> to vector<10x16x128xf32>
    %32 = vector.extract_strided_slice %1 {offsets = [4, 0], sizes = [1, 128], strides = [1, 1]} : vector<8x256xf32> to vector<1x128xf32>
    %33 = vector.shape_cast %32 : vector<1x128xf32> to vector<1x1x128xf32>
    %34 = vector.broadcast %33 : vector<1x1x128xf32> to vector<10x16x128xf32>
    %35 = arith.mulf %31, %34 : vector<10x16x128xf32>
    %36 = arith.addf %29, %35 : vector<10x16x128xf32>
    %c5 = arith.constant 5 : index
    %c0_18 = arith.constant 0 : index
    %c0_19 = arith.constant 0 : index
    %c0_20 = arith.constant 0 : index
    %37 = vector.load %arg2[%c5, %c0_18, %c0_19, %c0_20] : memref<8x10x16x256xf32, #tpu.memory_space<vmem>>, vector<1x10x16x128xf32>
    %38 = vector.shape_cast %37 : vector<1x10x16x128xf32> to vector<10x16x128xf32>
    %39 = vector.extract_strided_slice %1 {offsets = [5, 0], sizes = [1, 128], strides = [1, 1]} : vector<8x256xf32> to vector<1x128xf32>
    %40 = vector.shape_cast %39 : vector<1x128xf32> to vector<1x1x128xf32>
    %41 = vector.broadcast %40 : vector<1x1x128xf32> to vector<10x16x128xf32>
    %42 = arith.mulf %38, %41 : vector<10x16x128xf32>
    %43 = arith.addf %36, %42 : vector<10x16x128xf32>
    %c6 = arith.constant 6 : index
    %c0_21 = arith.constant 0 : index
    %c0_22 = arith.constant 0 : index
    %c0_23 = arith.constant 0 : index
    %44 = vector.load %arg2[%c6, %c0_21, %c0_22, %c0_23] : memref<8x10x16x256xf32, #tpu.memory_space<vmem>>, vector<1x10x16x128xf32>
    %45 = vector.shape_cast %44 : vector<1x10x16x128xf32> to vector<10x16x128xf32>
    %46 = vector.extract_strided_slice %1 {offsets = [6, 0], sizes = [1, 128], strides = [1, 1]} : vector<8x256xf32> to vector<1x128xf32>
    %47 = vector.shape_cast %46 : vector<1x128xf32> to vector<1x1x128xf32>
    %48 = vector.broadcast %47 : vector<1x1x128xf32> to vector<10x16x128xf32>
    %49 = arith.mulf %45, %48 : vector<10x16x128xf32>
    %50 = arith.addf %43, %49 : vector<10x16x128xf32>
    %c7 = arith.constant 7 : index
    %c0_24 = arith.constant 0 : index
    %c0_25 = arith.constant 0 : index
    %c0_26 = arith.constant 0 : index
    %51 = vector.load %arg2[%c7, %c0_24, %c0_25, %c0_26] : memref<8x10x16x256xf32, #tpu.memory_space<vmem>>, vector<1x10x16x128xf32>
    %52 = vector.shape_cast %51 : vector<1x10x16x128xf32> to vector<10x16x128xf32>
    %53 = vector.extract_strided_slice %1 {offsets = [7, 0], sizes = [1, 128], strides = [1, 1]} : vector<8x256xf32> to vector<1x128xf32>
    %54 = vector.shape_cast %53 : vector<1x128xf32> to vector<1x1x128xf32>
    %55 = vector.broadcast %54 : vector<1x1x128xf32> to vector<10x16x128xf32>
    %56 = arith.mulf %52, %55 : vector<10x16x128xf32>
    %57 = arith.addf %50, %56 : vector<10x16x128xf32>
    %c0_27 = arith.constant 0 : index
    %c0_28 = arith.constant 0 : index
    %c0_29 = arith.constant 0 : index
    %58 = vector.load %arg4[%c0_27, %c0_28, %c0_29] : memref<10x16x256xf32, #tpu.memory_space<vmem>>, vector<10x16x128xf32>
    tpu.vector_store %arg4[%c0_27, %c0_28, %c0_29], %57 {strides = array<i32>} : memref<10x16x256xf32, #tpu.memory_space<vmem>>, vector<10x16x128xf32>,
    %cst_30 = arith.constant dense<0.000000e+00> : vector<10x16xf32>
    %59 = vector.multi_reduction <add>, %57, %cst_30 [2] : vector<10x16x128xf32> to vector<10x16xf32>
    %60 = arith.addf %2, %59 : vector<10x16xf32>
    %c0_31 = arith.constant 0 : index
    %c0_32 = arith.constant 0 : index
    %c0_33 = arith.constant 0 : index
    %c128 = arith.constant 128 : index
    %61 = vector.load %arg2[%c0_31, %c0_32, %c0_33, %c128] : memref<8x10x16x256xf32, #tpu.memory_space<vmem>>, vector<1x10x16x128xf32>
    %62 = vector.shape_cast %61 : vector<1x10x16x128xf32> to vector<10x16x128xf32>
    %63 = vector.extract_strided_slice %1 {offsets = [0, 128], sizes = [1, 128], strides = [1, 1]} : vector<8x256xf32> to vector<1x128xf32>
    %64 = vector.shape_cast %63 : vector<1x128xf32> to vector<1x1x128xf32>
    %65 = vector.broadcast %64 : vector<1x1x128xf32> to vector<10x16x128xf32>
    %66 = arith.mulf %62, %65 : vector<10x16x128xf32>
    %c1_34 = arith.constant 1 : index
    %c0_35 = arith.constant 0 : index
    %c0_36 = arith.constant 0 : index
    %c128_37 = arith.constant 128 : index
    %67 = vector.load %arg2[%c1_34, %c0_35, %c0_36, %c128_37] : memref<8x10x16x256xf32, #tpu.memory_space<vmem>>, vector<1x10x16x128xf32>
    %68 = vector.shape_cast %67 : vector<1x10x16x128xf32> to vector<10x16x128xf32>
    %69 = vector.extract_strided_slice %1 {offsets = [1, 128], sizes = [1, 128], strides = [1, 1]} : vector<8x256xf32> to vector<1x128xf32>
    %70 = vector.shape_cast %69 : vector<1x128xf32> to vector<1x1x128xf32>
    %71 = vector.broadcast %70 : vector<1x1x128xf32> to vector<10x16x128xf32>
    %72 = arith.mulf %68, %71 : vector<10x16x128xf32>
    %73 = arith.addf %66, %72 : vector<10x16x128xf32>
    %c2_38 = arith.constant 2 : index
    %c0_39 = arith.constant 0 : index
    %c0_40 = arith.constant 0 : index
    %c128_41 = arith.constant 128 : index
    %74 = vector.load %arg2[%c2_38, %c0_39, %c0_40, %c128_41] : memref<8x10x16x256xf32, #tpu.memory_space<vmem>>, vector<1x10x16x128xf32>
    %75 = vector.shape_cast %74 : vector<1x10x16x128xf32> to vector<10x16x128xf32>
    %76 = vector.extract_strided_slice %1 {offsets = [2, 128], sizes = [1, 128], strides = [1, 1]} : vector<8x256xf32> to vector<1x128xf32>
    %77 = vector.shape_cast %76 : vector<1x128xf32> to vector<1x1x128xf32>
    %78 = vector.broadcast %77 : vector<1x1x128xf32> to vector<10x16x128xf32>
    %79 = arith.mulf %75, %78 : vector<10x16x128xf32>
    %80 = arith.addf %73, %79 : vector<10x16x128xf32>
    %c3_42 = arith.constant 3 : index
    %c0_43 = arith.constant 0 : index
    %c0_44 = arith.constant 0 : index
    %c128_45 = arith.constant 128 : index
    %81 = vector.load %arg2[%c3_42, %c0_43, %c0_44, %c128_45] : memref<8x10x16x256xf32, #tpu.memory_space<vmem>>, vector<1x10x16x128xf32>
    %82 = vector.shape_cast %81 : vector<1x10x16x128xf32> to vector<10x16x128xf32>
    %83 = vector.extract_strided_slice %1 {offsets = [3, 128], sizes = [1, 128], strides = [1, 1]} : vector<8x256xf32> to vector<1x128xf32>
    %84 = vector.shape_cast %83 : vector<1x128xf32> to vector<1x1x128xf32>
    %85 = vector.broadcast %84 : vector<1x1x128xf32> to vector<10x16x128xf32>
    %86 = arith.mulf %82, %85 : vector<10x16x128xf32>
    %87 = arith.addf %80, %86 : vector<10x16x128xf32>
    %c4_46 = arith.constant 4 : index
    %c0_47 = arith.constant 0 : index
    %c0_48 = arith.constant 0 : index
    %c128_49 = arith.constant 128 : index
    %88 = vector.load %arg2[%c4_46, %c0_47, %c0_48, %c128_49] : memref<8x10x16x256xf32, #tpu.memory_space<vmem>>, vector<1x10x16x128xf32>
    %89 = vector.shape_cast %88 : vector<1x10x16x128xf32> to vector<10x16x128xf32>
    %90 = vector.extract_strided_slice %1 {offsets = [4, 128], sizes = [1, 128], strides = [1, 1]} : vector<8x256xf32> to vector<1x128xf32>
    %91 = vector.shape_cast %90 : vector<1x128xf32> to vector<1x1x128xf32>
    %92 = vector.broadcast %91 : vector<1x1x128xf32> to vector<10x16x128xf32>
    %93 = arith.mulf %89, %92 : vector<10x16x128xf32>
    %94 = arith.addf %87, %93 : vector<10x16x128xf32>
    %c5_50 = arith.constant 5 : index
    %c0_51 = arith.constant 0 : index
    %c0_52 = arith.constant 0 : index
    %c128_53 = arith.constant 128 : index
    %95 = vector.load %arg2[%c5_50, %c0_51, %c0_52, %c128_53] : memref<8x10x16x256xf32, #tpu.memory_space<vmem>>, vector<1x10x16x128xf32>
    %96 = vector.shape_cast %95 : vector<1x10x16x128xf32> to vector<10x16x128xf32>
    %97 = vector.extract_strided_slice %1 {offsets = [5, 128], sizes = [1, 128], strides = [1, 1]} : vector<8x256xf32> to vector<1x128xf32>
    %98 = vector.shape_cast %97 : vector<1x128xf32> to vector<1x1x128xf32>
    %99 = vector.broadcast %98 : vector<1x1x128xf32> to vector<10x16x128xf32>
    %100 = arith.mulf %96, %99 : vector<10x16x128xf32>
    %101 = arith.addf %94, %100 : vector<10x16x128xf32>
    %c6_54 = arith.constant 6 : index
    %c0_55 = arith.constant 0 : index
    %c0_56 = arith.constant 0 : index
    %c128_57 = arith.constant 128 : index
    %102 = vector.load %arg2[%c6_54, %c0_55, %c0_56, %c128_57] : memref<8x10x16x256xf32, #tpu.memory_space<vmem>>, vector<1x10x16x128xf32>
    %103 = vector.shape_cast %102 : vector<1x10x16x128xf32> to vector<10x16x128xf32>
    %104 = vector.extract_strided_slice %1 {offsets = [6, 128], sizes = [1, 128], strides = [1, 1]} : vector<8x256xf32> to vector<1x128xf32>
    %105 = vector.shape_cast %104 : vector<1x128xf32> to vector<1x1x128xf32>
    %106 = vector.broadcast %105 : vector<1x1x128xf32> to vector<10x16x128xf32>
    %107 = arith.mulf %103, %106 : vector<10x16x128xf32>
    %108 = arith.addf %101, %107 : vector<10x16x128xf32>
    %c7_58 = arith.constant 7 : index
    %c0_59 = arith.constant 0 : index
    %c0_60 = arith.constant 0 : index
    %c128_61 = arith.constant 128 : index
    %109 = vector.load %arg2[%c7_58, %c0_59, %c0_60, %c128_61] : memref<8x10x16x256xf32, #tpu.memory_space<vmem>>, vector<1x10x16x128xf32>
    %110 = vector.shape_cast %109 : vector<1x10x16x128xf32> to vector<10x16x128xf32>
    %111 = vector.extract_strided_slice %1 {offsets = [7, 128], sizes = [1, 128], strides = [1, 1]} : vector<8x256xf32> to vector<1x128xf32>
    %112 = vector.shape_cast %111 : vector<1x128xf32> to vector<1x1x128xf32>
    %113 = vector.broadcast %112 : vector<1x1x128xf32> to vector<10x16x128xf32>
    %114 = arith.mulf %110, %113 : vector<10x16x128xf32>
    %115 = arith.addf %108, %114 : vector<10x16x128xf32>
    %c0_62 = arith.constant 0 : index
    %c0_63 = arith.constant 0 : index
    %c128_64 = arith.constant 128 : index
    %116 = vector.load %arg4[%c0_62, %c0_63, %c128_64] : memref<10x16x256xf32, #tpu.memory_space<vmem>>, vector<10x16x128xf32>
    tpu.vector_store %arg4[%c0_62, %c0_63, %c128_64], %115 {strides = array<i32>} : memref<10x16x256xf32, #tpu.memory_space<vmem>>, vector<10x16x128xf32>,
    %cst_65 = arith.constant dense<0.000000e+00> : vector<10x16xf32>
    %117 = vector.multi_reduction <add>, %115, %cst_65 [2] : vector<10x16x128xf32> to vector<10x16xf32>
    %118 = arith.addf %60, %117 : vector<10x16xf32>
    %cst_66 = arith.constant 1.000000e-01 : f32
    %119 = vector.broadcast %cst_66 : f32 to vector<10x16xf32>
    %120 = arith.mulf %118, %119 : vector<10x16xf32>
    %121 = arith.mulf %120, %120 : vector<10x16xf32>
    %cst_67 = arith.constant dense<0.000000e+00> : vector<10xf32>
    %122 = vector.multi_reduction <add>, %121, %cst_67 [1] : vector<10x16xf32> to vector<10xf32>
    %123 = vector.shape_cast %122 : vector<10xf32> to vector<10x1xf32>
    %cst_68 = arith.constant 1.000000e+00 : f32
    %124 = vector.broadcast %cst_68 : f32 to vector<10x1xf32>
    %125 = arith.addf %124, %123 : vector<10x1xf32>
    %126 = arith.divf %123, %125 : vector<10x1xf32>
    %127 = math.sqrt %123 : vector<10x1xf32>
    %cst_69 = arith.constant 9.99999993E-9 : f32
    %128 = vector.broadcast %cst_69 : f32 to vector<10x1xf32>
    %129 = arith.addf %127, %128 : vector<10x1xf32>
    %130 = arith.divf %126, %129 : vector<10x1xf32>
    %131 = vector.broadcast %130 : vector<10x1xf32> to vector<10x16xf32>
    %132 = arith.mulf %131, %120 : vector<10x16xf32>
    %cst_70 = arith.constant 0.000000e+00 : f32
    %133 = vector.broadcast %cst_70 : f32 to vector<10x128xf32>
    %cst_71 = arith.constant 0.000000e+00 : f32
    %134 = vector.broadcast %cst_71 : f32 to vector<10x128xf32>
    %cst_72 = arith.constant 0.000000e+00 : f32
    %135 = vector.broadcast %cst_72 : f32 to vector<10x16xf32>
    %c0_73 = arith.constant 0 : index
    %c0_74 = arith.constant 0 : index
    %c0_75 = arith.constant 0 : index
    %136 = vector.load %arg4[%c0_73, %c0_74, %c0_75] : memref<10x16x256xf32, #tpu.memory_space<vmem>>, vector<10x16x128xf32>
    %137 = vector.shape_cast %132 : vector<10x16xf32> to vector<10x16x1xf32>
    %138 = vector.broadcast %137 : vector<10x16x1xf32> to vector<10x16x128xf32>
    %139 = arith.mulf %136, %138 : vector<10x16x128xf32>
    %cst_76 = arith.constant dense<0.000000e+00> : vector<10x128xf32>
    %140 = vector.multi_reduction <add>, %139, %cst_76 [1] : vector<10x16x128xf32> to vector<10x128xf32>
    %141 = arith.addf %133, %140 : vector<10x128xf32>
    %cst_77 = arith.constant dense<0xFF800000> : vector<128xf32>
    %142 = vector.multi_reduction <maximumf>, %141, %cst_77 [0] : vector<10x128xf32> to vector<128xf32>
    %143 = vector.shape_cast %142 : vector<128xf32> to vector<1x128xf32>
    %144 = vector.broadcast %143 : vector<1x128xf32> to vector<10x128xf32>
    %145 = arith.subf %141, %144 : vector<10x128xf32>
    %146 = math.exp %145 : vector<10x128xf32>
    %cst_78 = arith.constant dense<0.000000e+00> : vector<128xf32>
    %147 = vector.multi_reduction <add>, %146, %cst_78 [0] : vector<10x128xf32> to vector<128xf32>
    %148 = vector.shape_cast %147 : vector<128xf32> to vector<1x128xf32>
    %149 = vector.broadcast %148 : vector<1x128xf32> to vector<10x128xf32>
    %150 = arith.divf %146, %149 : vector<10x128xf32>
    %151 = vector.shape_cast %150 : vector<10x128xf32> to vector<10x1x128xf32>
    %152 = vector.broadcast %151 : vector<10x1x128xf32> to vector<10x16x128xf32>
    %153 = arith.mulf %136, %152 : vector<10x16x128xf32>
    %cst_79 = arith.constant dense<0.000000e+00> : vector<10x16xf32>
    %154 = vector.multi_reduction <add>, %153, %cst_79 [2] : vector<10x16x128xf32> to vector<10x16xf32>
    %155 = arith.addf %135, %154 : vector<10x16xf32>
    %c0_80 = arith.constant 0 : index
    %c0_81 = arith.constant 0 : index
    %c128_82 = arith.constant 128 : index
    %156 = vector.load %arg4[%c0_80, %c0_81, %c128_82] : memref<10x16x256xf32, #tpu.memory_space<vmem>>, vector<10x16x128xf32>
    %157 = vector.shape_cast %132 : vector<10x16xf32> to vector<10x16x1xf32>
    %158 = vector.broadcast %157 : vector<10x16x1xf32> to vector<10x16x128xf32>
    %159 = arith.mulf %156, %158 : vector<10x16x128xf32>
    %cst_83 = arith.constant dense<0.000000e+00> : vector<10x128xf32>
    %160 = vector.multi_reduction <add>, %159, %cst_83 [1] : vector<10x16x128xf32> to vector<10x128xf32>
    %161 = arith.addf %134, %160 : vector<10x128xf32>
    %cst_84 = arith.constant dense<0xFF800000> : vector<128xf32>
    %162 = vector.multi_reduction <maximumf>, %161, %cst_84 [0] : vector<10x128xf32> to vector<128xf32>
    %163 = vector.shape_cast %162 : vector<128xf32> to vector<1x128xf32>
    %164 = vector.broadcast %163 : vector<1x128xf32> to vector<10x128xf32>
    %165 = arith.subf %161, %164 : vector<10x128xf32>
    %166 = math.exp %165 : vector<10x128xf32>
    %cst_85 = arith.constant dense<0.000000e+00> : vector<128xf32>
    %167 = vector.multi_reduction <add>, %166, %cst_85 [0] : vector<10x128xf32> to vector<128xf32>
    %168 = vector.shape_cast %167 : vector<128xf32> to vector<1x128xf32>
    %169 = vector.broadcast %168 : vector<1x128xf32> to vector<10x128xf32>
    %170 = arith.divf %166, %169 : vector<10x128xf32>
    %171 = vector.shape_cast %170 : vector<10x128xf32> to vector<10x1x128xf32>
    %172 = vector.broadcast %171 : vector<10x1x128xf32> to vector<10x16x128xf32>
    %173 = arith.mulf %156, %172 : vector<10x16x128xf32>
    %cst_86 = arith.constant dense<0.000000e+00> : vector<10x16xf32>
    %174 = vector.multi_reduction <add>, %173, %cst_86 [2] : vector<10x16x128xf32> to vector<10x16xf32>
    %175 = arith.addf %155, %174 : vector<10x16xf32>
    %176 = arith.mulf %175, %175 : vector<10x16xf32>
    %cst_87 = arith.constant dense<0.000000e+00> : vector<10xf32>
    %177 = vector.multi_reduction <add>, %176, %cst_87 [1] : vector<10x16xf32> to vector<10xf32>
    %178 = vector.shape_cast %177 : vector<10xf32> to vector<10x1xf32>
    %cst_88 = arith.constant 1.000000e+00 : f32
    %179 = vector.broadcast %cst_88 : f32 to vector<10x1xf32>
    %180 = arith.addf %179, %178 : vector<10x1xf32>
    %181 = arith.divf %178, %180 : vector<10x1xf32>
    %182 = math.sqrt %178 : vector<10x1xf32>
    %cst_89 = arith.constant 9.99999993E-9 : f32
    %183 = vector.broadcast %cst_89 : f32 to vector<10x1xf32>
    %184 = arith.addf %182, %183 : vector<10x1xf32>
    %185 = arith.divf %181, %184 : vector<10x1xf32>
    %186 = vector.broadcast %185 : vector<10x1xf32> to vector<10x16xf32>
    %187 = arith.mulf %186, %175 : vector<10x16xf32>
    %cst_90 = arith.constant 0.000000e+00 : f32
    %188 = vector.broadcast %cst_90 : f32 to vector<10x16xf32>
    %c0_91 = arith.constant 0 : index
    %c0_92 = arith.constant 0 : index
    %c0_93 = arith.constant 0 : index
    %189 = vector.load %arg4[%c0_91, %c0_92, %c0_93] : memref<10x16x256xf32, #tpu.memory_space<vmem>>, vector<10x16x128xf32>
    %190 = vector.shape_cast %187 : vector<10x16xf32> to vector<10x16x1xf32>
    %191 = vector.broadcast %190 : vector<10x16x1xf32> to vector<10x16x128xf32>
    %192 = arith.mulf %189, %191 : vector<10x16x128xf32>
    %cst_94 = arith.constant dense<0.000000e+00> : vector<10x128xf32>
    %193 = vector.multi_reduction <add>, %192, %cst_94 [1] : vector<10x16x128xf32> to vector<10x128xf32>
    %194 = arith.addf %141, %193 : vector<10x128xf32>
    %cst_95 = arith.constant dense<0xFF800000> : vector<128xf32>
    %195 = vector.multi_reduction <maximumf>, %194, %cst_95 [0] : vector<10x128xf32> to vector<128xf32>
    %196 = vector.shape_cast %195 : vector<128xf32> to vector<1x128xf32>
    %197 = vector.broadcast %196 : vector<1x128xf32> to vector<10x128xf32>
    %198 = arith.subf %194, %197 : vector<10x128xf32>
    %199 = math.exp %198 : vector<10x128xf32>
    %cst_96 = arith.constant dense<0.000000e+00> : vector<128xf32>
    %200 = vector.multi_reduction <add>, %199, %cst_96 [0] : vector<10x128xf32> to vector<128xf32>
    %201 = vector.shape_cast %200 : vector<128xf32> to vector<1x128xf32>
    %202 = vector.broadcast %201 : vector<1x128xf32> to vector<10x128xf32>
    %203 = arith.divf %199, %202 : vector<10x128xf32>
    %204 = vector.shape_cast %203 : vector<10x128xf32> to vector<10x1x128xf32>
    %205 = vector.broadcast %204 : vector<10x1x128xf32> to vector<10x16x128xf32>
    %206 = arith.mulf %189, %205 : vector<10x16x128xf32>
    %cst_97 = arith.constant dense<0.000000e+00> : vector<10x16xf32>
    %207 = vector.multi_reduction <add>, %206, %cst_97 [2] : vector<10x16x128xf32> to vector<10x16xf32>
    %208 = arith.addf %188, %207 : vector<10x16xf32>
    %c0_98 = arith.constant 0 : index
    %c0_99 = arith.constant 0 : index
    %c128_100 = arith.constant 128 : index
    %209 = vector.load %arg4[%c0_98, %c0_99, %c128_100] : memref<10x16x256xf32, #tpu.memory_space<vmem>>, vector<10x16x128xf32>
    %210 = vector.shape_cast %187 : vector<10x16xf32> to vector<10x16x1xf32>
    %211 = vector.broadcast %210 : vector<10x16x1xf32> to vector<10x16x128xf32>
    %212 = arith.mulf %209, %211 : vector<10x16x128xf32>
    %cst_101 = arith.constant dense<0.000000e+00> : vector<10x128xf32>
    %213 = vector.multi_reduction <add>, %212, %cst_101 [1] : vector<10x16x128xf32> to vector<10x128xf32>
    %214 = arith.addf %161, %213 : vector<10x128xf32>
    %cst_102 = arith.constant dense<0xFF800000> : vector<128xf32>
    %215 = vector.multi_reduction <maximumf>, %214, %cst_102 [0] : vector<10x128xf32> to vector<128xf32>
    %216 = vector.shape_cast %215 : vector<128xf32> to vector<1x128xf32>
    %217 = vector.broadcast %216 : vector<1x128xf32> to vector<10x128xf32>
    %218 = arith.subf %214, %217 : vector<10x128xf32>
    %219 = math.exp %218 : vector<10x128xf32>
    %cst_103 = arith.constant dense<0.000000e+00> : vector<128xf32>
    %220 = vector.multi_reduction <add>, %219, %cst_103 [0] : vector<10x128xf32> to vector<128xf32>
    %221 = vector.shape_cast %220 : vector<128xf32> to vector<1x128xf32>
    %222 = vector.broadcast %221 : vector<1x128xf32> to vector<10x128xf32>
    %223 = arith.divf %219, %222 : vector<10x128xf32>
    %224 = vector.shape_cast %223 : vector<10x128xf32> to vector<10x1x128xf32>
    %225 = vector.broadcast %224 : vector<10x1x128xf32> to vector<10x16x128xf32>
    %226 = arith.mulf %209, %225 : vector<10x16x128xf32>
    %cst_104 = arith.constant dense<0.000000e+00> : vector<10x16xf32>
    %227 = vector.multi_reduction <add>, %226, %cst_104 [2] : vector<10x16x128xf32> to vector<10x16xf32>
    %228 = arith.addf %208, %227 : vector<10x16xf32>
    %229 = arith.mulf %228, %228 : vector<10x16xf32>
    %cst_105 = arith.constant dense<0.000000e+00> : vector<10xf32>
    %230 = vector.multi_reduction <add>, %229, %cst_105 [1] : vector<10x16xf32> to vector<10xf32>
    %231 = vector.shape_cast %230 : vector<10xf32> to vector<10x1xf32>
    %cst_106 = arith.constant 1.000000e+00 : f32
    %232 = vector.broadcast %cst_106 : f32 to vector<10x1xf32>
    %233 = arith.addf %232, %231 : vector<10x1xf32>
    %234 = arith.divf %231, %233 : vector<10x1xf32>
    %235 = math.sqrt %231 : vector<10x1xf32>
    %cst_107 = arith.constant 9.99999993E-9 : f32
    %236 = vector.broadcast %cst_107 : f32 to vector<10x1xf32>
    %237 = arith.addf %235, %236 : vector<10x1xf32>
    %238 = arith.divf %234, %237 : vector<10x1xf32>
    %239 = vector.broadcast %238 : vector<10x1xf32> to vector<10x16xf32>
    %240 = arith.mulf %239, %228 : vector<10x16xf32>
    %c0_108 = arith.constant 0 : index
    %c0_109 = arith.constant 0 : index
    %c0_110 = arith.constant 0 : index
    %241 = vector.load %arg3[%c0_108, %c0_109, %c0_110] : memref<1x10x16xf32, #tpu.memory_space<vmem>>, vector<1x10x16xf32>
    %242 = vector.shape_cast %241 : vector<1x10x16xf32> to vector<10x16xf32>
    %243 = vector.shape_cast %240 : vector<10x16xf32> to vector<1x10x16xf32>
    tpu.vector_store %arg3[%c0_108, %c0_109, %c0_110], %243 {strides = array<i32>} : memref<1x10x16xf32, #tpu.memory_space<vmem>>, vector<1x10x16xf32>,
    return
  }
  func.func @transform_0(%arg0: i32) -> (i32, i32, i32) {
    %c0_i32 = arith.constant 0 : i32
    %c0_i32_0 = arith.constant 0 : i32
    %c0_i32_1 = arith.constant 0 : i32
    return %arg0, %c0_i32, %c0_i32_0 : i32, i32, i32
  }
  func.func @transform_1(%arg0: i32) -> (i32, i32, i32, i32) {
    %c0_i32 = arith.constant 0 : i32
    %c0_i32_0 = arith.constant 0 : i32
    %c0_i32_1 = arith.constant 0 : i32
    %c0_i32_2 = arith.constant 0 : i32
    %c0_i32_3 = arith.constant 0 : i32
    return %c0_i32, %c0_i32_0, %c0_i32_1, %c0_i32_2 : i32, i32, i32, i32
  }
  func.func @transform_2(%arg0: i32) -> (i32, i32, i32) {
    %c0_i32 = arith.constant 0 : i32
    %c0_i32_0 = arith.constant 0 : i32
    %c0_i32_1 = arith.constant 0 : i32
    return %arg0, %c0_i32, %c0_i32_0 : i32, i32, i32
  }
}

</mosaic_0001>

<bundles_post_ra>
// kernel: dense_capsule_forward.1
= control target key start
LH: loop header
LB: loop body
LE: loop exit
PB: predicated region body
PF: predicated region fallthrough
CT: control target
= control target key end

     0   :  { %7 = vsyncpa [#allocation4], 0  ;;  %s3784_s9 = smov 0   ;;  %s5397_s0 = inlined_call_operand.vmem [shape: f32[2,8,256], index: 0, kind: input, shape index: {}]   ;;  %s5398_s1 = inlined_call_operand.hbm [shape: f32[8,10,16,256], index: 1, kind: input, shape index: {}]   ;;  %s5399_s2 = inlined_call_operand.vmem [shape: f32[2,10,16], index: 2, kind: output, shape index: {}]  }
   0x1 LB: > { %s102_s12 = sshll.u32 %s5398_s1, 4  ;;  %s3537_s13 = sadd.s32 4294967295, %s3764_s9   ;;  %s3764_s9 = sphi %s3784_s9, %s13_s9   ;;  %s103_s12 = int_to_ptr.hbm [resolvable:$true] %s102_s12 }
   0x2   : > { %p3539_p0 = scmp.ge.s32.totalorder %s3764_s9, 1  ;;  %p91_p1 = scmp.lt.s32.totalorder %s3764_s9, 3 }
   0x3   : > { %p3560_p2 = scmp.eq.s32.totalorder %s3537_s13, 0  ;;  %s3766_s14 = smov [#allocation3]  }
   0x4   : > { %p92_p3 = pnand %p3539_p0, %p91_p1  ;;  %s104_s15 = sshll.u32 %s3766_s14, 4  ;;  %s105_s15 = int_to_ptr.vmem [resolvable:$true] %s104_s15 }
   0x5   : > { %s3767_s16 = smov 256   ;;  %s3768_s17 = smov 16  }
   0x6   : > { %p3556_p4 = pneg %p92_p3  ;;  %128 = sbr.rel (%p92_p3) target bundleno = 1845 (0x735), region = 28 }
   0x8   : > { %p3557_p5 = pnand %p3560_p2, %p3556_p4 }
   0xa   : > { %3559 = dma.hbm_to_vmem [thread:$0]  (!%p3557_p5), %s103_s12, 40960, %s105_s15, [#allocation4], %s3767_s16, %s3767_s16, %s3768_s17  }
   0xb   : > { %3759 = dma.done.wait (%p3560_p2), [#allocation4], 40960  }
   0xc   : > { %3761 = vsyncadd (%p3560_p2), [#allocation4], 4294926336  ;;  %p151_p6 = scmp.lt.s32.totalorder %s3537_s13, 1  ;;  %v718_v1 = vld [vmem:[#allocation3 + $0x8] sm:$0xff]  ;;  %v165_v19 = vld [vmem:[#allocation3 + $0x20] sm:$0xff]  ;;  %vm5434_vm0 = vcmask 130112  }
   0xd   : > { %v759_v2 = vld [vmem:[#allocation3 + $0x148] sm:$0xff]  ;;  %v207_v20 = vld [vmem:[#allocation3 + $0x160] sm:$0xff]  ;;  %v719_v57 = vld [vmem:[#allocation3 + $0x18] sm:$0xff]  ;;  %vm1360_vm1 = vcmask 1041409   ;;  %vm1362_vm2 = vcmask 1042434   ;;  %vm1364_vm3 = vcmask 1043459  }
   0xe   : > { %s5737_s13 = smov (!%p151_p6, %s3537_s13), 1  ;;  %v820_v5 = vld [vmem:[#allocation3 + $0x288] sm:$0xff]  ;;  %v269_v21 = vld [vmem:[#allocation3 + $0x2a0] sm:$0xff]  ;;  %v760_v58 = vld [vmem:[#allocation3 + $0x158] sm:$0xff]  ;;  %vm1366_vm4 = vcmask 1044484   ;;  %vm1368_vm5 = vcmask 1045509  }
   0xf   : > { %s3550_s18 = sshll.u32 %s5737_s13, 4  ;;  %v881_v7 = vld [vmem:[#allocation3 + $0x3c8] sm:$0xff]  ;;  %v331_v27 = vld [vmem:[#allocation3 + $0x3e0] sm:$0xff]  ;;  %vm1370_vm6 = vcmask 1046534   ;;  %vm5491_vm7 = vcmask 1047559   ;;  %vm5433_vm8 = vcmask 130048  }
  0x10   : > { %s155_s21 = scalar_lea.vmem %s5397_s0, %s3550_s18  ;;  %v942_v9 = vld [vmem:[#allocation3 + $0x508] sm:$0xff]  ;;  %v163_v33 = vld [vmem:[#allocation3] sm:$0xff]  ;;  %vm5432_vm9 = vcmask 123904   ;;  %s5382_s24 = scalar_lea.vmem %s5399_s2, %s3550_s18 }
  0x11   : > { %v162_v0 = vld [vmem:[%s155_s21 + $0x8] sm:$0xff]  ;;  %v161_v14 = vld [vmem:[%s155_s21] sm:$0xff] }
  0x12   : > { %v3803_v3 = vperm.slane %v162_v0, 0  ;;  %v3805_v4 = vperm.slane %v162_v0, 1  ;;  %v3807_v6 = vperm.slane %v162_v0, 2  ;;  %v3809_v8 = vperm.slane %v162_v0, 3  ;;  %v1003_v23 = vld [vmem:[#allocation3 + $0x648] sm:$0xff]  ;;  %v205_v39 = vld [vmem:[#allocation3 + $0x140] sm:$0xff] }
  0x13   : > { %v3811_v10 = vperm.slane %v162_v0, 4  ;;  %v3818_v17 = vperm.slane %v162_v0, 5  ;;  %v3820_v18 = vperm.slane %v162_v0, 6  ;;  %v3822_v24 = vperm.slane %v161_v14, 0  ;;  %v1064_v28 = vld [vmem:[#allocation3 + $0x788] sm:$0xff]  ;;  %v267_v40 = vld [vmem:[#allocation3 + $0x280] sm:$0xff] }
  0x14   : > { %v739_v11 = vmul.f32 %v3803_v3, %v718_v1  ;;  %v780_v12 = vmul.f32 %v3805_v4, %v759_v2  ;;  %v841_v13 = vmul.f32 %v3807_v6, %v820_v5  ;;  %v902_v15 = vmul.f32 %v3809_v8, %v881_v7  ;;  %v1125_v35 = vld [vmem:[#allocation3 + $0x8c8] sm:$0xff]  ;;  %v393_v43 = vld [vmem:[#allocation3 + $0x520] sm:$0xff]  ;;  %v821_v1 = vld [vmem:[#allocation3 + $0x298] sm:$0xff] }
  0x15   : > { %v963_v16 = vmul.f32 %v3811_v10, %v942_v9  ;;  %v3824_v25 = vperm.slane %v161_v14, 1  ;;  %v3826_v26 = vperm.slane %v161_v14, 2  ;;  %v3828_v29 = vperm.slane %v162_v0, 7  ;;  %v455_v44 = vld [vmem:[#allocation3 + $0x660] sm:$0xff] }
  0x16   : > { %v800_v22 = vadd.f32 %v780_v12, %v739_v11  ;;  %v3830_v30 = vperm.slane %v161_v14, 3  ;;  %v3832_v31 = vperm.slane %v161_v14, 4  ;;  %v3834_v32 = vperm.slane %v161_v14, 5  ;;  %v517_v48 = vld [vmem:[#allocation3 + $0x7a0] sm:$0xff]  ;;  %v882_v11 = vld [vmem:[#allocation3 + $0x3d8] sm:$0xff] }
  0x17   : > { %v186_v36 = vmul.f32 %v3822_v24, %v165_v19  ;;  %v228_v37 = vmul.f32 %v3824_v25, %v207_v20  ;;  %v290_v38 = vmul.f32 %v3826_v26, %v269_v21  ;;  %v1024_v41 = vmul.f32 %v3818_v17, %v1003_v23  ;;  %v579_v49 = vld [vmem:[#allocation3 + $0x8e0] sm:$0xff]  ;;  %v943_v19 = vld [vmem:[#allocation3 + $0x518] sm:$0xff]  ;;  %v166_v20 = vld [vmem:[#allocation3 + $0x30] sm:$0xff] }
  0x18   : > { %v861_v34 = vadd.f32 %v841_v13, %v800_v22  ;;  %v352_v42 = vmul.f32 %v3830_v30, %v331_v27  ;;  %v3841_v45 = vperm.slane %v161_v14, 6  ;;  %v3843_v50 = vperm.slane %v161_v14, 7  ;;  %v329_v52 = vld [vmem:[#allocation3 + $0x3c0] sm:$0xff] }
  0x19   : > { %v248_v47 = vadd.f32 %v228_v37, %v186_v36  ;;  %v184_v51 = vmul.f32 %v3822_v24, %v163_v33  ;;  %v1085_v53 = vmul.f32 %v3820_v18, %v1064_v28  ;;  %v1146_v54 = vmul.f32 %v3828_v29, %v1125_v35  ;;  %v391_v63 = vld [vmem:[#allocation3 + $0x500] sm:$0xff]  ;;  %v208_v28 = vld [vmem:[#allocation3 + $0x170] sm:$0xff] }
  0x1a   : > { %v922_v46 = vadd.f32 %v902_v15, %v861_v34  ;;  %v226_v55 = vmul.f32 %v3824_v25, %v205_v39  ;;  %v288_v56 = vmul.f32 %v3826_v26, %v267_v40  ;;  %v414_v61 = vmul.f32 %v3832_v31, %v393_v43  ;;  %v453_v0 = vld [vmem:[#allocation3 + $0x640] sm:$0xff]  ;;  %v270_v39 = vld [vmem:[#allocation3 + $0x2b0] sm:$0xff] }
  0x1b   : > { %v310_v60 = vadd.f32 %v290_v38, %v248_v47  ;;  %v476_v62 = vmul.f32 %v3834_v32, %v455_v44  ;;  %v538_v2 = vmul.f32 %v3841_v45, %v517_v48  ;;  %v600_v5 = vmul.f32 %v3843_v50, %v579_v49  ;;  %v515_v14 = vld [vmem:[#allocation3 + $0x780] sm:$0xff]  ;;  %v1004_v38 = vld [vmem:[#allocation3 + $0x658] sm:$0xff]  ;;  %v332_v44 = vld [vmem:[#allocation3 + $0x3f0] sm:$0xff] }
  0x1c   : > { %v983_v59 = vadd.f32 %v963_v16, %v922_v46  ;;  %v246_v7 = vadd.f32 %v226_v55, %v184_v51  ;;  %v350_v9 = vmul.f32 %v3830_v30, %v329_v52  ;;  %v740_v15 = vmul.f32 %v3803_v3, %v719_v57  ;;  %v577_v35 = vld [vmem:[#allocation3 + $0x8c0] sm:$0xff]  ;;  %v1065_v49 = vld [vmem:[#allocation3 + $0x798] sm:$0xff]  ;;  %v394_v52 = vld [vmem:[#allocation3 + $0x530] sm:$0xff] }
  0x1d   : > { %v372_v13 = vadd.f32 %v352_v42, %v310_v60  ;;  %v781_v16 = vmul.f32 %v3805_v4, %v760_v58  ;;  %v412_v22 = vmul.f32 %v3832_v31, %v391_v63  ;;  %v474_v23 = vmul.f32 %v3834_v32, %v453_v0  ;;  %v456_v0 = vld [vmem:[#allocation3 + $0x670] sm:$0xff] }
  0x1e   : > { %v1044_v12 = vadd.f32 %v1024_v41, %v983_v59  ;;  %v308_v21 = vadd.f32 %v288_v56, %v246_v7  ;;  %v842_v27 = vmul.f32 %v3807_v6, %v821_v1  ;;  %v903_v37 = vmul.f32 %v3809_v8, %v882_v11  ;;  %v206_v59 = vld [vmem:[#allocation3 + $0x150] sm:$0xff] }
  0x1f   : > { %v434_v34 = vadd.f32 %v414_v61, %v372_v13  ;;  %v801_v36 = vadd.f32 %v781_v16, %v740_v15  ;;  %v536_v41 = vmul.f32 %v3841_v45, %v515_v14  ;;  %v964_v42 = vmul.f32 %v3811_v10, %v943_v19  ;;  %v1126_v61 = vld [vmem:[#allocation3 + $0x8d8] sm:$0xff]  ;;  %v268_v1 = vld [vmem:[#allocation3 + $0x290] sm:$0xff] }
  0x20   : > { %v1105_v33 = vadd.f32 %v1085_v53, %v1044_v12  ;;  %v370_v40 = vadd.f32 %v350_v9, %v308_v21  ;;  %v187_v43 = vmul.f32 %v3822_v24, %v166_v20  ;;  %v229_v51 = vmul.f32 %v3824_v25, %v208_v28  ;;  %v164_v53 = vld [vmem:[#allocation3 + $0x10] sm:$0xff]  ;;  %v167_v21 = vld [vmem:[#allocation3 + $0x40] sm:$0xff] }
  0x21   : > { %v496_v47 = vadd.f32 %v476_v62, %v434_v34  ;;  %v862_v48 = vadd.f32 %v842_v27, %v801_v36  ;;  %v598_v56 = vmul.f32 %v3843_v50, %v577_v35  ;;  %v1025_v57 = vmul.f32 %v3818_v17, %v1004_v38  ;;  %v330_v13 = vld [vmem:[#allocation3 + $0x3d0] sm:$0xff]  ;;  %v209_v34 = vld [vmem:[#allocation3 + $0x180] sm:$0xff] }
  0x22   : > { %v3864_v46 = vadd.f32 %v1146_v54, %v1105_v33  ;;  %v432_v55 = vadd.f32 %v412_v22, %v370_v40  ;;  %v291_v58 = vmul.f32 %v3826_v26, %v270_v39  ;;  %v249_v62 = vadd.f32 %v229_v51, %v187_v43  ;;  %v392_v20 = vld [vmem:[#allocation3 + $0x510] sm:$0xff]  ;;  %v271_v39 = vld [vmem:[#allocation3 + $0x2c0] sm:$0xff] }
  0x23   : > { %v558_v60 = vadd.f32 %v538_v2, %v496_v47  ;;  %v923_v54 = vadd.f32 %v903_v37, %v862_v48  ;;  %v353_v63 = vmul.f32 %v3830_v30, %v332_v44  ;;  %v1086_v9 = vmul.f32 %v3820_v18, %v1065_v49  ;;  %v518_v2 = vld [vmem:[#allocation3 + $0x7b0] sm:$0xff]  ;;  %v333_v40 = vld [vmem:[#allocation3 + $0x400] sm:$0xff] }
  0x24   : > { %1206 = vadd.xlane.f32.xlu2 %v3864_v46  ;;  %v494_v7 = vadd.f32 %v474_v23, %v432_v55  ;;  %v415_v11 = vmul.f32 %v3832_v31, %v394_v52  ;;  %v185_v12 = vmul.f32 %v3822_v24, %v164_v53  ;;  %v311_v16 = vadd.f32 %v291_v58, %v249_v62  ;;  %v580_v28 = vld [vmem:[#allocation3 + $0x8f0] sm:$0xff]  ;;  %v395_v53 = vld [vmem:[#allocation3 + $0x540] sm:$0xff]  ;;  %v721_v55 = vld [vmem:[#allocation3 + $0x38] sm:$0xff] }
  0x25   : > { %v3875_v14 = vadd.f32 %v600_v5, %v558_v60  ;;  %v984_v15 = vadd.f32 %v964_v42, %v923_v54  ;;  %v227_v19 = vmul.f32 %v3824_v25, %v206_v59  ;;  %v1147_v27 = vmul.f32 %v3828_v29, %v1126_v61  ;;  %v454_v38 = vld [vmem:[#allocation3 + $0x650] sm:$0xff]  ;;  %v823_v54 = vld [vmem:[#allocation3 + $0x2b8] sm:$0xff] }
  0x26   : > { %v556_v22 = vadd.f32 %v536_v41, %v494_v7  ;;  %v477_v23 = vmul.f32 %v3834_v32, %v456_v0  ;;  %v289_v33 = vmul.f32 %v3826_v26, %v268_v1  ;;  %v373_v35 = vadd.f32 %v353_v63, %v311_v16  ;;  %v516_v44 = vld [vmem:[#allocation3 + $0x790] sm:$0xff]  ;;  %v457_v7 = vld [vmem:[#allocation3 + $0x680] sm:$0xff] }
  0x27   : > { %662 = vadd.xlane.f32.xlu1 %v3875_v14  ;;  %v1045_v5 = vadd.f32 %v1025_v57, %v984_v15  ;;  %v247_v36 = vadd.f32 %v227_v19, %v185_v12  ;;  %v351_v37 = vmul.f32 %v3830_v30, %v330_v13  ;;  %v539_v41 = vmul.f32 %v3841_v45, %v518_v2  ;;  %v762_v57 = vld [vmem:[#allocation3 + $0x178] sm:$0xff]  ;;  %v578_v0 = vld [vmem:[#allocation3 + $0x8d0] sm:$0xff]  ;;  %v519_v13 = vld [vmem:[#allocation3 + $0x7c0] sm:$0xff] }
  0x28   : > { %v3883_v42 = vadd.f32 %v598_v56, %v556_v22  ;;  %v413_v43 = vmul.f32 %v3832_v31, %v392_v20  ;;  %v188_v47 = vmul.f32 %v3822_v24, %v167_v21  ;;  %v435_v49 = vadd.f32 %v415_v11, %v373_v35  ;;  %v945_v22 = vld [vmem:[#allocation3 + $0x538] sm:$0xff] }
  0x29   : > { %v1106_v48 = vadd.f32 %v1086_v9, %v1045_v5  ;;  %v309_v51 = vadd.f32 %v289_v33, %v247_v36  ;;  %v230_v52 = vmul.f32 %v3824_v25, %v209_v34  ;;  %v601_v56 = vmul.f32 %v3843_v50, %v580_v28  ;;  %v884_v9 = vld [vmem:[#allocation3 + $0x3f8] sm:$0xff]  ;;  %v581_v34 = vld [vmem:[#allocation3 + $0x900] sm:$0xff]  ;;  %v822_v36 = vld [vmem:[#allocation3 + $0x2a8] sm:$0xff] }
  0x2a   : > { %658 = vadd.xlane.f32.xlu0 %v3883_v42  ;;  %v475_v58 = vmul.f32 %v3834_v32, %v454_v38  ;;  %v292_v59 = vmul.f32 %v3826_v26, %v271_v39  ;;  %v354_v60 = vmul.f32 %v3830_v30, %v333_v40  ;;  %v497_v62 = vadd.f32 %v477_v23, %v435_v49  ;;  %v761_v23 = vld [vmem:[#allocation3 + $0x168] sm:$0xff] }
  0x2b   : > { %v3894_v61 = vadd.f32 %v1147_v27, %v1106_v48  ;;  %v371_v63 = vadd.f32 %v351_v37, %v309_v51  ;;  %v250_v1 = vadd.f32 %v230_v52, %v188_v47  ;;  %v537_v11 = vmul.f32 %v3841_v45, %v516_v44  ;;  %v720_v27 = vld [vmem:[#allocation3 + $0x28] sm:$0xff]  ;;  %v1067_v48 = vld [vmem:[#allocation3 + $0x7b8] sm:$0xff] }
  0x2c   : > { %v416_v12 = vmul.f32 %v3832_v31, %v395_v53  ;;  %v742_v15 = vmul.f32 %v3803_v3, %v721_v55  ;;  %v783_v16 = vmul.f32 %v3805_v4, %v762_v57  ;;  %v559_v2 = vadd.f32 %v539_v41, %v497_v62  ;;  %v1006_v41 = vld [vmem:[#allocation3 + $0x678] sm:$0xff]  ;;  %v944_v52 = vld [vmem:[#allocation3 + $0x528] sm:$0xff] }
  0x2d   : > { %1208 = vadd.xlane.f32.xlu2 %v3894_v61  ;;  %v433_v19 = vadd.f32 %v413_v43, %v371_v63  ;;  %v312_v20 = vadd.f32 %v292_v59, %v250_v1  ;;  %v844_v21 = vmul.f32 %v3807_v6, %v823_v54  ;;  %v599_v28 = vmul.f32 %v3843_v50, %v578_v0  ;;  %v883_v43 = vld [vmem:[#allocation3 + $0x3e8] sm:$0xff]  ;;  %v764_v59 = vld [vmem:[#allocation3 + $0x198] sm:$0xff] }
  0x2e   : > { %v478_v33 = vmul.f32 %v3834_v32, %v457_v7  ;;  %v803_v5 = vadd.f32 %v783_v16, %v742_v15  ;;  %v905_v35 = vmul.f32 %v3809_v8, %v884_v9  ;;  %v3905_v37 = vadd.f32 %v601_v56, %v559_v2  ;;  %v1128_v62 = vld [vmem:[#allocation3 + $0x8f8] sm:$0xff]  ;;  %v1005_v1 = vld [vmem:[#allocation3 + $0x668] sm:$0xff] }
  0x2f   : > { %v495_v38 = vadd.f32 %v475_v58, %v433_v19  ;;  %v374_v39 = vadd.f32 %v354_v60, %v312_v20  ;;  %v540_v40 = vmul.f32 %v3841_v45, %v519_v13  ;;  %v966_v47 = vmul.f32 %v3811_v10, %v945_v22  ;;  %v723_v58 = vld [vmem:[#allocation3 + $0x58] sm:$0xff]  ;;  %v1066_v19 = vld [vmem:[#allocation3 + $0x7a8] sm:$0xff] }
  0x30   : > { %v864_v44 = vadd.f32 %v844_v21, %v803_v5  ;;  %v741_v49 = vmul.f32 %v3803_v3, %v720_v27  ;;  %v782_v51 = vmul.f32 %v3805_v4, %v761_v23  ;;  %664 = vadd.xlane.f32.xlu1 %v3905_v37  ;;  %v602_v57 = vmul.f32 %v3843_v50, %v581_v34  ;;  %v825_v7 = vld [vmem:[#allocation3 + $0x2d8] sm:$0xff]  ;;  %v722_v27 = vld [vmem:[#allocation3 + $0x48] sm:$0xff] }
  0x31   : > { %v557_v53 = vadd.f32 %v537_v11, %v495_v38  ;;  %v436_v55 = vadd.f32 %v416_v12, %v374_v39  ;;  %v843_v56 = vmul.f32 %v3807_v6, %v822_v36  ;;  %v1027_v54 = vmul.f32 %v3818_v17, %v1006_v41  ;;  %v886_v15 = vld [vmem:[#allocation3 + $0x418] sm:$0xff]  ;;  %v1127_v34 = vld [vmem:[#allocation3 + $0x8e8] sm:$0xff] }
  0x32   : > { %v925_v60 = vadd.f32 %v905_v35, %v864_v44  ;;  %v802_v63 = vadd.f32 %v782_v51, %v741_v49  ;;  %v904_v0 = vmul.f32 %v3809_v8, %v883_v43  ;;  %v1088_v11 = vmul.f32 %v3820_v18, %v1067_v48  ;;  %v947_v22 = vld [vmem:[#allocation3 + $0x558] sm:$0xff]  ;;  %v763_v35 = vld [vmem:[#allocation3 + $0x188] sm:$0xff] }
  0x33   : > { %v3916_v9 = vadd.f32 %v599_v28, %v557_v53  ;;  %v498_v13 = vadd.f32 %v478_v33, %v436_v55  ;;  %v965_v12 = vmul.f32 %v3811_v10, %v944_v52  ;;  %v744_v20 = vmul.f32 %v3803_v3, %v723_v58  ;;  %v1008_v43 = vld [vmem:[#allocation3 + $0x698] sm:$0xff]  ;;  %v824_v44 = vld [vmem:[#allocation3 + $0x2c8] sm:$0xff] }
  0x34   : > { %v986_v16 = vadd.f32 %v966_v47, %v925_v60  ;;  %v863_v2 = vadd.f32 %v843_v56, %v802_v63  ;;  %v785_v21 = vmul.f32 %v3805_v4, %v764_v59  ;;  %v1149_v28 = vmul.f32 %v3828_v29, %v1128_v62  ;;  %v885_v47 = vld [vmem:[#allocation3 + $0x408] sm:$0xff]  ;;  %v1069_v51 = vld [vmem:[#allocation3 + $0x7d8] sm:$0xff]  ;;  %v168_v60 = vld [vmem:[#allocation3 + $0x50] sm:$0xff] }
  0x35   : > { %660 = vadd.xlane.f32.xlu0 %v3916_v9  ;;  %v560_v23 = vadd.f32 %v540_v40, %v498_v13  ;;  %v1026_v33 = vmul.f32 %v3818_v17, %v1005_v1  ;;  %v846_v5 = vmul.f32 %v3807_v6, %v825_v7  ;;  %v907_v41 = vmul.f32 %v3809_v8, %v886_v15  ;;  %v946_v59 = vld [vmem:[#allocation3 + $0x548] sm:$0xff]  ;;  %v272_v1 = vld [vmem:[#allocation3 + $0x2d0] sm:$0xff] }
  0x36   : > { %v1047_v36 = vadd.f32 %v1027_v54, %v986_v16  ;;  %v924_v38 = vadd.f32 %v904_v0, %v863_v2  ;;  %v805_v39 = vadd.f32 %v785_v21, %v744_v20  ;;  %v1087_v40 = vmul.f32 %v3820_v18, %v1066_v19  ;;  %v210_v54 = vld [vmem:[#allocation3 + $0x190] sm:$0xff]  ;;  %v1007_v16 = vld [vmem:[#allocation3 + $0x688] sm:$0xff] }
  0x37   : > { %v3927_v48 = vadd.f32 %v602_v57, %v560_v23  ;;  %v968_v49 = vmul.f32 %v3811_v10, %v947_v22  ;;  %v743_v52 = vmul.f32 %v3803_v3, %v722_v27  ;;  %v784_v58 = vmul.f32 %v3805_v4, %v763_v35  ;;  %v334_v2 = vld [vmem:[#allocation3 + $0x410] sm:$0xff]  ;;  %v1068_v21 = vld [vmem:[#allocation3 + $0x7c8] sm:$0xff] }
  0x38   : > { %v1108_v53 = vadd.f32 %v1088_v11, %v1047_v36  ;;  %v985_v55 = vadd.f32 %v965_v12, %v924_v38  ;;  %v866_v56 = vadd.f32 %v846_v5, %v805_v39  ;;  %v1148_v57 = vmul.f32 %v3828_v29, %v1127_v34  ;;  %v1130_v12 = vld [vmem:[#allocation3 + $0x918] sm:$0xff]  ;;  %v396_v5 = vld [vmem:[#allocation3 + $0x550] sm:$0xff]  ;;  %v724_v35 = vld [vmem:[#allocation3 + $0x68] sm:$0xff] }
  0x39   : > { %5513 = vst [vmem:[#allocation6_spill] sm:$0xff] %v3927_v48  ;;  %666 = vadd.xlane.f32.xlu2 %v3927_v48  ;;  %v1029_v62 = vmul.f32 %v3818_v17, %v1008_v43  ;;  %v845_v63 = vmul.f32 %v3807_v6, %v824_v44  ;;  %v906_v0 = vmul.f32 %v3809_v8, %v885_v47  ;;  %v765_v36 = vld [vmem:[#allocation3 + $0x1a8] sm:$0xff] }
  0x3a   : > { %v3938_v7 = vadd.f32 %v1149_v28, %v1108_v53  ;;  %v1046_v13 = vadd.f32 %v1026_v33, %v985_v55  ;;  %v927_v11 = vadd.f32 %v907_v41, %v866_v56  ;;  %v804_v15 = vadd.f32 %v784_v58, %v743_v52  ;;  %v1129_v41 = vld [vmem:[#allocation3 + $0x908] sm:$0xff]  ;;  %v458_v53 = vld [vmem:[#allocation3 + $0x690] sm:$0xff] }
  0x3b   : > { %v1090_v19 = vmul.f32 %v3820_v18, %v1069_v51  ;;  %v967_v20 = vmul.f32 %v3811_v10, %v946_v59  ;;  %v189_v22 = vmul.f32 %v3822_v24, %v168_v60  ;;  %v231_v27 = vmul.f32 %v3824_v25, %v210_v54  ;;  %v826_v47 = vld [vmem:[#allocation3 + $0x2e8] sm:$0xff]  ;;  %v520_v59 = vld [vmem:[#allocation3 + $0x7d0] sm:$0xff] }
  0x3c   : > { %1212 = vadd.xlane.f32.xlu1 %v3938_v7  ;;  %v1107_v23 = vadd.f32 %v1087_v40, %v1046_v13  ;;  %v988_v28 = vadd.f32 %v968_v49, %v927_v11  ;;  %v865_v34 = vadd.f32 %v845_v63, %v804_v15  ;;  %v293_v33 = vmul.f32 %v3826_v26, %v272_v1  ;;  %v887_v55 = vld [vmem:[#allocation3 + $0x428] sm:$0xff]  ;;  %v170_v13 = vld [vmem:[#allocation3 + $0x70] sm:$0xff] }
  0x3d   : > { %v1151_v38 = vmul.f32 %v3828_v29, %v1130_v12  ;;  %v1028_v39 = vmul.f32 %v3818_v17, %v1007_v16  ;;  %v251_v43 = vadd.f32 %v231_v27, %v189_v22  ;;  %v355_v44 = vmul.f32 %v3830_v30, %v334_v2  ;;  %v948_v63 = vld [vmem:[#allocation3 + $0x568] sm:$0xff]  ;;  %v212_v11 = vld [vmem:[#allocation3 + $0x1b0] sm:$0xff] }
  0x3e   : > { %v3949_v51 = vadd.f32 %v1148_v57, %v1107_v23  ;;  %v1049_v52 = vadd.f32 %v1029_v62, %v988_v28  ;;  %v926_v40 = vadd.f32 %v906_v0, %v865_v34  ;;  %v1089_v49 = vmul.f32 %v3820_v18, %v1068_v21  ;;  %v582_v16 = vld [vmem:[#allocation3 + $0x910] sm:$0xff]  ;;  %v1009_v22 = vld [vmem:[#allocation3 + $0x6a8] sm:$0xff] }
  0x3f   : > { %v313_v56 = vadd.f32 %v293_v33, %v251_v43  ;;  %v417_v58 = vmul.f32 %v3832_v31, %v396_v5  ;;  %v745_v60 = vmul.f32 %v3803_v3, %v724_v35  ;;  %v786_v54 = vmul.f32 %v3805_v4, %v765_v36  ;;  %v274_v27 = vld [vmem:[#allocation3 + $0x2f0] sm:$0xff]  ;;  %v1070_v35 = vld [vmem:[#allocation3 + $0x7e8] sm:$0xff] }
  0x40   : > { %1210 = vadd.xlane.f32.xlu0 %v3949_v51  ;;  %v1110_v1 = vadd.f32 %v1090_v19, %v1049_v52  ;;  %v987_v57 = vadd.f32 %v967_v20, %v926_v40  ;;  %v1150_v62 = vmul.f32 %v3828_v29, %v1129_v41  ;;  %v847_v0 = vmul.f32 %v3807_v6, %v826_v47  ;;  %v336_v34 = vld [vmem:[#allocation3 + $0x430] sm:$0xff]  ;;  %v1131_v52 = vld [vmem:[#allocation3 + $0x928] sm:$0xff] }
  0x41   : > { %v375_v12 = vadd.f32 %v355_v44, %v313_v56  ;;  %v479_v15 = vmul.f32 %v3834_v32, %v458_v53  ;;  %v806_v2 = vadd.f32 %v786_v54, %v745_v60  ;;  %v908_v21 = vmul.f32 %v3809_v8, %v887_v55  ;;  %v398_v43 = vld [vmem:[#allocation3 + $0x570] sm:$0xff]  ;;  %v169_v44 = vld [vmem:[#allocation3 + $0x60] sm:$0xff] }
  0x42   : > { %v3960_v23 = vadd.f32 %v1151_v38, %v1110_v1  ;;  %v1048_v28 = vadd.f32 %v1028_v39, %v987_v57  ;;  %v541_v19 = vmul.f32 %v3841_v45, %v520_v59  ;;  %v969_v20 = vmul.f32 %v3811_v10, %v948_v63  ;;  %v211_v53 = vld [vmem:[#allocation3 + $0x1a0] sm:$0xff]  ;;  %v460_v60 = vld [vmem:[#allocation3 + $0x6b0] sm:$0xff] }
  0x43   : > { %v437_v33 = vadd.f32 %v417_v58, %v375_v12  ;;  %v867_v5 = vadd.f32 %v847_v0, %v806_v2  ;;  %v191_v36 = vmul.f32 %v3822_v24, %v170_v13  ;;  %v233_v41 = vmul.f32 %v3824_v25, %v212_v11  ;;  %v273_v54 = vld [vmem:[#allocation3 + $0x2e0] sm:$0xff]  ;;  %v522_v0 = vld [vmem:[#allocation3 + $0x7f0] sm:$0xff] }
  0x44   : > { %5514 = vst [vmem:[#allocation7_spill] sm:$0xff] %v3960_v23  ;;  %1216 = vadd.xlane.f32.xlu2 %v3960_v23  ;;  %v1109_v47 = vadd.f32 %v1089_v49, %v1048_v28  ;;  %v603_v38 = vmul.f32 %v3843_v50, %v582_v16  ;;  %v1030_v39 = vmul.f32 %v3818_v17, %v1009_v22  ;;  %v335_v63 = vld [vmem:[#allocation3 + $0x420] sm:$0xff]  ;;  %v214_v22 = vld [vmem:[#allocation3 + $0x1d0] sm:$0xff] }
  0x45   : > { %v295_v40 = vmul.f32 %v3826_v26, %v274_v27  ;;  %v499_v55 = vadd.f32 %v479_v15, %v437_v33  ;;  %v928_v56 = vadd.f32 %v908_v21, %v867_v5  ;;  %v253_v58 = vadd.f32 %v233_v41, %v191_v36  ;;  %v397_v2 = vld [vmem:[#allocation3 + $0x560] sm:$0xff]  ;;  %v172_v21 = vld [vmem:[#allocation3 + $0x90] sm:$0xff] }
  0x46   : > { %v357_v59 = vmul.f32 %v3830_v30, %v336_v34  ;;  %v3971_v1 = vadd.f32 %v1150_v62, %v1109_v47  ;;  %v1091_v49 = vmul.f32 %v3820_v18, %v1070_v35  ;;  %v419_v57 = vmul.f32 %v3832_v31, %v398_v43  ;;  %v276_v33 = vld [vmem:[#allocation3 + $0x310] sm:$0xff]  ;;  %v459_v41 = vld [vmem:[#allocation3 + $0x6a0] sm:$0xff] }
  0x47   : > { %v190_v13 = vmul.f32 %v3822_v24, %v169_v44  ;;  %v561_v11 = vadd.f32 %v541_v19, %v499_v55  ;;  %v989_v12 = vadd.f32 %v969_v20, %v928_v56  ;;  %v315_v16 = vadd.f32 %v295_v40, %v253_v58  ;;  %v584_v35 = vld [vmem:[#allocation3 + $0x930] sm:$0xff] }
  0x48   : > { %5515 = vst [vmem:[#allocation8_spill] sm:$0xff] %v3971_v1  ;;  %v232_v15 = vmul.f32 %v3824_v25, %v211_v53  ;;  %1214 = vadd.xlane.f32.xlu1 %v3971_v1  ;;  %v1152_v62 = vmul.f32 %v3828_v29, %v1131_v52  ;;  %v481_v27 = vmul.f32 %v3834_v32, %v460_v60  ;;  %v338_v43 = vld [vmem:[#allocation3 + $0x450] sm:$0xff]  ;;  %v521_v52 = vld [vmem:[#allocation3 + $0x7e0] sm:$0xff] }
  0x49   : > { %v294_v28 = vmul.f32 %v3826_v26, %v273_v54  ;;  %v356_v34 = vmul.f32 %v3830_v30, %v335_v63  ;;  %v3982_v5 = vadd.f32 %v603_v38, %v561_v11  ;;  %v1050_v19 = vadd.f32 %v1030_v39, %v989_v12  ;;  %v400_v58 = vld [vmem:[#allocation3 + $0x590] sm:$0xff]  ;;  %v213_v60 = vld [vmem:[#allocation3 + $0x1c0] sm:$0xff] }
  0x4a   : > { %v377_v20 = vadd.f32 %v357_v59, %v315_v16  ;;  %v252_v36 = vadd.f32 %v232_v15, %v190_v13  ;;  %v543_v44 = vmul.f32 %v3841_v45, %v522_v0  ;;  %v418_v47 = vmul.f32 %v3832_v31, %v397_v2  ;;  %v171_v59 = vld [vmem:[#allocation3 + $0x80] sm:$0xff]  ;;  %v462_v2 = vld [vmem:[#allocation3 + $0x6d0] sm:$0xff] }
  0x4b   : > { %5516 = vst [vmem:[#allocation9_spill] sm:$0xff] %v3982_v5  ;;  %v193_v40 = vmul.f32 %v3822_v24, %v172_v21  ;;  %v235_v53 = vmul.f32 %v3824_v25, %v214_v22  ;;  %668 = vadd.xlane.f32.xlu0 %v3982_v5  ;;  %v1111_v55 = vadd.f32 %v1091_v49, %v1050_v19  ;;  %v583_v0 = vld [vmem:[#allocation3 + $0x920] sm:$0xff] }
  0x4c   : > { %v439_v38 = vadd.f32 %v419_v57, %v377_v20  ;;  %v314_v56 = vadd.f32 %v294_v28, %v252_v36  ;;  %v297_v39 = vmul.f32 %v3826_v26, %v276_v33  ;;  %v605_v54 = vmul.f32 %v3843_v50, %v584_v35  ;;  %v275_v12 = vld [vmem:[#allocation3 + $0x300] sm:$0xff]  ;;  %v524_v33 = vld [vmem:[#allocation3 + $0x810] sm:$0xff] }
  0x4d   : > { %v480_v63 = vmul.f32 %v3834_v32, %v459_v41  ;;  %v255_v13 = vadd.f32 %v235_v53, %v193_v40  ;;  %v359_v11 = vmul.f32 %v3830_v30, %v338_v43  ;;  %v3993_v16 = vadd.f32 %v1152_v62, %v1111_v55  ;;  %v337_v21 = vld [vmem:[#allocation3 + $0x440] sm:$0xff]  ;;  %v725_v41 = vld [vmem:[#allocation3 + $0x78] sm:$0xff]  ;;  %v586_v53 = vld [vmem:[#allocation3 + $0x950] sm:$0xff] }
  0x4e   : > { %v501_v15 = vadd.f32 %v481_v27, %v439_v38  ;;  %v376_v49 = vadd.f32 %v356_v34, %v314_v56  ;;  %v542_v57 = vmul.f32 %v3841_v45, %v521_v52  ;;  %v421_v28 = vmul.f32 %v3832_v31, %v400_v58  ;;  %v399_v35 = vld [vmem:[#allocation3 + $0x580] sm:$0xff]  ;;  %v766_v43 = vld [vmem:[#allocation3 + $0x1b8] sm:$0xff] }
  0x4f   : > { %5517 = vst [vmem:[#allocation10_spill] sm:$0xff] %v3993_v16  ;;  %v317_v22 = vadd.f32 %v297_v39, %v255_v13  ;;  %v192_v19 = vmul.f32 %v3822_v24, %v171_v59  ;;  %v234_v20 = vmul.f32 %v3824_v25, %v213_v60  ;;  %1218 = vadd.xlane.f32.xlu2 %v3993_v16  ;;  %v461_v56 = vld [vmem:[#allocation3 + $0x6c0] sm:$0xff]  ;;  %v827_v39 = vld [vmem:[#allocation3 + $0x2f8] sm:$0xff] }
  0x50   : > { %v563_v36 = vadd.f32 %v543_v44, %v501_v15  ;;  %v438_v62 = vadd.f32 %v418_v47, %v376_v49  ;;  %v604_v27 = vmul.f32 %v3843_v50, %v583_v0  ;;  %v296_v34 = vmul.f32 %v3826_v26, %v275_v12  ;;  %v888_v60 = vld [vmem:[#allocation3 + $0x438] sm:$0xff]  ;;  %v523_v12 = vld [vmem:[#allocation3 + $0x800] sm:$0xff] }
  0x51   : > { %v379_v52 = vadd.f32 %v359_v11, %v317_v22  ;;  %v483_v40 = vmul.f32 %v3834_v32, %v462_v2  ;;  %v254_v55 = vadd.f32 %v234_v20, %v192_v19  ;;  %v358_v38 = vmul.f32 %v3830_v30, %v337_v21  ;;  %v949_v49 = vld [vmem:[#allocation3 + $0x578] sm:$0xff]  ;;  %v173_v2 = vld [vmem:[#allocation3 + $0xa0] sm:$0xff] }
  0x52   : > { %v4004_v58 = vadd.f32 %v605_v54, %v563_v36  ;;  %v500_v59 = vadd.f32 %v480_v63, %v438_v62  ;;  %v545_v44 = vmul.f32 %v3841_v45, %v524_v33  ;;  %v420_v47 = vmul.f32 %v3832_v31, %v399_v35  ;;  %v585_v22 = vld [vmem:[#allocation3 + $0x940] sm:$0xff]  ;;  %v1010_v62 = vld [vmem:[#allocation3 + $0x6b8] sm:$0xff] }
  0x53   : > { %v441_v0 = vadd.f32 %v421_v28, %v379_v52  ;;  %v316_v13 = vadd.f32 %v296_v34, %v254_v55  ;;  %v746_v11 = vmul.f32 %v3803_v3, %v725_v41  ;;  %v787_v15 = vmul.f32 %v3805_v4, %v766_v43  ;;  %v215_v19 = vld [vmem:[#allocation3 + $0x1e0] sm:$0xff] }
  0x54   : > { %5518 = vst [vmem:[#allocation11_spill] sm:$0xff] %v4004_v58  ;;  %672 = vadd.xlane.f32.xlu1 %v4004_v58  ;;  %v562_v21 = vadd.f32 %v542_v57, %v500_v59  ;;  %v607_v54 = vmul.f32 %v3843_v50, %v586_v53  ;;  %v482_v63 = vmul.f32 %v3834_v32, %v461_v56  ;;  %v277_v34 = vld [vmem:[#allocation3 + $0x320] sm:$0xff]  ;;  %v1071_v53 = vld [vmem:[#allocation3 + $0x7f8] sm:$0xff] }
  0x55   : > { %v848_v33 = vmul.f32 %v3807_v6, %v827_v39  ;;  %v503_v28 = vadd.f32 %v483_v40, %v441_v0  ;;  %v378_v20 = vadd.f32 %v358_v38, %v316_v13  ;;  %v807_v35 = vadd.f32 %v787_v15, %v746_v11  ;;  %v339_v41 = vld [vmem:[#allocation3 + $0x460] sm:$0xff]  ;;  %v727_v0 = vld [vmem:[#allocation3 + $0x98] sm:$0xff] }
  0x56   : > { %v909_v36 = vmul.f32 %v3809_v8, %v888_v60  ;;  %v4015_v43 = vadd.f32 %v604_v27, %v562_v21  ;;  %v544_v57 = vmul.f32 %v3841_v45, %v523_v12  ;;  %v970_v52 = vmul.f32 %v3811_v10, %v949_v49  ;;  %v401_v38 = vld [vmem:[#allocation3 + $0x5a0] sm:$0xff]  ;;  %v768_v60 = vld [vmem:[#allocation3 + $0x1d8] sm:$0xff] }
  0x57   : > { %v194_v55 = vmul.f32 %v3822_v24, %v173_v2  ;;  %v565_v56 = vadd.f32 %v545_v44, %v503_v28  ;;  %v440_v39 = vadd.f32 %v420_v47, %v378_v20  ;;  %v868_v59 = vadd.f32 %v848_v33, %v807_v35  ;;  %v829_v15 = vld [vmem:[#allocation3 + $0x318] sm:$0xff]  ;;  %v463_v33 = vld [vmem:[#allocation3 + $0x6e0] sm:$0xff] }
  0x58   : > { %5519 = vst [vmem:[#allocation12_spill] sm:$0xff] %v4015_v43  ;;  %v236_v40 = vmul.f32 %v3824_v25, %v215_v19  ;;  %670 = vadd.xlane.f32.xlu0 %v4015_v43  ;;  %v606_v27 = vmul.f32 %v3843_v50, %v585_v22  ;;  %v1031_v13 = vmul.f32 %v3818_v17, %v1010_v62  ;;  %v1132_v2 = vld [vmem:[#allocation3 + $0x938] sm:$0xff]  ;;  %v525_v22 = vld [vmem:[#allocation3 + $0x820] sm:$0xff] }
  0x59   : > { %v298_v12 = vmul.f32 %v3826_v26, %v277_v34  ;;  %v360_v11 = vmul.f32 %v3830_v30, %v339_v41  ;;  %v4026_v49 = vadd.f32 %v607_v54, %v565_v56  ;;  %v502_v44 = vadd.f32 %v482_v63, %v440_v39  ;;  %v890_v19 = vld [vmem:[#allocation3 + $0x458] sm:$0xff]  ;;  %v767_v56 = vld [vmem:[#allocation3 + $0x1c8] sm:$0xff] }
  0x5a   : > { %v929_v47 = vadd.f32 %v909_v36, %v868_v59  ;;  %v256_v21 = vadd.f32 %v236_v40, %v194_v55  ;;  %v1092_v28 = vmul.f32 %v3820_v18, %v1071_v53  ;;  %v422_v20 = vmul.f32 %v3832_v31, %v401_v38  ;;  %v951_v36 = vld [vmem:[#allocation3 + $0x598] sm:$0xff]  ;;  %v726_v55 = vld [vmem:[#allocation3 + $0x88] sm:$0xff]  ;;  %v587_v59 = vld [vmem:[#allocation3 + $0x960] sm:$0xff] }
  0x5b   : > { %5520 = vst [vmem:[#allocation13_spill] sm:$0xff] %v4026_v49  ;;  %v748_v35 = vmul.f32 %v3803_v3, %v727_v0  ;;  %v789_v62 = vmul.f32 %v3805_v4, %v768_v60  ;;  %676 = vadd.xlane.f32.xlu2 %v4026_v49  ;;  %v564_v34 = vadd.f32 %v544_v57, %v502_v44  ;;  %v828_v0 = vld [vmem:[#allocation3 + $0x308] sm:$0xff] }
  0x5c   : > { %v990_v54 = vadd.f32 %v970_v52, %v929_v47  ;;  %v318_v41 = vadd.f32 %v298_v12, %v256_v21  ;;  %v850_v63 = vmul.f32 %v3807_v6, %v829_v15  ;;  %v1153_v39 = vmul.f32 %v3828_v29, %v1132_v2  ;;  %v1012_v12 = vld [vmem:[#allocation3 + $0x6d8] sm:$0xff]  ;;  %v889_v15 = vld [vmem:[#allocation3 + $0x448] sm:$0xff] }
  0x5d   : > { %v484_v53 = vmul.f32 %v3834_v32, %v463_v33  ;;  %v809_v40 = vadd.f32 %v789_v62, %v748_v35  ;;  %v911_v38 = vmul.f32 %v3809_v8, %v890_v19  ;;  %v4037_v60 = vadd.f32 %v606_v27, %v564_v34  ;;  %v1073_v21 = vld [vmem:[#allocation3 + $0x818] sm:$0xff]  ;;  %v950_v35 = vld [vmem:[#allocation3 + $0x588] sm:$0xff] }
  0x5e   : > { %v1051_v16 = vadd.f32 %v1031_v13, %v990_v54  ;;  %v380_v57 = vadd.f32 %v360_v11, %v318_v41  ;;  %v546_v52 = vmul.f32 %v3841_v45, %v525_v22  ;;  %v972_v47 = vmul.f32 %v3811_v10, %v951_v36  ;;  %v729_v22 = vld [vmem:[#allocation3 + $0xb8] sm:$0xff] }
  0x5f   : > { %5521 = vst [vmem:[#allocation14_spill] sm:$0xff] %v4037_v60  ;;  %v870_v44 = vadd.f32 %v850_v63, %v809_v40  ;;  %v747_v2 = vmul.f32 %v3803_v3, %v726_v55  ;;  %v788_v33 = vmul.f32 %v3805_v4, %v767_v56  ;;  %674 = vadd.xlane.f32.xlu1 %v4037_v60  ;;  %v770_v62 = vld [vmem:[#allocation3 + $0x1f8] sm:$0xff]  ;;  %v1011_v55 = vld [vmem:[#allocation3 + $0x6c8] sm:$0xff] }
  0x60   : > { %v1112_v19 = vadd.f32 %v1092_v28, %v1051_v16  ;;  %v442_v27 = vadd.f32 %v422_v20, %v380_v57  ;;  %v608_v13 = vmul.f32 %v3843_v50, %v587_v59  ;;  %v849_v11 = vmul.f32 %v3807_v6, %v828_v0  ;;  %v1134_v41 = vld [vmem:[#allocation3 + $0x958] sm:$0xff]  ;;  %v1072_v57 = vld [vmem:[#allocation3 + $0x808] sm:$0xff] }
  0x61   : > { %v931_v34 = vadd.f32 %v911_v38, %v870_v44  ;;  %v1033_v54 = vmul.f32 %v3818_v17, %v1012_v12  ;;  %v808_v63 = vadd.f32 %v788_v33, %v747_v2  ;;  %v910_v36 = vmul.f32 %v3809_v8, %v889_v15  ;;  %v831_v56 = vld [vmem:[#allocation3 + $0x338] sm:$0xff]  ;;  %v728_v2 = vld [vmem:[#allocation3 + $0xa8] sm:$0xff] }
  0x62   : > { %v4048_v40 = vadd.f32 %v1153_v39, %v1112_v19  ;;  %v504_v43 = vadd.f32 %v484_v53, %v442_v27  ;;  %v1094_v16 = vmul.f32 %v3820_v18, %v1073_v21  ;;  %v971_v28 = vmul.f32 %v3811_v10, %v950_v35  ;;  %v892_v20 = vld [vmem:[#allocation3 + $0x478] sm:$0xff]  ;;  %v1133_v21 = vld [vmem:[#allocation3 + $0x948] sm:$0xff] }
  0x63   : > { %v992_v59 = vadd.f32 %v972_v47, %v931_v34  ;;  %v869_v0 = vadd.f32 %v849_v11, %v808_v63  ;;  %v750_v38 = vmul.f32 %v3803_v3, %v729_v22  ;;  %v791_v12 = vmul.f32 %v3805_v4, %v770_v62  ;;  %v953_v44 = vld [vmem:[#allocation3 + $0x5b8] sm:$0xff]  ;;  %v769_v35 = vld [vmem:[#allocation3 + $0x1e8] sm:$0xff] }
  0x64   : > { %5522 = vst [vmem:[#allocation15_spill] sm:$0xff] %v4048_v40  ;;  %1220 = vadd.xlane.f32.xlu0 %v4048_v40  ;;  %v566_v15 = vadd.f32 %v546_v52, %v504_v43  ;;  %v1155_v39 = vmul.f32 %v3828_v29, %v1134_v41  ;;  %v1032_v53 = vmul.f32 %v3818_v17, %v1011_v55  ;;  %v1014_v22 = vld [vmem:[#allocation3 + $0x6f8] sm:$0xff]  ;;  %v830_v62 = vld [vmem:[#allocation3 + $0x328] sm:$0xff] }
  0x65   : > { %v852_v33 = vmul.f32 %v3807_v6, %v831_v56  ;;  %v1053_v47 = vadd.f32 %v1033_v54, %v992_v59  ;;  %v930_v19 = vadd.f32 %v910_v36, %v869_v0  ;;  %v811_v27 = vadd.f32 %v791_v12, %v750_v38  ;;  %v891_v34 = vld [vmem:[#allocation3 + $0x468] sm:$0xff]  ;;  %v1075_v54 = vld [vmem:[#allocation3 + $0x838] sm:$0xff]  ;;  %v174_v59 = vld [vmem:[#allocation3 + $0xb0] sm:$0xff] }
  0x66   : > { %v913_v11 = vmul.f32 %v3809_v8, %v892_v20  ;;  %v4059_v63 = vadd.f32 %v608_v13, %v566_v15  ;;  %v1093_v43 = vmul.f32 %v3820_v18, %v1072_v57  ;;  %v974_v52 = vmul.f32 %v3811_v10, %v953_v44  ;;  %v952_v55 = vld [vmem:[#allocation3 + $0x5a8] sm:$0xff]  ;;  %v216_v20 = vld [vmem:[#allocation3 + $0x1f0] sm:$0xff] }
  0x67   : > { %v749_v41 = vmul.f32 %v3803_v3, %v728_v2  ;;  %v1114_v40 = vadd.f32 %v1094_v16, %v1053_v47  ;;  %v991_v56 = vadd.f32 %v971_v28, %v930_v19  ;;  %v872_v58 = vadd.f32 %v852_v33, %v811_v27  ;;  %v278_v12 = vld [vmem:[#allocation3 + $0x330] sm:$0xff]  ;;  %v1136_v2 = vld [vmem:[#allocation3 + $0x978] sm:$0xff]  ;;  %v1013_v33 = vld [vmem:[#allocation3 + $0x6e8] sm:$0xff] }
  0x68   : > { %5523 = vst [vmem:[#allocation16_spill] sm:$0xff] %v4059_v63  ;;  %v790_v36 = vmul.f32 %v3805_v4, %v769_v35  ;;  %678 = vadd.xlane.f32.xlu2 %v4059_v63  ;;  %v1154_v13 = vmul.f32 %v3828_v29, %v1133_v21  ;;  %v1035_v0 = vmul.f32 %v3818_v17, %v1014_v22  ;;  %v340_v35 = vld [vmem:[#allocation3 + $0x470] sm:$0xff]  ;;  %v1074_v21 = vld [vmem:[#allocation3 + $0x828] sm:$0xff] }
  0x69   : > { %v851_v57 = vmul.f32 %v3807_v6, %v830_v62  ;;  %v912_v38 = vmul.f32 %v3809_v8, %v891_v34  ;;  %v4070_v44 = vadd.f32 %v1155_v39, %v1114_v40  ;;  %v1052_v16 = vadd.f32 %v1032_v53, %v991_v56  ;;  %v402_v53 = vld [vmem:[#allocation3 + $0x5b0] sm:$0xff]  ;;  %v771_v34 = vld [vmem:[#allocation3 + $0x208] sm:$0xff] }
  0x6a   : > { %v933_v28 = vadd.f32 %v913_v11, %v872_v58  ;;  %v810_v15 = vadd.f32 %v790_v36, %v749_v41  ;;  %v1096_v47 = vmul.f32 %v3820_v18, %v1075_v54  ;;  %v973_v19 = vmul.f32 %v3811_v10, %v952_v55  ;;  %v730_v11 = vld [vmem:[#allocation3 + $0xc8] sm:$0xff] }
  0x6b   : > { %5524 = vst [vmem:[#allocation17_spill] sm:$0xff] %v4070_v44  ;;  %v195_v27 = vmul.f32 %v3822_v24, %v174_v59  ;;  %v237_v22 = vmul.f32 %v3824_v25, %v216_v20  ;;  %1224 = vadd.xlane.f32.xlu1 %v4070_v44  ;;  %v1113_v62 = vadd.f32 %v1093_v43, %v1052_v16  ;;  %v1135_v55 = vld [vmem:[#allocation3 + $0x968] sm:$0xff] }
  0x6c   : > { %v994_v40 = vadd.f32 %v974_v52, %v933_v28  ;;  %v871_v39 = vadd.f32 %v851_v57, %v810_v15  ;;  %v299_v58 = vmul.f32 %v3826_v26, %v278_v12  ;;  %v1157_v41 = vmul.f32 %v3828_v29, %v1136_v2  ;;  %v832_v59 = vld [vmem:[#allocation3 + $0x348] sm:$0xff]  ;;  %v464_v57 = vld [vmem:[#allocation3 + $0x6f0] sm:$0xff] }
  0x6d   : > { %v1034_v56 = vmul.f32 %v3818_v17, %v1013_v33  ;;  %v257_v54 = vadd.f32 %v237_v22, %v195_v27  ;;  %v361_v36 = vmul.f32 %v3830_v30, %v340_v35  ;;  %v4081_v20 = vadd.f32 %v1154_v13, %v1113_v62  ;;  %v893_v12 = vld [vmem:[#allocation3 + $0x488] sm:$0xff]  ;;  %v526_v15 = vld [vmem:[#allocation3 + $0x830] sm:$0xff] }
  0x6e   : > { %v1055_v23 = vadd.f32 %v1035_v0, %v994_v40  ;;  %v932_v43 = vadd.f32 %v912_v38, %v871_v39  ;;  %v1095_v52 = vmul.f32 %v3820_v18, %v1074_v21  ;;  %v423_v28 = vmul.f32 %v3832_v31, %v402_v53  ;;  %v954_v27 = vld [vmem:[#allocation3 + $0x5c8] sm:$0xff]  ;;  %v176_v21 = vld [vmem:[#allocation3 + $0xd0] sm:$0xff] }
  0x6f   : > { %5525 = vst [vmem:[#allocation18_spill] sm:$0xff] %v4081_v20  ;;  %v319_v16 = vadd.f32 %v299_v58, %v257_v54  ;;  %v751_v2 = vmul.f32 %v3803_v3, %v730_v11  ;;  %v792_v33 = vmul.f32 %v3805_v4, %v771_v34  ;;  %1222 = vadd.xlane.f32.xlu0 %v4081_v20  ;;  %v218_v22 = vld [vmem:[#allocation3 + $0x210] sm:$0xff]  ;;  %v1015_v11 = vld [vmem:[#allocation3 + $0x708] sm:$0xff] }
  0x70   : > { %v1116_v35 = vadd.f32 %v1096_v47, %v1055_v23  ;;  %v993_v13 = vadd.f32 %v973_v19, %v932_v43  ;;  %v1156_v0 = vmul.f32 %v3828_v29, %v1135_v55  ;;  %v853_v38 = vmul.f32 %v3807_v6, %v832_v59  ;;  %v588_v39 = vld [vmem:[#allocation3 + $0x970] sm:$0xff]  ;;  %v1076_v43 = vld [vmem:[#allocation3 + $0x848] sm:$0xff] }
  0x71   : > { %v381_v62 = vadd.f32 %v361_v36, %v319_v16  ;;  %v485_v40 = vmul.f32 %v3834_v32, %v464_v57  ;;  %v812_v58 = vadd.f32 %v792_v33, %v751_v2  ;;  %v914_v53 = vmul.f32 %v3809_v8, %v893_v12  ;;  %v280_v34 = vld [vmem:[#allocation3 + $0x350] sm:$0xff]  ;;  %v175_v2 = vld [vmem:[#allocation3 + $0xc0] sm:$0xff] }
  0x72   : > { %v4092_v54 = vadd.f32 %v1157_v41, %v1116_v35  ;;  %v1054_v5 = vadd.f32 %v1034_v56, %v993_v13  ;;  %v547_v23 = vmul.f32 %v3841_v45, %v526_v15  ;;  %v975_v47 = vmul.f32 %v3811_v10, %v954_v27  ;;  %v342_v19 = vld [vmem:[#allocation3 + $0x490] sm:$0xff]  ;;  %v217_v33 = vld [vmem:[#allocation3 + $0x200] sm:$0xff]  ;;  %v1137_v13 = vld [vmem:[#allocation3 + $0x988] sm:$0xff] }
  0x73   : > { %v443_v55 = vadd.f32 %v423_v28, %v381_v62  ;;  %v873_v59 = vadd.f32 %v853_v38, %v812_v58  ;;  %v197_v36 = vmul.f32 %v3822_v24, %v176_v21  ;;  %v239_v57 = vmul.f32 %v3824_v25, %v218_v22  ;;  %v404_v16 = vld [vmem:[#allocation3 + $0x5d0] sm:$0xff]  ;;  %v279_v27 = vld [vmem:[#allocation3 + $0x340] sm:$0xff] }
  0x74   : > { %5526 = vst [vmem:[#allocation19_spill] sm:$0xff] %v4092_v54  ;;  %1228 = vadd.xlane.f32.xlu2 %v4092_v54  ;;  %v1115_v12 = vadd.f32 %v1095_v52, %v1054_v5  ;;  %v609_v41 = vmul.f32 %v3843_v50, %v588_v39  ;;  %v1036_v56 = vmul.f32 %v3818_v17, %v1015_v11  ;;  %v466_v22 = vld [vmem:[#allocation3 + $0x710] sm:$0xff]  ;;  %v341_v62 = vld [vmem:[#allocation3 + $0x480] sm:$0xff] }
  0x75   : > { %v301_v15 = vmul.f32 %v3826_v26, %v280_v34  ;;  %v505_v28 = vadd.f32 %v485_v40, %v443_v55  ;;  %v934_v35 = vadd.f32 %v914_v53, %v873_v59  ;;  %v259_v38 = vadd.f32 %v239_v57, %v197_v36  ;;  %v528_v39 = vld [vmem:[#allocation3 + $0x850] sm:$0xff]  ;;  %v403_v53 = vld [vmem:[#allocation3 + $0x5c0] sm:$0xff] }
  0x76   : > { %v363_v21 = vmul.f32 %v3830_v30, %v342_v19  ;;  %v4103_v58 = vadd.f32 %v1156_v0, %v1115_v12  ;;  %v1097_v5 = vmul.f32 %v3820_v18, %v1076_v43  ;;  %v425_v52 = vmul.f32 %v3832_v31, %v404_v16  ;;  %v178_v55 = vld [vmem:[#allocation3 + $0xf0] sm:$0xff] }
  0x77   : > { %v196_v11 = vmul.f32 %v3822_v24, %v175_v2  ;;  %v567_v34 = vadd.f32 %v547_v23, %v505_v28  ;;  %v995_v1 = vadd.f32 %v975_v47, %v934_v35  ;;  %v321_v48 = vadd.f32 %v301_v15, %v259_v38  ;;  %v220_v59 = vld [vmem:[#allocation3 + $0x230] sm:$0xff]  ;;  %v465_v15 = vld [vmem:[#allocation3 + $0x700] sm:$0xff] }
  0x78   : > { %5527 = vst [vmem:[#allocation20_spill] sm:$0xff] %v4103_v58  ;;  %v238_v40 = vmul.f32 %v3824_v25, %v217_v33  ;;  %1226 = vadd.xlane.f32.xlu1 %v4103_v58  ;;  %v1158_v0 = vmul.f32 %v3828_v29, %v1137_v13  ;;  %v487_v19 = vmul.f32 %v3834_v32, %v466_v22  ;;  %v282_v57 = vld [vmem:[#allocation3 + $0x370] sm:$0xff]  ;;  %v527_v13 = vld [vmem:[#allocation3 + $0x840] sm:$0xff] }
  0x79   : > { %v300_v43 = vmul.f32 %v3826_v26, %v279_v27  ;;  %v362_v36 = vmul.f32 %v3830_v30, %v341_v62  ;;  %v4114_v16 = vadd.f32 %v609_v41, %v567_v34  ;;  %v1056_v23 = vadd.f32 %v1036_v56, %v995_v1  ;;  %v590_v2 = vld [vmem:[#allocation3 + $0x990] sm:$0xff]  ;;  %v177_v56 = vld [vmem:[#allocation3 + $0xe0] sm:$0xff] }
  0x7a   : > { %v383_v47 = vadd.f32 %v363_v21, %v321_v48  ;;  %v258_v12 = vadd.f32 %v238_v40, %v196_v11  ;;  %v344_v33 = vld [vmem:[#allocation3 + $0x4b0] sm:$0xff]  ;;  %v549_v28 = vmul.f32 %v3841_v45, %v528_v39  ;;  %v424_v35 = vmul.f32 %v3832_v31, %v403_v53  ;;  %v219_v21 = vld [vmem:[#allocation3 + $0x220] sm:$0xff] }
  0x7b   : > { %5528 = vst [vmem:[#allocation21_spill] sm:$0xff] %v4114_v16  ;;  %v199_v38 = vmul.f32 %v3822_v24, %v178_v55  ;;  %v241_v27 = vmul.f32 %v3824_v25, %v220_v59  ;;  %680 = vadd.xlane.f32.xlu0 %v4114_v16  ;;  %v1117_v22 = vadd.f32 %v1097_v5, %v1056_v23  ;;  %v406_v1 = vld [vmem:[#allocation3 + $0x5f0] sm:$0xff]  ;;  %v589_v34 = vld [vmem:[#allocation3 + $0x980] sm:$0xff] }
  0x7c   : > { %v445_v41 = vadd.f32 %v425_v52, %v383_v47  ;;  %v320_v62 = vadd.f32 %v300_v43, %v258_v12  ;;  %v303_v48 = vmul.f32 %v3826_v26, %v282_v57  ;;  %v611_v11 = vmul.f32 %v3843_v50, %v590_v2  ;;  %v281_v55 = vld [vmem:[#allocation3 + $0x360] sm:$0xff]  ;;  %v468_v43 = vld [vmem:[#allocation3 + $0x730] sm:$0xff] }
  0x7d   : > { %v486_v39 = vmul.f32 %v3834_v32, %v465_v15  ;;  %v261_v40 = vadd.f32 %v241_v27, %v199_v38  ;;  %v365_v53 = vmul.f32 %v3830_v30, %v344_v33  ;;  %v4125_v59 = vadd.f32 %v1158_v0, %v1117_v22  ;;  %v343_v57 = vld [vmem:[#allocation3 + $0x4a0] sm:$0xff]  ;;  %v530_v12 = vld [vmem:[#allocation3 + $0x870] sm:$0xff]  ;;  %v772_v27 = vld [vmem:[#allocation3 + $0x218] sm:$0xff] }
  0x7e   : > { %v507_v54 = vadd.f32 %v487_v19, %v445_v41  ;;  %v382_v5 = vadd.f32 %v362_v36, %v320_v62  ;;  %v548_v52 = vmul.f32 %v3841_v45, %v527_v13  ;;  %v427_v47 = vmul.f32 %v3832_v31, %v406_v1  ;;  %v405_v38 = vld [vmem:[#allocation3 + $0x5e0] sm:$0xff]  ;;  %v731_v13 = vld [vmem:[#allocation3 + $0xd8] sm:$0xff]  ;;  %v592_v62 = vld [vmem:[#allocation3 + $0x9b0] sm:$0xff] }
  0x7f   : > { %5529 = vst [vmem:[#allocation22_spill] sm:$0xff] %v4125_v59  ;;  %v323_v23 = vadd.f32 %v303_v48, %v261_v40  ;;  %v198_v2 = vmul.f32 %v3822_v24, %v177_v56  ;;  %v240_v15 = vmul.f32 %v3824_v25, %v219_v21  ;;  %1230 = vadd.xlane.f32.xlu2 %v4125_v59  ;;  %v467_v56 = vld [vmem:[#allocation3 + $0x720] sm:$0xff]  ;;  %v833_v21 = vld [vmem:[#allocation3 + $0x358] sm:$0xff] }
  0x80   : > { %v569_v33 = vadd.f32 %v549_v28, %v507_v54  ;;  %v444_v0 = vadd.f32 %v424_v35, %v382_v5  ;;  %v610_v19 = vmul.f32 %v3843_v50, %v589_v34  ;;  %v302_v36 = vmul.f32 %v3826_v26, %v281_v55  ;;  %v894_v35 = vld [vmem:[#allocation3 + $0x498] sm:$0xff]  ;;  %v529_v5 = vld [vmem:[#allocation3 + $0x860] sm:$0xff] }
  0x81   : > { %v385_v22 = vadd.f32 %v365_v53, %v323_v23  ;;  %v489_v41 = vmul.f32 %v3834_v32, %v468_v43  ;;  %v260_v48 = vadd.f32 %v240_v15, %v198_v2  ;;  %v364_v1 = vmul.f32 %v3830_v30, %v343_v57  ;;  %v955_v23 = vld [vmem:[#allocation3 + $0x5d8] sm:$0xff]  ;;  %v179_v2 = vld [vmem:[#allocation3 + $0x100] sm:$0xff] }
  0x82   : > { %v4136_v40 = vadd.f32 %v611_v11, %v569_v33  ;;  %v506_v59 = vadd.f32 %v486_v39, %v444_v0  ;;  %v551_v54 = vmul.f32 %v3841_v45, %v530_v12  ;;  %v426_v28 = vmul.f32 %v3832_v31, %v405_v38  ;;  %v1016_v15 = vld [vmem:[#allocation3 + $0x718] sm:$0xff]  ;;  %v221_v38 = vld [vmem:[#allocation3 + $0x240] sm:$0xff] }
  0x83   : > { %v447_v34 = vadd.f32 %v427_v47, %v385_v22  ;;  %v322_v55 = vadd.f32 %v302_v36, %v260_v48  ;;  %v752_v53 = vmul.f32 %v3803_v3, %v731_v13  ;;  %v793_v43 = vmul.f32 %v3805_v4, %v772_v27  ;;  %v591_v0 = vld [vmem:[#allocation3 + $0x9a0] sm:$0xff] }
  0x84   : > { %5530 = vst [vmem:[#allocation23_spill] sm:$0xff] %v4136_v40  ;;  %684 = vadd.xlane.f32.xlu1 %v4136_v40  ;;  %v568_v57 = vadd.f32 %v548_v52, %v506_v59  ;;  %v613_v11 = vmul.f32 %v3843_v50, %v592_v62  ;;  %v488_v39 = vmul.f32 %v3834_v32, %v467_v56  ;;  %v283_v27 = vld [vmem:[#allocation3 + $0x380] sm:$0xff]  ;;  %v733_v56 = vld [vmem:[#allocation3 + $0xf8] sm:$0xff] }
  0x85   : > { %v854_v12 = vmul.f32 %v3807_v6, %v833_v21  ;;  %v509_v47 = vadd.f32 %v489_v41, %v447_v34  ;;  %v384_v33 = vadd.f32 %v364_v1, %v322_v55  ;;  %v813_v36 = vadd.f32 %v793_v43, %v752_v53  ;;  %v345_v22 = vld [vmem:[#allocation3 + $0x4c0] sm:$0xff]  ;;  %v1077_v41 = vld [vmem:[#allocation3 + $0x858] sm:$0xff] }
  0x86   : > { %v915_v13 = vmul.f32 %v3809_v8, %v894_v35  ;;  %v4147_v48 = vadd.f32 %v610_v19, %v568_v57  ;;  %v550_v59 = vmul.f32 %v3841_v45, %v529_v5  ;;  %v976_v52 = vmul.f32 %v3811_v10, %v955_v23  ;;  %v407_v34 = vld [vmem:[#allocation3 + $0x600] sm:$0xff]  ;;  %v774_v55 = vld [vmem:[#allocation3 + $0x238] sm:$0xff] }
  0x87   : > { %v200_v62 = vmul.f32 %v3822_v24, %v179_v2  ;;  %v571_v21 = vadd.f32 %v551_v54, %v509_v47  ;;  %v446_v40 = vadd.f32 %v426_v28, %v384_v33  ;;  %v874_v16 = vadd.f32 %v854_v12, %v813_v36  ;;  %v835_v43 = vld [vmem:[#allocation3 + $0x378] sm:$0xff]  ;;  %v469_v12 = vld [vmem:[#allocation3 + $0x740] sm:$0xff] }
  0x88   : > { %5531 = vst [vmem:[#allocation24_spill] sm:$0xff] %v4147_v48  ;;  %v242_v1 = vmul.f32 %v3824_v25, %v221_v38  ;;  %682 = vadd.xlane.f32.xlu0 %v4147_v48  ;;  %v612_v19 = vmul.f32 %v3843_v50, %v591_v0  ;;  %v1037_v35 = vmul.f32 %v3818_v17, %v1016_v15  ;;  %v1138_v2 = vld [vmem:[#allocation3 + $0x998] sm:$0xff]  ;;  %v531_v0 = vld [vmem:[#allocation3 + $0x880] sm:$0xff] }
  0x89   : > { %v304_v5 = vmul.f32 %v3826_v26, %v283_v27  ;;  %v366_v53 = vmul.f32 %v3830_v30, %v345_v22  ;;  %v4158_v23 = vadd.f32 %v613_v11, %v571_v21  ;;  %v508_v54 = vadd.f32 %v488_v39, %v446_v40  ;;  %v896_v38 = vld [vmem:[#allocation3 + $0x4b8] sm:$0xff]  ;;  %v732_v39 = vld [vmem:[#allocation3 + $0xe8] sm:$0xff] }
  0x8a   : > { %v935_v28 = vadd.f32 %v915_v13, %v874_v16  ;;  %v262_v57 = vadd.f32 %v242_v1, %v200_v62  ;;  %v1098_v47 = vmul.f32 %v3820_v18, %v1077_v41  ;;  %v428_v33 = vmul.f32 %v3832_v31, %v407_v34  ;;  %v957_v40 = vld [vmem:[#allocation3 + $0x5f8] sm:$0xff]  ;;  %v773_v13 = vld [vmem:[#allocation3 + $0x228] sm:$0xff]  ;;  %v593_v41 = vld [vmem:[#allocation3 + $0x9c0] sm:$0xff] }
  0x8b   : > { %5532 = vst [vmem:[#allocation25_spill] sm:$0xff] %v4158_v23  ;;  %v754_v15 = vmul.f32 %v3803_v3, %v733_v56  ;;  %v795_v36 = vmul.f32 %v3805_v4, %v774_v55  ;;  %688 = vadd.xlane.f32.xlu2 %v4158_v23  ;;  %v570_v27 = vadd.f32 %v550_v59, %v508_v54  ;;  %v834_v34 = vld [vmem:[#allocation3 + $0x368] sm:$0xff] }
  0x8c   : > { %v996_v11 = vadd.f32 %v976_v52, %v935_v28  ;;  %v324_v22 = vadd.f32 %v304_v5, %v262_v57  ;;  %v856_v16 = vmul.f32 %v3807_v6, %v835_v43  ;;  %v1159_v62 = vmul.f32 %v3828_v29, %v1138_v2  ;;  %v1018_v5 = vld [vmem:[#allocation3 + $0x738] sm:$0xff]  ;;  %v895_v43 = vld [vmem:[#allocation3 + $0x4a8] sm:$0xff] }
  0x8d   : > { %v490_v21 = vmul.f32 %v3834_v32, %v469_v12  ;;  %v815_v1 = vadd.f32 %v795_v36, %v754_v15  ;;  %v917_v56 = vmul.f32 %v3809_v8, %v896_v38  ;;  %v4169_v55 = vadd.f32 %v612_v19, %v570_v27  ;;  %v1079_v57 = vld [vmem:[#allocation3 + $0x878] sm:$0xff]  ;;  %v956_v15 = vld [vmem:[#allocation3 + $0x5e8] sm:$0xff]  ;;  %v224_v36 = vld [vmem:[#allocation3 + $0x270] sm:$0xff] }
  0x8e   : > { %v1057_v48 = vadd.f32 %v1037_v35, %v996_v11  ;;  %v386_v59 = vadd.f32 %v366_v53, %v324_v22  ;;  %v552_v52 = vmul.f32 %v3841_v45, %v531_v0  ;;  %v978_v28 = vmul.f32 %v3811_v10, %v957_v40  ;;  %v182_v0 = vld [vmem:[#allocation3 + $0x130] sm:$0xff]  ;;  %v1140_v22 = vld [vmem:[#allocation3 + $0x9b8] sm:$0xff] }
  0x8f   : > { %5533 = vst [vmem:[#allocation26_spill] sm:$0xff] %v4169_v55  ;;  %v876_v54 = vadd.f32 %v856_v16, %v815_v1  ;;  %v753_v2 = vmul.f32 %v3803_v3, %v732_v39  ;;  %v794_v12 = vmul.f32 %v3805_v4, %v773_v13  ;;  %686 = vadd.xlane.f32.xlu1 %v4169_v55  ;;  %v1017_v39 = vld [vmem:[#allocation3 + $0x728] sm:$0xff]  ;;  %v286_v13 = vld [vmem:[#allocation3 + $0x3b0] sm:$0xff] }
  0x90   : > { %v1118_v38 = vadd.f32 %v1098_v47, %v1057_v48  ;;  %v448_v19 = vadd.f32 %v428_v33, %v386_v59  ;;  %v614_v35 = vmul.f32 %v3843_v50, %v593_v41  ;;  %v855_v53 = vmul.f32 %v3807_v6, %v834_v34  ;;  %v348_v33 = vld [vmem:[#allocation3 + $0x4f0] sm:$0xff]  ;;  %v1078_v59 = vld [vmem:[#allocation3 + $0x868] sm:$0xff] }
  0x91   : > { %v937_v27 = vadd.f32 %v917_v56, %v876_v54  ;;  %v1039_v11 = vmul.f32 %v3818_v17, %v1018_v5  ;;  %v814_v16 = vadd.f32 %v794_v12, %v753_v2  ;;  %v916_v40 = vmul.f32 %v3809_v8, %v895_v43  ;;  %v410_v54 = vld [vmem:[#allocation3 + $0x630] sm:$0xff]  ;;  %v181_v2 = vld [vmem:[#allocation3 + $0x120] sm:$0xff] }
  0x92   : > { %v4180_v1 = vadd.f32 %v1159_v62, %v1118_v38  ;;  %v510_v55 = vadd.f32 %v490_v21, %v448_v19  ;;  %v1100_v48 = vmul.f32 %v3820_v18, %v1079_v57  ;;  %v977_v47 = vmul.f32 %v3811_v10, %v956_v15  ;;  %v223_v12 = vld [vmem:[#allocation3 + $0x260] sm:$0xff]  ;;  %v1139_v19 = vld [vmem:[#allocation3 + $0x9a8] sm:$0xff] }
  0x93   : > { %v998_v41 = vadd.f32 %v978_v28, %v937_v27  ;;  %v875_v34 = vadd.f32 %v855_v53, %v814_v16  ;;  %v203_v56 = vmul.f32 %v3822_v24, %v182_v0  ;;  %v245_v5 = vmul.f32 %v3824_v25, %v224_v36  ;;  %v285_v15 = vld [vmem:[#allocation3 + $0x3a0] sm:$0xff]  ;;  %v472_v36 = vld [vmem:[#allocation3 + $0x770] sm:$0xff] }
  0x94   : > { %5534 = vst [vmem:[#allocation27_spill] sm:$0xff] %v4180_v1  ;;  %1232 = vadd.xlane.f32.xlu0 %v4180_v1  ;;  %v572_v43 = vadd.f32 %v552_v52, %v510_v55  ;;  %v1161_v62 = vmul.f32 %v3828_v29, %v1140_v22  ;;  %v1038_v21 = vmul.f32 %v3818_v17, %v1017_v39  ;;  %v347_v27 = vld [vmem:[#allocation3 + $0x4e0] sm:$0xff]  ;;  %v180_v39 = vld [vmem:[#allocation3 + $0x110] sm:$0xff] }
  0x95   : > { %v307_v57 = vmul.f32 %v3826_v26, %v286_v13  ;;  %v1059_v28 = vadd.f32 %v1039_v11, %v998_v41  ;;  %v936_v38 = vadd.f32 %v916_v40, %v875_v34  ;;  %v265_v53 = vadd.f32 %v245_v5, %v203_v56  ;;  %v534_v11 = vld [vmem:[#allocation3 + $0x8b0] sm:$0xff]  ;;  %v409_v41 = vld [vmem:[#allocation3 + $0x620] sm:$0xff] }
  0x96   : > { %v369_v0 = vmul.f32 %v3830_v30, %v348_v33  ;;  %v4191_v16 = vadd.f32 %v614_v35, %v572_v43  ;;  %v1099_v55 = vmul.f32 %v3820_v18, %v1078_v59  ;;  %v431_v52 = vmul.f32 %v3832_v31, %v410_v54  ;;  %v222_v34 = vld [vmem:[#allocation3 + $0x250] sm:$0xff] }
  0x97   : > { %v202_v22 = vmul.f32 %v3822_v24, %v181_v2  ;;  %v1120_v13 = vadd.f32 %v1100_v48, %v1059_v28  ;;  %v997_v1 = vadd.f32 %v977_v47, %v936_v38  ;;  %v327_v23 = vadd.f32 %v307_v57, %v265_v53  ;;  %v284_v5 = vld [vmem:[#allocation3 + $0x390] sm:$0xff]  ;;  %v471_v57 = vld [vmem:[#allocation3 + $0x760] sm:$0xff] }
  0x98   : > { %5535 = vst [vmem:[#allocation28_spill] sm:$0xff] %v4191_v16  ;;  %v244_v40 = vmul.f32 %v3824_v25, %v223_v12  ;;  %690 = vadd.xlane.f32.xlu2 %v4191_v16  ;;  %v1160_v35 = vmul.f32 %v3828_v29, %v1139_v19  ;;  %v493_v33 = vmul.f32 %v3834_v32, %v472_v36  ;;  %v596_v2 = vld [vmem:[#allocation3 + $0x9f0] sm:$0xff]  ;;  %v533_v19 = vld [vmem:[#allocation3 + $0x8a0] sm:$0xff] }
  0x99   : > { %v306_v59 = vmul.f32 %v3826_v26, %v285_v15  ;;  %v368_v56 = vmul.f32 %v3830_v30, %v347_v27  ;;  %v4202_v54 = vadd.f32 %v1161_v62, %v1120_v13  ;;  %v1058_v48 = vadd.f32 %v1038_v21, %v997_v1  ;;  %v346_v12 = vld [vmem:[#allocation3 + $0x4d0] sm:$0xff]  ;;  %v736_v21 = vld [vmem:[#allocation3 + $0x128] sm:$0xff] }
  0x9a   : > { %v389_v47 = vadd.f32 %v369_v0, %v327_v23  ;;  %v264_v43 = vadd.f32 %v244_v40, %v202_v22  ;;  %v555_v28 = vmul.f32 %v3841_v45, %v534_v11  ;;  %v430_v38 = vmul.f32 %v3832_v31, %v409_v41  ;;  %v408_v1 = vld [vmem:[#allocation3 + $0x610] sm:$0xff]  ;;  %v777_v0 = vld [vmem:[#allocation3 + $0x268] sm:$0xff]  ;;  %v595_v11 = vld [vmem:[#allocation3 + $0x9e0] sm:$0xff] }
  0x9b   : > { %5536 = vst [vmem:[#allocation29_spill] sm:$0xff] %v4202_v54  ;;  %v201_v53 = vmul.f32 %v3822_v24, %v180_v39  ;;  %v243_v15 = vmul.f32 %v3824_v25, %v222_v34  ;;  %1236 = vadd.xlane.f32.xlu1 %v4202_v54  ;;  %v1119_v36 = vadd.f32 %v1099_v55, %v1058_v48  ;;  %v838_v39 = vld [vmem:[#allocation3 + $0x3a8] sm:$0xff]  ;;  %v470_v34 = vld [vmem:[#allocation3 + $0x750] sm:$0xff] }
  0x9c   : > { %v451_v62 = vadd.f32 %v431_v52, %v389_v47  ;;  %v326_v27 = vadd.f32 %v306_v59, %v264_v43  ;;  %v305_v23 = vmul.f32 %v3826_v26, %v284_v5  ;;  %v617_v22 = vmul.f32 %v3843_v50, %v596_v2  ;;  %v899_v26 = vld [vmem:[#allocation3 + $0x4e8] sm:$0xff]  ;;  %v532_v48 = vld [vmem:[#allocation3 + $0x890] sm:$0xff] }
  0x9d   : > { %v492_v13 = vmul.f32 %v3834_v32, %v471_v57  ;;  %v263_v40 = vadd.f32 %v243_v15, %v201_v53  ;;  %v367_v24 = vmul.f32 %v3830_v30, %v346_v12  ;;  %v4213_v25 = vadd.f32 %v1160_v35, %v1119_v36  ;;  %v960_v43 = vld [vmem:[#allocation3 + $0x628] sm:$0xff]  ;;  %v735_v57 = vld [vmem:[#allocation3 + $0x118] sm:$0xff] }
  0x9e   : > { %v513_v41 = vadd.f32 %v493_v33, %v451_v62  ;;  %v388_v55 = vadd.f32 %v368_v56, %v326_v27  ;;  %v554_v52 = vmul.f32 %v3841_v45, %v533_v19  ;;  %v429_v5 = vmul.f32 %v3832_v31, %v408_v1  ;;  %v776_v12 = vld [vmem:[#allocation3 + $0x258] sm:$0xff]  ;;  %v594_v31 = vld [vmem:[#allocation3 + $0x9d0] sm:$0xff]  ;;  %v1021_v62 = vld [vmem:[#allocation3 + $0x768] sm:$0xff] }
  0x9f   : > { %5537 = vst [vmem:[#allocation30_spill] sm:$0xff] %v4213_v25  ;;  %v325_v59 = vadd.f32 %v305_v23, %v263_v40  ;;  %v757_v47 = vmul.f32 %v3803_v3, %v736_v21  ;;  %v798_v2 = vmul.f32 %v3805_v4, %v777_v0  ;;  %1234 = vadd.xlane.f32.xlu0 %v4213_v25  ;;  %v837_v27 = vld [vmem:[#allocation3 + $0x398] sm:$0xff]  ;;  %v4224_v23 = vpop.xlane.xlu1 %662 }
  0xa0   : > { %v575_v30 = vadd.f32 %v555_v28, %v513_v41  ;;  %v450_v35 = vadd.f32 %v430_v38, %v388_v55  ;;  %v616_v33 = vmul.f32 %v3843_v50, %v595_v11  ;;  %v859_v56 = vmul.f32 %v3807_v6, %v838_v39  ;;  %v898_v0 = vld [vmem:[#allocation3 + $0x4d8] sm:$0xff]  ;;  %v4230_v11 = vpop.xlane.xlu2 %1206 }
  0xa1   : > { %v387_v19 = vadd.f32 %v367_v24, %v325_v59  ;;  %v491_v53 = vmul.f32 %v3834_v32, %v470_v34  ;;  %v818_v15 = vadd.f32 %v798_v2, %v757_v47  ;;  %v920_v36 = vmul.f32 %v3809_v8, %v899_v26  ;;  %v1082_v24 = vld [vmem:[#allocation3 + $0x8a8] sm:$0xff]  ;;  %v959_v55 = vld [vmem:[#allocation3 + $0x618] sm:$0xff] }
  0xa2   : > { %v4226_v1 = vadd.f32 %v617_v22, %v575_v30  ;;  %v512_v28 = vadd.f32 %v492_v13, %v450_v35  ;;  %v553_v38 = vmul.f32 %v3841_v45, %v532_v48  ;;  %v981_v21 = vmul.f32 %v3811_v10, %v960_v43  ;;  %v734_v34 = vld [vmem:[#allocation3 + $0x108] sm:$0xff] }
  0xa3   : > { %v449_v40 = vadd.f32 %v429_v5, %v387_v19  ;;  %v879_v32 = vadd.f32 %v859_v56, %v818_v15  ;;  %v756_v39 = vmul.f32 %v3803_v3, %v735_v57  ;;  %v797_v41 = vmul.f32 %v3805_v4, %v776_v12  ;;  %v775_v59 = vld [vmem:[#allocation3 + $0x248] sm:$0xff]  ;;  %v659_v5 = vpop.xlane.xlu0 %658  ;;  %v1020_v56 = vld [vmem:[#allocation3 + $0x758] sm:$0xff] }
  0xa4   : > { %5538 = vst [vmem:[#allocation31_spill] sm:$0xff] %v4226_v1  ;;  %696 = vadd.xlane.f32.xlu2 %v4226_v1  ;;  %v574_v22 = vadd.f32 %v554_v52, %v512_v28  ;;  %v615_v13 = vmul.f32 %v3843_v50, %v594_v31  ;;  %v1042_v45 = vmul.f32 %v3818_v17, %v1021_v62  ;;  %v836_v48 = vld [vmem:[#allocation3 + $0x388] sm:$0xff]  ;;  %v1081_v19 = vld [vmem:[#allocation3 + $0x898] sm:$0xff] }
  0xa5   : > { %v858_v26 = vmul.f32 %v3807_v6, %v837_v27  ;;  %v511_v47 = vadd.f32 %v491_v53, %v449_v40  ;;  %v940_v2 = vadd.f32 %v920_v36, %v879_v32  ;;  %v1143_v43 = vld [vmem:[#allocation3 + $0x9e8] sm:$0xff]  ;;  %v817_v30 = vadd.f32 %v797_v41, %v756_v39  ;;  %v737_v28 = vld [vmem:[#allocation3 + $0x138] sm:$0xff] }
  0xa6   : > { %v919_v35 = vmul.f32 %v3809_v8, %v898_v0  ;;  %v897_v57 = vld [vmem:[#allocation3 + $0x4c8] sm:$0xff]  ;;  %v4239_v12 = vadd.f32 %v616_v33, %v574_v22  ;;  %v1103_v52 = vmul.f32 %v3820_v18, %v1082_v24  ;;  %v980_v50 = vmul.f32 %v3811_v10, %v959_v55  ;;  %v778_v40 = vld [vmem:[#allocation3 + $0x278] sm:$0xff] }
  0xa7   : > { %v755_v31 = vmul.f32 %v3803_v3, %v734_v34  ;;  %v573_v15 = vadd.f32 %v553_v38, %v511_v47  ;;  %v1001_v62 = vadd.f32 %v981_v21, %v940_v2  ;;  %v878_v27 = vadd.f32 %v858_v26, %v817_v30  ;;  %v958_v36 = vld [vmem:[#allocation3 + $0x608] sm:$0xff]  ;;  %v839_v39 = vld [vmem:[#allocation3 + $0x3b8] sm:$0xff] }
  0xa8   : > { %5539 = vst [vmem:[#allocation32_spill] sm:$0xff] %v4239_v12  ;;  %v796_v53 = vmul.f32 %v3805_v4, %v775_v59  ;;  %694 = vadd.xlane.f32.xlu1 %v4239_v12  ;;  %v1164_v33 = vmul.f32 %v3828_v29, %v1143_v43  ;;  %v1041_v0 = vmul.f32 %v3818_v17, %v1020_v56  ;;  %v1142_v55 = vld [vmem:[#allocation3 + $0x9d8] sm:$0xff]  ;;  %v1019_v47 = vld [vmem:[#allocation3 + $0x748] sm:$0xff]  ;;  %v665_v56 = vpop.xlane.xlu1 %664 }
  0xa9   : > { %v857_v32 = vmul.f32 %v3807_v6, %v836_v48  ;;  %v918_v24 = vmul.f32 %v3809_v8, %v897_v57  ;;  %v4250_v41 = vadd.f32 %v615_v13, %v573_v15  ;;  %v1062_v38 = vadd.f32 %v1042_v45, %v1001_v62  ;;  %v900_v22 = vld [vmem:[#allocation3 + $0x4f8] sm:$0xff]  ;;  %v1209_v62 = vpop.xlane.xlu2 %1208 }
  0xaa   : > { %v939_v21 = vadd.f32 %v919_v35, %v878_v27  ;;  %v816_v34 = vadd.f32 %v796_v53, %v755_v31  ;;  %v1102_v26 = vmul.f32 %v3820_v18, %v1081_v19  ;;  %v979_v59 = vmul.f32 %v3811_v10, %v958_v36  ;;  %v961_v35 = vld [vmem:[#allocation3 + $0x638] sm:$0xff]  ;;  %v1080_v31 = vld [vmem:[#allocation3 + $0x888] sm:$0xff] }
  0xab   : > { %5540 = vst [vmem:[#allocation33_spill] sm:$0xff] %v4250_v41  ;;  %v758_v2 = vmul.f32 %v3803_v3, %v737_v28  ;;  %v799_v43 = vmul.f32 %v3805_v4, %v778_v40  ;;  %692 = vadd.xlane.f32.xlu0 %v4250_v41  ;;  %v1123_v48 = vadd.f32 %v1103_v52, %v1062_v38  ;;  %v1022_v52 = vld [vmem:[#allocation3 + $0x778] sm:$0xff]  ;;  %v1326_v28 = vlaneseq }
  0xac   : > { %v1000_v30 = vadd.f32 %v980_v50, %v939_v21  ;;  %v877_v13 = vadd.f32 %v857_v32, %v816_v34  ;;  %v860_v45 = vmul.f32 %v3807_v6, %v839_v39  ;;  %v1163_v57 = vmul.f32 %v3828_v29, %v1142_v55  ;;  %v1141_v50 = vld [vmem:[#allocation3 + $0x9c8] sm:$0xff]  ;;  %v661_v32 = vpop.xlane.xlu0 %660  ;;  %v1083_v21 = vld [vmem:[#allocation3 + $0x8b8] sm:$0xff] }
  0xad   : > { %v819_v19 = vadd.f32 %v799_v43, %v758_v2  ;;  %v921_v15 = vmul.f32 %v3809_v8, %v900_v22  ;;  %v4260_v27 = vadd.f32 %v1164_v33, %v1123_v48  ;;  %v1040_v53 = vmul.f32 %v3818_v17, %v1019_v47 }
  0xae   : > { %v1061_v3 = vadd.f32 %v1041_v0, %v1000_v30  ;;  %v938_v4 = vadd.f32 %v918_v24, %v877_v13  ;;  %v982_v6 = vmul.f32 %v3811_v10, %v961_v35  ;;  %v1246_v40 = vadd.f32 %v4230_v11, %v659_v5  ;;  %v1144_v30 = vld [vmem:[#allocation3 + $0x9f8] sm:$0xff] }
  0xaf   : > { %5541 = vst [vmem:[#allocation34_spill] sm:$0xff] %v4260_v27  ;;  %v880_v36 = vadd.f32 %v860_v45, %v819_v19  ;;  %1242 = vadd.xlane.f32.xlu2 %v4260_v27  ;;  %v1101_v33 = vmul.f32 %v3820_v18, %v1080_v31  ;;  %v1247_v38 = vadd.f32 %v1209_v62, %v661_v32  ;;  %v4269_v55 = vand.u32 127, %v1326_v28 }
  0xb0   : > { %v1122_v39 = vadd.f32 %v1102_v26, %v1061_v3  ;;  %v999_v8 = vadd.f32 %v979_v59, %v938_v4  ;;  %v1043_v24 = vmul.f32 %v3818_v17, %v1022_v52  ;;  %v1266_v34 = vmul.f32 0.1, %v1246_v40  ;;  %v1213_v19 = vpop.xlane.xlu1 %1212 }
  0xb1   : > { %v941_v0 = vadd.f32 %v921_v15, %v880_v36  ;;  %5542 = vst [vmem:[#allocation35_spill] sm:$0xff] %v4269_v55  ;;  %v1162_v11 = vmul.f32 %v3828_v29, %v1141_v50  ;;  %v1267_v5 = vmul.f32 0.1, %v1247_v38  ;;  %v4275_v59 = vadd.s32 4294967288, %v4269_v55 }
  0xb2   : > { %v4271_v10 = vadd.f32 %v1163_v57, %v1122_v39  ;;  %v1060_v22 = vadd.f32 %v1040_v53, %v999_v8  ;;  %v1286_v26 = vmul.f32 %v1266_v34, %v1266_v34  ;;  %v1104_v17 = vmul.f32 %v3820_v18, %v1083_v21  ;;  %v667_v53 = vpop.xlane.xlu2 %666 }
  0xb3   : > { %v1002_v47 = vadd.f32 %v982_v6, %v941_v0  ;;  %5544 = vst [vmem:[#allocation37_spill] sm:$0xff] %v4275_v59  ;;  %v1287_v43 = vmul.f32 %v1267_v5, %v1267_v5  ;;  %v1493_v13 = vperm.slane %v1266_v34, %v4269_v55  ;;  %v1494_v45 = vperm.slane %v1267_v5, %v4275_v59 }
  0xb4   : > { %5543 = vst [vmem:[#allocation36_spill] sm:$0xff] %v4271_v10  ;;  %1240 = vadd.xlane.f32.xlu1 %v4271_v10  ;;  %v1121_v2 = vadd.f32 %v1101_v33, %v1060_v22  ;;  %v1328_v57 = vperm.slane %v1286_v26, %v4269_v55  ;;  %v1249_v62 = vadd.f32 %v1213_v19, %v665_v56  ;;  %v1211_v50 = vpop.xlane.xlu0 %1210 }
  0xb5   : > { %v1063_v48 = vadd.f32 %v1043_v24, %v1002_v47  ;;  %v1330_v31 = vperm.slane %v1287_v43, %v4275_v59  ;;  %v1495_v15 = vsel %vm5434_vm0, %v1494_v45, %v1493_v13  ;;  %v1165_v3 = vmul.f32 %v3828_v29, %v1144_v30 }
  0xb6   : > { %v4281_v35 = vadd.f32 %v1162_v11, %v1121_v2  ;;  %v4291_v52 = vmul.f32 0.1, %v1249_v62  ;;  %v1248_v36 = vadd.f32 %v1211_v50, %v4224_v23 }
  0xb7   : > { %v1124_v18 = vadd.f32 %v1104_v17, %v1063_v48  ;;  %v4289_v4 = vsel %vm5434_vm0, %v1330_v31, %v1328_v57 }
  0xb8   : > { %5545 = vst [vmem:[#allocation38_spill] sm:$0xff] %v4281_v35  ;;  %1238 = vadd.xlane.f32.xlu0 %v4281_v35  ;;  %v1497_v40 = vperm.slane %v4291_v52, %v4275_v59  ;;  %v4298_v56 = vmul.f32 0.1, %v1248_v36 }
  0xb9   : > { %v4294_v6 = vadd.f32 %v1165_v3, %v1124_v18 }
  0xba   : > { %v1496_v29 = vperm.slane %v4298_v56, %v4269_v55  ;;  %v1217_v33 = vpop.xlane.xlu2 %1216 }
  0xbb   : > { %5546 = vst [vmem:[#allocation39_spill] sm:$0xff] %v4294_v6  ;;  %v1215_v8 = vpop.xlane.xlu1 %1214 }
  0xbc   : > { %v1498_v32 = vsel %vm5434_vm0, %v1497_v40, %v1496_v29  ;;  %v1250_v23 = vadd.f32 %v1215_v8, %v667_v53 }
  0xbd   : > { %v1523_v39 = vsel %vm1360_vm1, %v1498_v32, %v1495_v15 }
  0xbe   : > { %v1270_v38 = vmul.f32 0.1, %v1250_v23  ;;  %v669_v0 = vpop.xlane.xlu0 %668 }
  0xbf   : > { %v1251_v24 = vadd.f32 %v1217_v33, %v669_v0 }
  0xc0   : > { %1244 = vadd.xlane.f32.xlu0 %v4294_v6  ;;  %v1499_v21 = vperm.slane %v1270_v38, %v4269_v55 }
  0xc1   : > { %v1271_v34 = vmul.f32 0.1, %v1251_v24 }
  0xc2   : > { %v1219_v26 = vpop.xlane.xlu2 %1218 }
  0xc3   : > { %v1500_v22 = vperm.slane %v1271_v34, %v4275_v59 }
  0xc5   : > { %v1501_v11 = vsel %vm5434_vm0, %v1500_v22, %v1499_v21 }
  0xc6   : > { %v1524_v5 = vsel %vm1362_vm2, %v1501_v11, %v1523_v39 }
  0xc7   : > { %v673_v47 = vpop.xlane.xlu1 %672 }
  0xcb   : > { %v671_v2 = vpop.xlane.xlu0 %670 }
  0xcc   : > { %v1252_v17 = vadd.f32 %v1219_v26, %v671_v2 }
  0xce   : > { %v677_v48 = vpop.xlane.xlu2 %676  ;;  %v1272_v13 = vmul.f32 0.1, %v1252_v17 }
  0xd0   : > { %v1502_v31 = vperm.slane %v1272_v13, %v4269_v55 }
  0xd2   : > { %v675_v43 = vpop.xlane.xlu1 %674 }
  0xd7   : > { %v1221_v30 = vpop.xlane.xlu0 %1220 }
  0xd8   : > { %v1253_v45 = vadd.f32 %v1221_v30, %v673_v47 }
  0xda   : > { %v1273_v57 = vmul.f32 0.1, %v1253_v45 }
  0xdb   : > { %v679_v53 = vpop.xlane.xlu2 %678 }
  0xdc   : > { %v1503_v19 = vperm.slane %v1273_v57, %v4275_v59 }
  0xde   : > { %v1504_v15 = vsel %vm5434_vm0, %v1503_v19, %v1502_v31  ;;  %v1225_v62 = vpop.xlane.xlu1 %1224 }
  0xdf   : > { %v1525_v18 = vsel %vm1364_vm3, %v1504_v15, %v1524_v5  ;;  %v1255_v3 = vadd.f32 %v1225_v62, %v677_v48  ;;  %v1289_v15 = vmul.f32 %v4291_v52, %v4291_v52 }
  0xe1   : > { %v1275_v50 = vmul.f32 0.1, %v1255_v3  ;;  %v1288_v3 = vmul.f32 %v4298_v56, %v4298_v56 }
  0xe2   : > { %v1223_v36 = vpop.xlane.xlu0 %1222 }
  0xe3   : > { %v1254_v40 = vadd.f32 %v1223_v36, %v675_v43  ;;  %v1506_v29 = vperm.slane %v1275_v50, %v4275_v59  ;;  %v1291_v36 = vmul.f32 %v1271_v34, %v1271_v34  ;;  %v1295_v56 = vmul.f32 %v1275_v50, %v1275_v50 }
  0xe5   : > { %v1274_v32 = vmul.f32 0.1, %v1254_v40 }
  0xe7   : > { %v1505_v39 = vperm.slane %v1274_v32, %v4269_v55  ;;  %v1229_v0 = vpop.xlane.xlu2 %1228 }
  0xe9   : > { %v1507_v8 = vsel %vm5434_vm0, %v1506_v29, %v1505_v39  ;;  %v1334_v39 = vperm.slane %v1289_v15, %v4275_v59 }
  0xea   : > { %v1526_v33 = vsel %vm1366_vm4, %v1507_v8, %v1525_v18 }
  0xeb   : > { %v1227_v23 = vpop.xlane.xlu1 %1226 }
  0xec   : > { %v1256_v24 = vadd.f32 %v1227_v23, %v679_v53  ;;  %v1290_v53 = vmul.f32 %v1270_v38, %v1270_v38  ;;  %v1333_v23 = vperm.slane %v1288_v3, %v4269_v55  ;;  %v1294_v38 = vmul.f32 %v1274_v32, %v1274_v32 }
  0xee   : > { %v1276_v21 = vmul.f32 0.1, %v1256_v24  ;;  %v681_v22 = vpop.xlane.xlu0 %680  ;;  %v1336_v52 = vperm.slane %v1290_v53, %v4269_v55  ;;  %v1293_v24 = vmul.f32 %v1273_v57, %v1273_v57  ;;  %v1343_v57 = vperm.slane %v1295_v56, %v4275_v59 }
  0xef   : > { %v1257_v11 = vadd.f32 %v1229_v0, %v681_v22  ;;  %v1337_v0 = vperm.slane %v1291_v36, %v4275_v59  ;;  %v1292_v22 = vmul.f32 %v1272_v13, %v1272_v13  ;;  %v1342_v50 = vperm.slane %v1294_v38, %v4269_v55 }
  0xf0   : > { %v1508_v5 = vperm.slane %v1276_v21, %v4269_v55 }
  0xf1   : > { %v1277_v47 = vmul.f32 0.1, %v1257_v11  ;;  %v1339_v13 = vperm.slane %v1292_v22, %v4269_v55 }
  0xf2   : > { %v1231_v30 = vpop.xlane.xlu2 %1230 }
  0xf3   : > { %v1509_v26 = vperm.slane %v1277_v47, %v4275_v59 }
  0xf5   : > { %v1510_v2 = vsel %vm5434_vm0, %v1509_v26, %v1508_v5  ;;  %v1296_v5 = vmul.f32 %v1276_v21, %v1276_v21  ;;  %v1297_v26 = vmul.f32 %v1277_v47, %v1277_v47 }
  0xf6   : > { %v1527_v17 = vsel %vm1368_vm5, %v1510_v2, %v1526_v33 }
  0xf7   : > { %v685_v43 = vpop.xlane.xlu1 %684  ;;  %v1345_v47 = vperm.slane %v1296_v5, %v4269_v55 }
  0xfb   : > { %v683_v48 = vpop.xlane.xlu0 %682 }
  0xfc   : > { %v1258_v45 = vadd.f32 %v1231_v30, %v683_v48  ;;  %v1335_v30 = vsel %vm5434_vm0, %v1334_v39, %v1333_v23 }
  0xfd   : > { %v1361_v36 = vsel %vm1360_vm1, %v1335_v30, %v4289_v4 }
  0xfe   : > { %v1278_v62 = vmul.f32 0.1, %v1258_v45  ;;  %v689_v29 = vpop.xlane.xlu2 %688  ;;  %v1338_v45 = vsel %vm5434_vm0, %v1337_v0, %v1336_v52 }
 0x100   : > { %v1511_v8 = vperm.slane %v1278_v62, %v4269_v55  ;;  %v1298_v32 = vmul.f32 %v1278_v62, %v1278_v62  ;;  %v1363_v62 = vsel %vm1362_vm2, %v1338_v45, %v1361_v36 }
 0x102   : > { %v687_v31 = vpop.xlane.xlu1 %686  ;;  %v1348_v23 = vperm.slane %v1298_v32, %v4269_v55 }
 0x107   : > { %v1233_v19 = vpop.xlane.xlu0 %1232 }
 0x108   : > { %v1259_v18 = vadd.f32 %v1233_v19, %v685_v43  ;;  %v1340_v19 = vperm.slane %v1293_v24, %v4275_v59 }
 0x10a   : > { %v1279_v40 = vmul.f32 0.1, %v1259_v18 }
 0x10c   : > { %v1512_v33 = vperm.slane %v1279_v40, %v4275_v59  ;;  %v1299_v48 = vmul.f32 %v1279_v40, %v1279_v40  ;;  %v1341_v40 = vsel %vm5434_vm0, %v1340_v19, %v1339_v13 }
 0x10d   : > { %v1365_v22 = vsel %vm1364_vm3, %v1341_v40, %v1363_v62 }
 0x10e   : > { %v1513_v34 = vsel %vm5434_vm0, %v1512_v33, %v1511_v8  ;;  %v1237_v11 = vpop.xlane.xlu1 %1236  ;;  %v1349_v53 = vperm.slane %v1299_v48, %v4275_v59  ;;  %v1344_v33 = vsel %vm5434_vm0, %v1343_v57, %v1342_v50 }
 0x10f   : > { %v1528_v2 = vsel %vm1370_vm6, %v1513_v34, %v1527_v17  ;;  %v1261_v43 = vadd.f32 %v1237_v11, %v689_v29  ;;  %v1346_v17 = vperm.slane %v1297_v26, %v4275_v59  ;;  %v691_v29 = vpop.xlane.xlu2 %690  ;;  %v1367_v34 = vsel %vm1366_vm4, %v1344_v33, %v1365_v22 }
 0x110   : > { %v1350_v24 = vsel %vm5434_vm0, %v1349_v53, %v1348_v23 }
 0x111   : > { %v1281_v15 = vmul.f32 0.1, %v1261_v43  ;;  %v1347_v4 = vsel %vm5434_vm0, %v1346_v17, %v1345_v47 }
 0x112   : > { %v1235_v21 = vpop.xlane.xlu0 %1234  ;;  %v1369_v5 = vsel %vm1368_vm5, %v1347_v4, %v1367_v34 }
 0x113   : > { %v1301_v18 = vmul.f32 %v1281_v15, %v1281_v15  ;;  %v1260_v3 = vadd.f32 %v1235_v21, %v687_v31  ;;  %v1515_v39 = vperm.slane %v1281_v15, %v4275_v59  ;;  %v1371_v48 = vsel %vm1370_vm6, %v1350_v24, %v1369_v5 }
 0x115   : > { %v1280_v8 = vmul.f32 0.1, %v1260_v3  ;;  %v1352_v31 = vperm.slane %v1301_v18, %v4275_v59 }
 0x117   : > { %v1300_v52 = vmul.f32 %v1280_v8, %v1280_v8  ;;  %v1514_v0 = vperm.slane %v1280_v8, %v4269_v55  ;;  %v697_v19 = vpop.xlane.xlu2 %696 }
 0x119   : > { %v1351_v56 = vperm.slane %v1300_v52, %v4269_v55  ;;  %v1516_v38 = vsel %vm5434_vm0, %v1515_v39, %v1514_v0 }
 0x11a   : > { %v4358_v11 = vsel %vm5491_vm7, %v1516_v38, %v1528_v2 }
 0x11b   : > { %v695_v26 = vpop.xlane.xlu1 %694  ;;  %v1353_v43 = vsel %vm5434_vm0, %v1352_v31, %v1351_v56 }
 0x11c   : > { %v1373_v30 = vsel %vm5491_vm7, %v1353_v43, %v1371_v48 }
 0x11d   : > { %v1378_v45 = vsel %vm5433_vm8, %v1373_v30, 0.0 }
 0x11e   : > { %1379 = vadd.xlane.f32.xlu1 %v1378_v45  ;;  %v693_v15 = vpop.xlane.xlu0 %692 }
 0x122   : > { %v1243_v2 = vpop.xlane.xlu2 %1242 }
 0x123   : > { %v1264_v47 = vadd.f32 %v1243_v2, %v695_v26 }
 0x125   : > { %v1284_v53 = vmul.f32 0.1, %v1264_v47 }
 0x127   : > { %v1241_v13 = vpop.xlane.xlu1 %1240  ;;  %v1304_v33 = vmul.f32 %v1284_v53, %v1284_v53  ;;  %v1520_v31 = vperm.slane %v1284_v53, %v4269_v55 }
 0x128   : > { %v1263_v57 = vadd.f32 %v1241_v13, %v693_v15  ;;  %v4387_v13 = vshrl.u32 %v1326_v28, 7 }
 0x129   : > { %v1357_v24 = vperm.slane %v1304_v33, %v4269_v55 }
 0x12a   : > { %v1283_v50 = vmul.f32 0.1, %v1263_v57  ;;  %5547 = vst [vmem:[#allocation40_spill] sm:$0xff] %v4387_v13  ;;  %3575 = vset.pattern.permute.xlu2 %v4387_v13  ;;  %3573 = vset.pattern.permute.xlu1 %v4387_v13  ;;  %v4392_v57 = vadd.s32 8, %v4387_v13 }
 0x12b   : > { %v1239_v32 = vpop.xlane.xlu0 %1238 }
 0x12c   : > { %v1262_v21 = vadd.f32 %v1239_v32, %v691_v29  ;;  %v1518_v17 = vperm.slane %v1283_v50, %v4275_v59  ;;  %v1303_v39 = vmul.f32 %v1283_v50, %v1283_v50  ;;  %5548 = vst [vmem:[#allocation41_spill] sm:$0xff] %v4392_v57  ;;  %3574 = vset.pattern.permute.xlu0 %v4392_v57 }
 0x12e   : > { %v1282_v18 = vmul.f32 0.1, %v1262_v21  ;;  %v1355_v52 = vperm.slane %v1303_v39, %v4275_v59 }
 0x130   : > { %v1517_v3 = vperm.slane %v1282_v18, %v4269_v55  ;;  %v1302_v8 = vmul.f32 %v1282_v18, %v1282_v18 }
 0x132   : > { %v1519_v36 = vsel %vm5434_vm0, %v1518_v17, %v1517_v3  ;;  %v1354_v29 = vperm.slane %v1302_v8, %v4269_v55 }
 0x133   : > { %v1245_v40 = vpop.xlane.xlu0 %1244 }
 0x134   : > { %v1265_v62 = vadd.f32 %v1245_v40, %v697_v19  ;;  %v1356_v34 = vsel %vm5434_vm0, %v1355_v52, %v1354_v29 }
 0x136   : > { %v1285_v23 = vmul.f32 0.1, %v1265_v62 }
 0x138   : > { %v1305_v0 = vmul.f32 %v1285_v23, %v1285_v23  ;;  %v1521_v4 = vperm.slane %v1285_v23, %v4275_v59 }
 0x13a   : > { %v1358_v22 = vperm.slane %v1305_v0, %v4275_v59  ;;  %v1522_v56 = vsel %vm5434_vm0, %v1521_v4, %v1520_v31  ;;  %v5559_v59 = vld [vmem:[#allocation25_spill] sm:$0xff] }
 0x13b   : > { %v4376_v38 = vsel %vm1360_vm1, %v1522_v56, %v1519_v36 }
 0x13c   : > { %v1359_v5 = vsel %vm5434_vm0, %v1358_v22, %v1357_v24 }
 0x13d   : > { %v1374_v26 = vsel %vm1360_vm1, %v1359_v5, %v1356_v34 }
 0x13e   : > { %v1382_v43 = vsel %vm5432_vm9, %v1374_v26, 0.0 }
 0x13f   : > { %1383 = vadd.xlane.f32.xlu2 %v1382_v43 }
 0x191   : > { %v4382_v48 = vpop.xlane.xlu1 %1379 }
 0x192   : > { %3600 = vrsqrt.f32 %v4382_v48  ;;  %vm1424_vm10 = vcmp.eq.f32.partialorder %v4382_v48, inf  ;;  %v1427_v17 = vand.u32 2147483648, %v4382_v48  ;;  %vm1426_vm11 = vcmp.eq.f32.partialorder %v4382_v48, 0.0 }
 0x193   : > { %v4405_v53 = vadd.f32 1.0, %v4382_v48 }
 0x198   : > { %v3601_v30 = vpop.eup %3600 }
 0x199   : > { %v1418_v45 = vmul.f32 %v3601_v30, %v4382_v48 }
 0x19b   : > { %v1419_v19 = vmul.f32 %v3601_v30, %v1418_v45 }
 0x19d   : > { %v1420_v15 = vmul.f32 0.5, %v1419_v19 }
 0x19f   : > { %v1421_v50 = vsub.f32 1.5, %v1420_v15 }
 0x1a1   : > { %v1422_v2 = vmul.f32 %v3601_v30, %v1421_v50 }
 0x1a3   : > { %v1423_v32 = vmul.f32 %v1422_v2, %v4382_v48 }
 0x1a5   : > { %v1425_v28 = vsel %vm1424_vm10, %v4382_v48, %v1423_v32  ;;  %vm1392_vm10 = vweird.f32 %v4405_v53 }
 0x1a6   : > { %v1428_v3 = vsel %vm1426_vm11, %v1427_v17, %v1425_v28 }
 0x1a7   : > { %v4408_v40 = vadd.f32 1e-08, %v1428_v3  ;;  %v1398_v3 = vand.u32 2147483648, %v4405_v53 }
 0x1b2   : > { %v4396_v21 = vpop.xlane.xlu2 %1383 }
 0x1b3   : > { %3602 = vrsqrt.f32 %v4396_v21  ;;  %v1386_v47 = vadd.f32 1.0, %v4396_v21  ;;  %vm1436_vm12 = vcmp.eq.f32.partialorder %v4396_v21, inf  ;;  %v1439_v0 = vand.u32 2147483648, %v4396_v21 }
 0x1b4   : > { %vm1438_vm13 = vcmp.eq.f32.partialorder %v4396_v21, 0.0 }
 0x1b5   : > { %3604 = vrcp.f32 %v1386_v47  ;;  %v1411_v2 = vand.u32 2147483647, %v1386_v47  ;;  %v1413_v32 = vand.u32 2147483648, %v1386_v47  ;;  %vm1407_vm15 = vweird.f32 %v1386_v47 }
 0x1b6   : > { %3606 = vrcp.f32 %v4405_v53 }
 0x1b7   : > { %3608 = vrcp.f32 %v4408_v40  ;;  %vm1412_vm9 = vcmp.eq.f32.partialorder %v1411_v2, 8.507059e+37 }
 0x1b9   : > { %v3603_v18 = vpop.eup %3602 }
 0x1ba   : > { %v1430_v36 = vmul.f32 %v3603_v18, %v4396_v21 }
 0x1bb   : > { %v3605_v62 = vpop.eup %3604 }
 0x1bc   : > { %v1431_v39 = vmul.f32 %v3603_v18, %v1430_v36  ;;  %v1403_v31 = vmul.f32 %v3605_v62, %v1386_v47  ;;  %v3607_v52 = vpop.eup %3606  ;;  %vm1408_vm14 = vweird.f32 %v3605_v62  ;;  %v1414_v47 = vor.u32 1.1754944e-38, %v1413_v32 }
 0x1bd   : > { %v3609_v4 = vpop.eup %3608  ;;  %v1388_v22 = vmul.f32 %v3607_v52, %v4405_v53  ;;  %vm4422_vm11 = vmor %vm1407_vm15, %vm1408_vm14  ;;  %vm1448_vm15 = vweird.f32 %v4408_v40 }
 0x1be   : > { %v1432_v8 = vmul.f32 0.5, %v1431_v39  ;;  %v1404_v56 = vsub.f32 1.0, %v1403_v31  ;;  %v1444_v26 = vmul.f32 %v3609_v4, %v4408_v40 }
 0x1bf   : > { %v1389_v43 = vsub.f32 1.0, %v1388_v22  ;;  %v1454_v22 = vand.u32 2147483648, %v4408_v40 }
 0x1c0   : > { %v1433_v33 = vsub.f32 1.5, %v1432_v8  ;;  %v1405_v30 = vmul.f32 %v3605_v62, %v1404_v56  ;;  %v1445_v45 = vsub.f32 1.0, %v1444_v26  ;;  %v1452_v26 = vand.u32 2147483647, %v4408_v40 }
 0x1c1   : > { %v1390_v19 = vmul.f32 %v3607_v52, %v1389_v43  ;;  %v1455_v2 = vor.u32 1.1754944e-38, %v1454_v22 }
 0x1c2   : > { %v1434_v23 = vmul.f32 %v3603_v18, %v1433_v33  ;;  %v1406_v15 = vadd.f32 %v3605_v62, %v1405_v30  ;;  %v1446_v28 = vmul.f32 %v3609_v4, %v1445_v45  ;;  %v1396_v18 = vand.u32 2147483647, %v4405_v53 }
 0x1c3   : > { %v1391_v39 = vadd.f32 %v3607_v52, %v1390_v19  ;;  %v1399_v53 = vor.u32 1.1754944e-38, %v1398_v3 }
 0x1c4   : > { %v1435_v29 = vmul.f32 %v1434_v23, %v4396_v21  ;;  %v1410_v8 = vsel %vm4422_vm11, %v3605_v62, %v1406_v15  ;;  %v1447_v31 = vadd.f32 %v3609_v4, %v1446_v28 }
 0x1c5   : > { %v1415_v62 = vsel %vm1412_vm9, %v1414_v47, %v1410_v8 }
 0x1c6   : > { %v1437_v24 = vsel %vm1436_vm12, %v4396_v21, %v1435_v29  ;;  %vm1393_vm12 = vweird.f32 %v3607_v52  ;;  %v1416_v19 = vmul.f32 %v1415_v62, %v4396_v21 }
 0x1c7   : > { %v1440_v34 = vsel %vm1438_vm13, %v1439_v0, %v1437_v24  ;;  %vm1449_vm13 = vweird.f32 %v3609_v4  ;;  %vm4430_vm14 = vmor %vm1392_vm10, %vm1393_vm12  ;;  %vm1397_vm10 = vcmp.eq.f32.partialorder %v1396_v18, 8.507059e+37 }
 0x1c8   : > { %v1442_v5 = vadd.f32 1e-08, %v1440_v34  ;;  %v1395_v56 = vsel %vm4430_vm14, %v3607_v52, %v1391_v39  ;;  %vm4438_vm11 = vmor %vm1448_vm15, %vm1449_vm13  ;;  %vm1453_vm13 = vcmp.eq.f32.partialorder %v1452_v26, 8.507059e+37 }
 0x1c9   : > { %v1451_v45 = vsel %vm4438_vm11, %v3609_v4, %v1447_v31  ;;  %v1400_v52 = vsel %vm1397_vm10, %v1399_v53, %v1395_v56 }
 0x1ca   : > { %3610 = vrcp.f32 %v1442_v5  ;;  %v1469_v23 = vand.u32 2147483648, %v1442_v5  ;;  %v1467_v0 = vand.u32 2147483647, %v1442_v5  ;;  %vm1463_vm0 = vweird.f32 %v1442_v5 }
 0x1cb   : > { %v1401_v40 = vmul.f32 %v1400_v52, %v4382_v48 }
 0x1cc   : > { %v1470_v30 = vor.u32 1.1754944e-38, %v1469_v23  ;;  %vm1468_vm9 = vcmp.eq.f32.partialorder %v1467_v0, 8.507059e+37 }
 0x1d0   : > { %v3611_v50 = vpop.eup %3610 }
 0x1d1   : > { %v1459_v17 = vmul.f32 %v3611_v50, %v1442_v5  ;;  %vm1464_vm8 = vweird.f32 %v3611_v50 }
 0x1d2   : > { %vm1465_vm12 = vmor %vm1463_vm0, %vm1464_vm8  ;;  %vm5490_vm0 = vcmask 1041408  }
 0x1d3   : > { %v1460_v33 = vsub.f32 1.0, %v1459_v17  ;;  %v1456_v17 = vsel %vm1453_vm13, %v1455_v2, %v1451_v45 }
 0x1d4   : > { %v1457_v18 = vmul.f32 %v1456_v17, %v1401_v40 }
 0x1d5   : > { %v1461_v29 = vmul.f32 %v3611_v50, %v1460_v33 }
 0x1d6   : > { %v1533_v21 = vmul.f32 %v4358_v11, %v1457_v18 }
 0x1d7   : > { %v1462_v43 = vadd.f32 %v3611_v50, %v1461_v29 }
 0x1d8   : > { %v1568_v4 = vperm.slane %v1533_v21, 1  ;;  %v1620_v48 = vperm.slane %v1533_v21, 5  ;;  %v1581_v11 = vperm.slane %v1533_v21, 2  ;;  %v1633_v39 = vperm.slane %v1533_v21, 6 }
 0x1d9   : > { %v1466_v15 = vsel %vm1465_vm12, %v3611_v50, %v1462_v43  ;;  %v1555_v50 = vperm.slane %v1533_v21, 0  ;;  %v1594_v8 = vperm.slane %v1533_v21, 3  ;;  %v1646_v33 = vperm.slane %v1533_v21, 7 }
 0x1da   : > { %v1471_v32 = vsel %vm1468_vm9, %v1470_v30, %v1466_v15 }
 0x1db   : > { %v1472_v28 = vmul.f32 %v1471_v32, %v1416_v19 }
 0x1dd   : > { %v1534_v5 = vmul.f32 %v4376_v38, %v1472_v28  ;;  %v1607_v38 = vperm.slane %v1533_v21, 4 }
 0x1df   : > { %v1672_v3 = vperm.slane %v1534_v5, 1  ;;  %v1659_v36 = vperm.slane %v1534_v5, 0 }
 0x1e1   : > { %1677 = vperm.xlu2 %3575, %v1672_v3   ;;  %1670 = vperm.xlu0 %3574, %v1659_v36  }
 0x1e2   : > { %1664 = vperm.xlu1 %3573, %v1659_v36  }
 0x1e9   : > { %1573 = vperm.xlu2 %3575, %v1568_v4   ;;  %3576 = vset.pattern.permute.xlu0 %v4387_v13 }
 0x1ea   : > { %3577 = vset.pattern.permute.xlu1 %v4392_v57 }
 0x1f1   : > { %3578 = vset.pattern.permute.xlu2 %v4392_v57  ;;  %1560 = vperm.xlu0 %3576, %v1555_v50  }
 0x1f2   : > { %1566 = vperm.xlu1 %3577, %v1555_v50  }
 0x1f9   : > { %1579 = vperm.xlu2 %3578, %v1568_v4   ;;  %3580 = vset.pattern.permute.xlu0 %v4392_v57 }
 0x1fa   : > { %3579 = vset.pattern.permute.xlu1 %v4387_v13 }
 0x201   : > { %1618 = vperm.xlu2 %3578, %v1607_v38   ;;  %1631 = vperm.xlu0 %3580, %v1620_v48  }
 0x202   : > { %1612 = vperm.xlu1 %3579, %v1607_v38  }
 0x209   : > { %3581 = vset.pattern.permute.xlu2 %v4387_v13  ;;  %3583 = vset.pattern.permute.xlu0 %v4387_v13 }
 0x20a   : > { %1625 = vperm.xlu1 %3579, %v1620_v48  }
 0x211   : > { %1586 = vperm.xlu2 %3581, %v1581_v11   ;;  %1638 = vperm.xlu0 %3583, %v1633_v39  }
 0x212   : > { %3582 = vset.pattern.permute.xlu1 %v4392_v57 }
 0x219   : > { %1599 = vperm.xlu2 %3581, %v1594_v8   ;;  %3588 = vset.pattern.permute.xlu0 %v4392_v57 }
 0x21a   : > { %1592 = vperm.xlu1 %3582, %v1581_v11  }
 0x221   : > { %3584 = vset.pattern.permute.xlu2 %v4392_v57 }
 0x222   : > { %1605 = vperm.xlu1 %3582, %v1594_v8  }
 0x229   : > { %1644 = vperm.xlu2 %3584, %v1633_v39  }
 0x22a   : > { %3585 = vset.pattern.permute.xlu1 %v4387_v13 }
 0x231   : > { %1657 = vperm.xlu2 %3584, %v1646_v33  }
 0x232   : > { %1651 = vperm.xlu1 %3585, %v1646_v33  }
 0x239   : > { %3587 = vset.pattern.permute.xlu2 %v4387_v13 }
 0x23a   : > { %3586 = vset.pattern.permute.xlu1 %v4392_v57 }
 0x23b   : > { %v1678_v47 = vpop.permute.xlu2 %1677 }
 0x242   : > { %1683 = vperm.xlu1 %3586, %v1672_v3  }
 0x243   : > { %v1574_v23 = vpop.permute.xlu2 %1573 }
 0x244   : > { %v1687_v53 = vmul.f32 %v1574_v23, %v3875_v14  ;;  %v1998_v30 = vmul.f32 %v1574_v23, %v3949_v51 }
 0x24a   : > { %3589 = vset.pattern.permute.xlu1 %v4387_v13 }
 0x253   : > { %v1580_v29 = vpop.permute.xlu2 %1579  ;;  %v1671_v56 = vpop.permute.xlu0 %1670 }
 0x254   : > { %v1665_v31 = vpop.permute.xlu1 %1664  ;;  %v1688_v34 = vmul.f32 %v1580_v29, %v3905_v37  ;;  %v1999_v26 = vmul.f32 %v1580_v29, %v3938_v7  ;;  %v1702_v45 = vmul.f32 %v1671_v56, %v4250_v41  ;;  %v2013_v19 = vmul.f32 %v1671_v56, %v4271_v10  ;;  %v5560_v10 = vld [vmem:[#allocation9_spill] sm:$0xff]  ;;  %v5562_v41 = vld [vmem:[#allocation11_spill] sm:$0xff] }
 0x255   : > { %v1701_v15 = vmul.f32 %v1665_v31, %v4191_v16  ;;  %v2012_v52 = vmul.f32 %v1665_v31, %v4281_v35  ;;  %v5561_v16 = vld [vmem:[#allocation7_spill] sm:$0xff] }
 0x256   : > { %v1712_v2 = vadd.f32 %v1688_v34, %v1687_v53  ;;  %v2023_v32 = vadd.f32 %v1999_v26, %v1998_v30 }
 0x257   : > { %v1761_v40 = vadd.f32 %v1702_v45, %v1701_v15  ;;  %v2072_v5 = vadd.f32 %v2013_v19, %v2012_v52 }
 0x258   : > { %v1713_v18 = vrot.slane %v1712_v2, 4  ;;  %v2024_v3 = vrot.slane %v2023_v32, 4 }
 0x259   : > { %v1762_v48 = vrot.slane %v1761_v40, 4  ;;  %v2073_v11 = vrot.slane %v2072_v5, 4 }
 0x25a   : > { %v1714_v39 = vadd.f32 %v1713_v18, %v1712_v2  ;;  %v2025_v8 = vadd.f32 %v2024_v3, %v2023_v32  ;;  %v4484_v2 = vmul.f32 %v1678_v47, %v4239_v12  ;;  %v4487_v32 = vmul.f32 %v1678_v47, %v4260_v27 }
 0x25b   : > { %v1619_v24 = vpop.permute.xlu2 %1618  ;;  %v1763_v29 = vadd.f32 %v1762_v48, %v1761_v40  ;;  %v2074_v56 = vadd.f32 %v2073_v11, %v2072_v5 }
 0x25c   : > { %v1715_v34 = vrot.slane %v1714_v39, 2  ;;  %v2026_v26 = vrot.slane %v2025_v8, 2  ;;  %v1694_v48 = vmul.f32 %v1619_v24, %v4026_v49  ;;  %v2005_v11 = vmul.f32 %v1619_v24, %v4070_v44  ;;  %v5564_v49 = vld [vmem:[#allocation26_spill] sm:$0xff] }
 0x25d   : > { %v1764_v19 = vrot.slane %v1763_v29, 2  ;;  %v2075_v15 = vrot.slane %v2074_v56, 2 }
 0x263   : > { %v1561_v28 = vpop.permute.xlu0 %1560 }
 0x264   : > { %v1567_v0 = vpop.permute.xlu1 %1566  ;;  %v1685_v36 = vmul.f32 %v1561_v28, %v3883_v42  ;;  %v1996_v21 = vmul.f32 %v1561_v28, %v3864_v46  ;;  %v4479_v28 = vadd.f32 %v1715_v34, %v1714_v39 }
 0x265   : > { %v1686_v4 = vmul.f32 %v1567_v0, %v3916_v9  ;;  %v1997_v50 = vmul.f32 %v1567_v0, %v3894_v61  ;;  %v4481_v0 = vadd.f32 %v2026_v26, %v2025_v8  ;;  %v5555_v8 = vld [vmem:[#allocation21_spill] sm:$0xff] }
 0x266   : > { %v1717_v47 = vrot.slane %v4479_v28, 1 }
 0x267   : > { %v1705_v33 = vadd.f32 %v1686_v4, %v1685_v36  ;;  %v2016_v23 = vadd.f32 %v1997_v50, %v1996_v21  ;;  %v4493_v4 = vadd.f32 %v1764_v19, %v1763_v29  ;;  %v4495_v50 = vadd.f32 %v2075_v15, %v2074_v56  ;;  %v5558_v56 = vld [vmem:[#allocation8_spill] sm:$0xff] }
 0x268   : > { %v2028_v39 = vrot.slane %v4481_v0, 1 }
 0x269   : > { %v1706_v53 = vrot.slane %v1705_v33, 4  ;;  %v2017_v30 = vrot.slane %v2016_v23, 4 }
 0x26b   : > { %v4463_v62 = vpop.permute.xlu2 %1586  ;;  %v1707_v40 = vadd.f32 %v1706_v53, %v1705_v33  ;;  %v2018_v5 = vadd.f32 %v2017_v30, %v2016_v23  ;;  %v5556_v23 = vld [vmem:[#allocation19_spill] sm:$0xff] }
 0x26c   : > { %v2000_v30 = vmul.f32 %v4463_v62, %v5558_v56 }
 0x26d   : > { %v1708_v26 = vrot.slane %v1707_v40, 2  ;;  %v2019_v53 = vrot.slane %v2018_v5, 2 }
 0x273   : > { %v4473_v17 = vpop.permute.xlu2 %1599  ;;  %v1632_v45 = vpop.permute.xlu0 %1631 }
 0x274   : > { %v1613_v22 = vpop.permute.xlu1 %1612  ;;  %v1696_v33 = vmul.f32 %v1632_v45, %v5555_v8 }
 0x275   : > { %v1693_v18 = vmul.f32 %v1613_v22, %v4037_v60  ;;  %v2004_v3 = vmul.f32 %v1613_v22, %v4081_v20  ;;  %v2007_v22 = vmul.f32 %v1632_v45, %v5556_v23 }
 0x277   : > { %v1733_v19 = vadd.f32 %v1694_v48, %v1693_v18  ;;  %v2044_v15 = vadd.f32 %v2005_v11, %v2004_v3  ;;  %v5565_v3 = vld [vmem:[#allocation23_spill] sm:$0xff]  ;;  %v5567_v11 = vld [vmem:[#allocation24_spill] sm:$0xff] }
 0x279   : > { %v1734_v60 = vrot.slane %v1733_v19, 4 }
 0x27c   : > { %v1626_v43 = vpop.permute.xlu1 %1625 }
 0x27d   : > { %v1695_v36 = vmul.f32 %v1626_v43, %v4059_v63  ;;  %v2006_v21 = vmul.f32 %v1626_v43, %v4103_v58  ;;  %v5557_v43 = vld [vmem:[#allocation6_spill] sm:$0xff]  ;;  %v5563_v63 = vld [vmem:[#allocation15_spill] sm:$0xff] }
 0x27e   : > { %v1689_v29 = vmul.f32 %v4463_v62, %v5557_v43 }
 0x27f   : > { %v1740_v24 = vadd.f32 %v1696_v33, %v1695_v36  ;;  %v2051_v13 = vadd.f32 %v2007_v22, %v2006_v21  ;;  %v5566_v21 = vld [vmem:[#allocation27_spill] sm:$0xff]  ;;  %v5568_v22 = vld [vmem:[#allocation22_spill] sm:$0xff] }
 0x283   : > { %v1645_v31 = vpop.permute.xlu2 %1644  ;;  %v1639_v57 = vpop.permute.xlu0 %1638 }
 0x284   : > { %v1698_v36 = vmul.f32 %v1645_v31, %v5565_v3  ;;  %v2009_v48 = vmul.f32 %v1645_v31, %v5566_v21  ;;  %v1697_v33 = vmul.f32 %v1639_v57, %v5567_v11  ;;  %v2077_v31 = vrot.slane %v4495_v50, 1 }
 0x285   : > { %v1741_v11 = vrot.slane %v1740_v24, 4 }
 0x28b   : > { %v1658_v34 = vpop.permute.xlu2 %1657 }
 0x28c   : > { %v1593_v38 = vpop.permute.xlu1 %1592  ;;  %v1700_v55 = vmul.f32 %v1658_v34, %v5559_v59  ;;  %v2011_v27 = vmul.f32 %v1658_v34, %v4202_v54  ;;  %v2008_v34 = vmul.f32 %v1639_v57, %v5568_v22  ;;  %v5569_v59 = vld [vmem:[#allocation12_spill] sm:$0xff]  ;;  %v5570_v54 = vld [vmem:[#allocation10_spill] sm:$0xff]  ;;  %v2052_v57 = vrot.slane %v2051_v13, 4 }
 0x28d   : > { %v1690_v45 = vmul.f32 %v1593_v38, %v5560_v10  ;;  %v2001_v12 = vmul.f32 %v1593_v38, %v5561_v16  ;;  %v1691_v38 = vmul.f32 %v4473_v17, %v5569_v59  ;;  %v2002_v44 = vmul.f32 %v4473_v17, %v5570_v54 }
 0x28e   : > { %v1747_v22 = vadd.f32 %v1698_v36, %v1697_v33  ;;  %v2058_v16 = vadd.f32 %v2009_v48, %v2008_v34 }
 0x28f   : > { %v1719_v20 = vadd.f32 %v1690_v45, %v1689_v29  ;;  %v4529_v29 = vadd.f32 %v2028_v39, %v4481_v0  ;;  %v4535_v0 = vadd.f32 %v2077_v31, %v4495_v50 }
 0x290   : > { %v1748_v45 = vrot.slane %v1747_v22, 4  ;;  %v2059_v36 = vrot.slane %v2058_v16, 4 }
 0x291   : > { %5572 = vst [vmem:[#allocation42_spill] sm:$0xff] %v4529_v29 }
 0x292   : > { %5574 = vst [vmem:[#allocation44_spill] sm:$0xff] %v4535_v0  ;;  %v1749_v48 = vadd.f32 %v1748_v45, %v1747_v22 }
 0x294   : > { %v1606_v52 = vpop.permute.xlu1 %1605 }
 0x295   : > { %v1692_v23 = vmul.f32 %v1606_v52, %v5562_v41  ;;  %v2003_v58 = vmul.f32 %v1606_v52, %v5563_v63  ;;  %v1709_v41 = vadd.f32 %v1708_v26, %v1707_v40  ;;  %v2020_v63 = vadd.f32 %v2019_v53, %v2018_v5 }
 0x297   : > { %v1726_v3 = vadd.f32 %v1692_v23, %v1691_v38  ;;  %v2037_v21 = vadd.f32 %v2003_v58, %v2002_v44  ;;  %v1742_v58 = vadd.f32 %v1741_v11, %v1740_v24  ;;  %v1710_v40 = vrot.slane %v1709_v41, 1 }
 0x298   : > { %v2021_v5 = vrot.slane %v2020_v63, 1  ;;  %v2060_v11 = vadd.f32 %v2059_v36, %v2058_v16  ;;  %v1750_v16 = vrot.slane %v1749_v48, 2 }
 0x299   : > { %v1727_v23 = vrot.slane %v1726_v3, 4  ;;  %v2038_v44 = vrot.slane %v2037_v21, 4  ;;  %v1743_v24 = vrot.slane %v1742_v58, 2  ;;  %v4537_v33 = vadd.f32 %v1710_v40, %v1709_v41 }
 0x29a   : > { %v2061_v41 = vrot.slane %v2060_v11, 2 }
 0x29b   : > { %v2039_v39 = vadd.f32 %v2038_v44, %v2037_v21  ;;  %5575 = vst [vmem:[#allocation45_spill] sm:$0xff] %v4537_v33  ;;  %v1744_v31 = vadd.f32 %v1743_v24, %v1742_v58  ;;  %v1751_v58 = vadd.f32 %v1750_v16, %v1749_v48 }
 0x29d   : > { %v2040_v50 = vrot.slane %v2039_v39, 2  ;;  %v1752_v48 = vrot.slane %v1751_v58, 1 }
 0x29f   : > { %v2041_v45 = vadd.f32 %v2040_v50, %v2039_v39 }
 0x2a4   : > { %v1652_v35 = vpop.permute.xlu1 %1651 }
 0x2a5   : > { %v1699_v62 = vmul.f32 %v1652_v35, %v5564_v49  ;;  %v2010_v18 = vmul.f32 %v1652_v35, %v4213_v25  ;;  %v2045_v49 = vrot.slane %v2044_v15, 4  ;;  %v2030_v35 = vadd.f32 %v2001_v12, %v2000_v30 }
 0x2a6   : > { %v1766_v25 = vrot.slane %v4493_v4, 1  ;;  %v4526_v12 = vadd.f32 %v1717_v47, %v4479_v28  ;;  %v2053_v30 = vadd.f32 %v2052_v57, %v2051_v13  ;;  %v1728_v47 = vadd.f32 %v1727_v23, %v1726_v3 }
 0x2a7   : > { %v1754_v8 = vadd.f32 %v1700_v55, %v1699_v62  ;;  %v2065_v52 = vadd.f32 %v2011_v27, %v2010_v18  ;;  %v1735_v55 = vadd.f32 %v1734_v60, %v1733_v19  ;;  %v2046_v27 = vadd.f32 %v2045_v49, %v2044_v15 }
 0x2a8   : > { %v1720_v62 = vrot.slane %v1719_v20, 4  ;;  %v2031_v18 = vrot.slane %v2030_v35, 4  ;;  %5571 = vst [vmem:[#allocation8_spill] sm:$0xff] %v4526_v12  ;;  %v4532_v28 = vadd.f32 %v1766_v25, %v4493_v4  ;;  %v2054_v13 = vrot.slane %v2053_v30, 2 }
 0x2a9   : > { %v1755_v43 = vrot.slane %v1754_v8, 4  ;;  %v2066_v17 = vrot.slane %v2065_v52, 4  ;;  %v1736_v60 = vrot.slane %v1735_v55, 2  ;;  %v2047_v49 = vrot.slane %v2046_v27, 2 }
 0x2aa   : > { %v1721_v19 = vadd.f32 %v1720_v62, %v1719_v20  ;;  %v2032_v15 = vadd.f32 %v2031_v18, %v2030_v35  ;;  %5573 = vst [vmem:[#allocation43_spill] sm:$0xff] %v4532_v28  ;;  %v1729_v35 = vrot.slane %v1728_v47, 2  ;;  %v2055_v22 = vadd.f32 %v2054_v13, %v2053_v30 }
 0x2ab   : > { %v1756_v26 = vadd.f32 %v1755_v43, %v1754_v8  ;;  %v2067_v53 = vadd.f32 %v2066_v17, %v2065_v52  ;;  %v4539_v8 = vadd.f32 %v2021_v5, %v2020_v63  ;;  %v1737_v20 = vadd.f32 %v1736_v60, %v1735_v55 }
 0x2ac   : > { %v2048_v38 = vadd.f32 %v2047_v49, %v2046_v27  ;;  %v1722_v52 = vrot.slane %v1721_v19, 2  ;;  %v2033_v25 = vrot.slane %v2032_v15, 2  ;;  %v1730_v44 = vadd.f32 %v1729_v35, %v1728_v47 }
 0x2ad   : > { %v1757_v43 = vrot.slane %v1756_v26, 2  ;;  %v2068_v34 = vrot.slane %v2067_v53, 2  ;;  %v1738_v27 = vrot.slane %v1737_v20, 1  ;;  %v1745_v5 = vrot.slane %v1744_v31, 1 }
 0x2ae   : > { %v2049_v62 = vrot.slane %v2048_v38, 1  ;;  %v1723_v18 = vadd.f32 %v1722_v52, %v1721_v19  ;;  %v2034_v23 = vadd.f32 %v2033_v25, %v2032_v15  ;;  %v2056_v60 = vrot.slane %v2055_v22, 1 }
 0x2af   : > { %v1758_v57 = vadd.f32 %v1757_v43, %v1756_v26  ;;  %v2069_v63 = vadd.f32 %v2068_v34, %v2067_v53  ;;  %v2062_v30 = vadd.f32 %v2061_v41, %v2060_v11  ;;  %v4545_v13 = vadd.f32 %v1738_v27, %v1737_v20 }
 0x2b0   : > { %v2035_v43 = vrot.slane %v2034_v23, 1  ;;  %v1731_v19 = vrot.slane %v1730_v44, 1  ;;  %v2042_v15 = vrot.slane %v2041_v45, 1  ;;  %v4549_v34 = vadd.f32 %v1745_v5, %v1744_v31 }
 0x2b1   : > { %v1759_v49 = vrot.slane %v1758_v57, 1  ;;  %v2070_v24 = vrot.slane %v2069_v63, 1  ;;  %5576 = vst [vmem:[#allocation46_spill] sm:$0xff] %v4545_v13  ;;  %v4551_v52 = vadd.f32 %v2056_v60, %v2055_v22  ;;  %v2063_v11 = vrot.slane %v2062_v30, 1 }
 0x2b2   : > { %5578 = vst [vmem:[#allocation48_spill] sm:$0xff] %v4549_v34  ;;  %v4565_v31 = vadd.f32 %v1731_v19, %v1730_v44  ;;  %v4567_v22 = vadd.f32 %v2042_v15, %v2041_v45 }
 0x2b3   : > { %5579 = vst [vmem:[#allocation49_spill] sm:$0xff] %v4551_v52  ;;  %v4553_v25 = vadd.f32 %v1759_v49, %v1758_v57  ;;  %v1786_v57 = vmax.f32 %v4526_v12, %v4549_v34 }
 0x2b4   : > { %v1684_v4 = vpop.permute.xlu1 %1683  ;;  %5584 = vst [vmem:[#allocation54_spill] sm:$0xff] %v4565_v31 }
 0x2b5   : > { %v1704_v3 = vmul.f32 %v1684_v4, %v4226_v1  ;;  %v2015_v21 = vmul.f32 %v1684_v4, %v4294_v6  ;;  %5580 = vst [vmem:[#allocation50_spill] sm:$0xff] %v4553_v25  ;;  %v4555_v4 = vadd.f32 %v2070_v24, %v2069_v63  ;;  %v2097_v63 = vmax.f32 %v4529_v29, %v4551_v52 }
 0x2b6   : > { %5585 = vst [vmem:[#allocation55_spill] sm:$0xff] %v4567_v22  ;;  %v1788_v27 = vmax.f32 %v4565_v31, %v4553_v25 }
 0x2b7   : > { %v1768_v17 = vadd.f32 %v1704_v3, %v4484_v2  ;;  %v2079_v55 = vadd.f32 %v2015_v21, %v4487_v32  ;;  %v4547_v2 = vadd.f32 %v2049_v62, %v2048_v38  ;;  %v1724_v32 = vrot.slane %v1723_v18, 1  ;;  %5581 = vst [vmem:[#allocation51_spill] sm:$0xff] %v4555_v4 }
 0x2b8   : > { %v1785_v38 = vmax.f32 %v4537_v33, %v4545_v13  ;;  %v4563_v21 = vadd.f32 %v2035_v43, %v2034_v23  ;;  %v2099_v62 = vmax.f32 %v4567_v22, %v4555_v4 }
 0x2b9   : > { %v1769_v36 = vrot.slane %v1768_v17, 4  ;;  %v2080_v40 = vrot.slane %v2079_v55, 4  ;;  %5577 = vst [vmem:[#allocation47_spill] sm:$0xff] %v4547_v2  ;;  %v2096_v50 = vmax.f32 %v4539_v8, %v4547_v2  ;;  %v4561_v3 = vadd.f32 %v1724_v32, %v1723_v18 }
 0x2ba   : > { %5583 = vst [vmem:[#allocation53_spill] sm:$0xff] %v4563_v21  ;;  %v1789_v44 = vmax.f32 %v1785_v38, %v4532_v28 }
 0x2bb   : > { %v1770_v26 = vadd.f32 %v1769_v36, %v1768_v17  ;;  %v2081_v53 = vadd.f32 %v2080_v40, %v2079_v55  ;;  %5582 = vst [vmem:[#allocation52_spill] sm:$0xff] %v4561_v3  ;;  %v4573_v17 = vadd.f32 %v1752_v48, %v1751_v58  ;;  %v4575_v55 = vadd.f32 %v2063_v11, %v2062_v30 }
 0x2bc   : > { %v2100_v45 = vmax.f32 %v2096_v50, %v4535_v0 }
 0x2bd   : > { %v1771_v47 = vrot.slane %v1770_v26, 2  ;;  %v2082_v39 = vrot.slane %v2081_v53, 2  ;;  %5586 = vst [vmem:[#allocation56_spill] sm:$0xff] %v4573_v17  ;;  %v1787_v36 = vmax.f32 %v4561_v3, %v4573_v17  ;;  %v2098_v40 = vmax.f32 %v4563_v21, %v4575_v55 }
 0x2be   : > { %5587 = vst [vmem:[#allocation57_spill] sm:$0xff] %v4575_v55 }
 0x2bf   : > { %v1772_v20 = vadd.f32 %v1771_v47, %v1770_v26  ;;  %v2083_v35 = vadd.f32 %v2082_v39, %v2081_v53  ;;  %v1792_v58 = vmax.f32 %v1787_v36, %v1788_v27  ;;  %v2103_v30 = vmax.f32 %v2098_v40, %v2099_v62 }
 0x2c1   : > { %v1773_v16 = vrot.slane %v1772_v20, 1  ;;  %v2084_v41 = vrot.slane %v2083_v35, 1 }
 0x2c3   : > { %v4581_v18 = vadd.f32 %v1773_v16, %v1772_v20  ;;  %v4583_v23 = vadd.f32 %v2084_v41, %v2083_v35 }
 0x2c5   : > { %5588 = vst [vmem:[#allocation58_spill] sm:$0xff] %v4581_v18  ;;  %v1790_v5 = vmax.f32 %v1786_v57, %v4581_v18  ;;  %v2101_v60 = vmax.f32 %v2097_v63, %v4583_v23 }
 0x2c6   : > { %5589 = vst [vmem:[#allocation59_spill] sm:$0xff] %v4583_v23 }
 0x2c7   : > { %v1791_v49 = vmax.f32 %v1789_v44, %v1790_v5  ;;  %v2102_v24 = vmax.f32 %v2100_v45, %v2101_v60 }
 0x2c9   : > { %v1793_v26 = vmax.f32 %v1791_v49, %v1792_v58  ;;  %v4593_v53 = vmax.f32 %v2102_v24, %v2103_v30 }
 0x2cb   : > { %v1802_v32 = vsub.f32 %v4532_v28, %v1793_v26  ;;  %v1803_v43 = vsub.f32 %v4581_v18, %v1793_v26  ;;  %v2113_v19 = vsub.f32 %v4535_v0, %v4593_v53  ;;  %v2114_v15 = vsub.f32 %v4583_v23, %v4593_v53 }
 0x2cc   : > { %v1794_v47 = vsub.f32 %v4537_v33, %v1793_v26  ;;  %v1795_v39 = vsub.f32 %v4526_v12, %v1793_v26  ;;  %v1796_v35 = vsub.f32 %v4561_v3, %v1793_v26  ;;  %v1797_v50 = vsub.f32 %v4565_v31, %v1793_v26 }
 0x2cd   : > { %v1820_v48 = vmul.f32 1.442695, %v1802_v32  ;;  %v1822_v11 = vmul.f32 1.442695, %v1803_v43  ;;  %v2131_v20 = vmul.f32 1.442695, %v2113_v19  ;;  %v1798_v16 = vsub.f32 %v4545_v13, %v1793_v26 }
 0x2ce   : > { %v2133_v38 = vmul.f32 1.442695, %v2114_v15  ;;  %v1804_v41 = vmul.f32 1.442695, %v1794_v47  ;;  %v1799_v57 = vsub.f32 %v4549_v34, %v1793_v26  ;;  %v1806_v63 = vmul.f32 1.442695, %v1795_v39 }
 0x2cf   : > { %3612 = vpow2.f32 %v1820_v48  ;;  %v1800_v27 = vsub.f32 %v4573_v17, %v1793_v26  ;;  %v1808_v62 = vmul.f32 1.442695, %v1796_v35  ;;  %v1801_v44 = vsub.f32 %v4553_v25, %v1793_v26 }
 0x2d0   : > { %3614 = vpow2.f32 %v1822_v11  ;;  %v1810_v45 = vmul.f32 1.442695, %v1797_v50  ;;  %v1812_v36 = vmul.f32 1.442695, %v1798_v16  ;;  %v2105_v40 = vsub.f32 %v4539_v8, %v4593_v53 }
 0x2d1   : > { %3616 = vpow2.f32 %v2131_v20  ;;  %v1814_v5 = vmul.f32 1.442695, %v1799_v57  ;;  %v2106_v60 = vsub.f32 %v4529_v29, %v4593_v53  ;;  %v1816_v30 = vmul.f32 1.442695, %v1800_v27 }
 0x2d2   : > { %3618 = vpow2.f32 %v2133_v38  ;;  %v2107_v49 = vsub.f32 %v4563_v21, %v4593_v53  ;;  %v1818_v26 = vmul.f32 1.442695, %v1801_v44  ;;  %v2108_v32 = vsub.f32 %v4567_v22, %v4593_v53 }
 0x2d3   : > { %3620 = vpow2.f32 %v1804_v41  ;;  %v2109_v19 = vsub.f32 %v4547_v2, %v4593_v53  ;;  %v2115_v15 = vmul.f32 1.442695, %v2105_v40  ;;  %v2110_v39 = vsub.f32 %v4551_v52, %v4593_v53 }
 0x2d4   : > { %3622 = vpow2.f32 %v1806_v63  ;;  %v2117_v48 = vmul.f32 1.442695, %v2106_v60  ;;  %v2111_v20 = vsub.f32 %v4575_v55, %v4593_v53  ;;  %v2119_v35 = vmul.f32 1.442695, %v2107_v49 }
 0x2d5   : > { %v4613_v58 = vpop.eup %3612  ;;  %3624 = vpow2.f32 %v1808_v62  ;;  %v2112_v50 = vsub.f32 %v4555_v4, %v4593_v53  ;;  %v2121_v16 = vmul.f32 1.442695, %v2108_v32  ;;  %v2123_v63 = vmul.f32 1.442695, %v2109_v19 }
 0x2d6   : > { %v4617_v24 = vpop.eup %3614  ;;  %3626 = vpow2.f32 %v1810_v45  ;;  %v2125_v45 = vmul.f32 1.442695, %v2110_v39 }
 0x2d7   : > { %v4621_v43 = vpop.eup %3616  ;;  %3628 = vpow2.f32 %v1812_v36  ;;  %v1848_v62 = vrot.slane %v4617_v24, 7 }
 0x2d8   : > { %v4625_v47 = vpop.eup %3618  ;;  %3630 = vpow2.f32 %v1814_v5  ;;  %v2127_v5 = vmul.f32 1.442695, %v2111_v20 }
 0x2d9   : > { %v4629_v11 = vpop.eup %3620  ;;  %3632 = vpow2.f32 %v1816_v30 }
 0x2da   : > { %v4633_v38 = vpop.eup %3622  ;;  %3634 = vpow2.f32 %v1818_v26  ;;  %v2129_v26 = vmul.f32 1.442695, %v2112_v50 }
 0x2db   : > { %v4637_v41 = vpop.eup %3624  ;;  %v1834_v57 = vrot.slane %v4633_v38, 7  ;;  %3636 = vpow2.f32 %v2115_v15 }
 0x2dc   : > { %v4640_v27 = vpop.eup %3626  ;;  %v1836_v44 = vrot.slane %v4637_v41, 6  ;;  %3638 = vpow2.f32 %v2117_v48  ;;  %v1849_v48 = vsel %vm1360_vm1, %v1848_v62, %v4613_v58 }
 0x2dd   : > { %v4644_v36 = vpop.eup %3628  ;;  %v1835_v53 = vsel %vm1360_vm1, %v1834_v57, %v4629_v11  ;;  %v1838_v40 = vrot.slane %v4640_v27, 5  ;;  %3640 = vpow2.f32 %v2119_v35  ;;  %v1853_v62 = vsel %vm5490_vm0, %v1849_v48, 0.0 }
 0x2de   : > { %v4649_v60 = vpop.eup %3630  ;;  %v1837_v30 = vsel %vm1362_vm2, %v1836_v44, %v1835_v53  ;;  %v1840_v49 = vrot.slane %v4644_v36, 4  ;;  %3642 = vpow2.f32 %v2121_v16 }
 0x2df   : > { %v4653_v32 = vpop.eup %3632  ;;  %v1839_v19 = vsel %vm1364_vm3, %v1838_v40, %v1837_v30  ;;  %v1842_v15 = vrot.slane %v4649_v60, 3  ;;  %3644 = vpow2.f32 %v2123_v63 }
 0x2e0   : > { %v4657_v39 = vpop.eup %3634  ;;  %v1841_v20 = vsel %vm1366_vm4, %v1840_v49, %v1839_v19  ;;  %v1844_v35 = vrot.slane %v4653_v32, 2  ;;  %3646 = vpow2.f32 %v2125_v45  ;;  %v2159_v49 = vrot.slane %v4625_v47, 7 }
 0x2e1   : > { %v4663_v16 = vpop.eup %3636  ;;  %v1843_v50 = vsel %vm1368_vm5, %v1842_v15, %v1841_v20  ;;  %v1846_v57 = vrot.slane %v4657_v39, 1  ;;  %3648 = vpow2.f32 %v2127_v5 }
 0x2e2   : > { %v4667_v44 = vpop.eup %3638  ;;  %v1845_v63 = vsel %vm1370_vm6, %v1844_v35, %v1843_v50  ;;  %3650 = vpow2.f32 %v2129_v26 }
 0x2e3   : > { %v4670_v53 = vpop.eup %3640  ;;  %v1847_v40 = vsel %vm5491_vm7, %v1846_v57, %v1845_v63  ;;  %v2145_v45 = vrot.slane %v4667_v44, 7 }
 0x2e4   : > { %v4675_v30 = vpop.eup %3642  ;;  %v1854_v19 = vadd.f32 %v1853_v62, %v1847_v40  ;;  %v2147_v5 = vrot.slane %v4670_v53, 6 }
 0x2e5   : > { %v4679_v15 = vpop.eup %3644  ;;  %v2146_v26 = vsel %vm1360_vm1, %v2145_v45, %v4663_v16  ;;  %v2149_v20 = vrot.slane %v4675_v30, 5  ;;  %v2160_v45 = vsel %vm1360_vm1, %v2159_v49, %v4621_v43 }
 0x2e6   : > { %v4684_v35 = vpop.eup %3646  ;;  %v1855_v48 = vrot.slane %v1854_v19, 4  ;;  %v2148_v50 = vsel %vm1362_vm2, %v2147_v5, %v2146_v26  ;;  %v2151_v57 = vrot.slane %v4679_v15, 4 }
 0x2e7   : > { %v4688_v63 = vpop.eup %3648  ;;  %v2150_v62 = vsel %vm1364_vm3, %v2149_v20, %v2148_v50  ;;  %v2153_v40 = vrot.slane %v4684_v35, 3  ;;  %v2163_v20 = vsel %vm5490_vm0, %v2160_v45, 0.0 }
 0x2e8   : > { %v4692_v4 = vpop.eup %3650  ;;  %v1856_v25 = vadd.f32 %v1855_v48, %v1854_v19  ;;  %v2152_v22 = vsel %vm1366_vm4, %v2151_v57, %v2150_v62  ;;  %v2155_v31 = vrot.slane %v4688_v63, 2 }
 0x2e9   : > { %v2154_v5 = vsel %vm1368_vm5, %v2153_v40, %v2152_v22  ;;  %v2157_v26 = vrot.slane %v4692_v4, 1 }
 0x2ea   : > { %v1857_v21 = vrot.slane %v1856_v25, 2  ;;  %v2156_v3 = vsel %vm1370_vm6, %v2155_v31, %v2154_v5 }
 0x2eb   : > { %v2158_v50 = vsel %vm5491_vm7, %v2157_v26, %v2156_v3 }
 0x2ec   : > { %v1858_v28 = vadd.f32 %v1857_v21, %v1856_v25  ;;  %v2164_v55 = vadd.f32 %v2163_v20, %v2158_v50 }
 0x2ee   : > { %v1859_v17 = vrot.slane %v1858_v28, 1  ;;  %v2165_v49 = vrot.slane %v2164_v55, 4 }
 0x2f0   : > { %v1860_v19 = vadd.f32 %v1859_v17, %v1858_v28  ;;  %v2166_v48 = vadd.f32 %v2165_v49, %v2164_v55 }
 0x2f2   : > { %v1861_v57 = vperm.slane %v1860_v19, 0  ;;  %v2167_v62 = vrot.slane %v2166_v48, 2 }
 0x2f4   : > { %3652 = vrcp.f32 %v1861_v57  ;;  %v2168_v18 = vadd.f32 %v2167_v62, %v2166_v48  ;;  %v1873_v45 = vand.u32 2147483648, %v1861_v57  ;;  %v1871_v25 = vand.u32 2147483647, %v1861_v57 }
 0x2f5   : > { %vm1867_vm14 = vweird.f32 %v1861_v57 }
 0x2f6   : > { %v2169_v22 = vrot.slane %v2168_v18, 1  ;;  %v1874_v28 = vor.u32 1.1754944e-38, %v1873_v45  ;;  %vm1872_vm11 = vcmp.eq.f32.partialorder %v1871_v25, 8.507059e+37 }
 0x2f8   : > { %v2170_v40 = vadd.f32 %v2169_v22, %v2168_v18 }
 0x2fa   : > { %v3653_v12 = vpop.eup %3652  ;;  %v2171_v13 = vperm.slane %v2170_v40, 0 }
 0x2fb   : > { %v1863_v34 = vmul.f32 %v3653_v12, %v1861_v57  ;;  %vm1868_vm8 = vweird.f32 %v3653_v12 }
 0x2fc   : > { %3654 = vrcp.f32 %v2171_v13  ;;  %vm1869_vm15 = vmor %vm1867_vm14, %vm1868_vm8  ;;  %v2183_v19 = vand.u32 2147483648, %v2171_v13  ;;  %v2181_v57 = vand.u32 2147483647, %v2171_v13  ;;  %vm2177_vm12 = vweird.f32 %v2171_v13 }
 0x2fd   : > { %v1864_v31 = vsub.f32 1.0, %v1863_v34  ;;  %vm5618_vm8 = vcmask 130112  }
 0x2fe   : > { %vm2182_vm13 = vcmp.eq.f32.partialorder %v2181_v57, 8.507059e+37  ;;  %v5590_v57 = vld [vmem:[#allocation6_spill] sm:$0xff]  ;;  %vm5619_vm14 = vmmov %vm5618_vm8 }
 0x2ff   : > { %v1865_v5 = vmul.f32 %v3653_v12, %v1864_v31 }
 0x301   : > { %v1866_v3 = vadd.f32 %v3653_v12, %v1865_v5 }
 0x302   : > { %v3655_v21 = vpop.eup %3654 }
 0x303   : > { %v1870_v17 = vsel %vm1869_vm15, %v3653_v12, %v1866_v3  ;;  %v2173_v26 = vmul.f32 %v3655_v21, %v2171_v13  ;;  %vm2178_vm10 = vweird.f32 %v3655_v21  ;;  %vm5620_vm15 = vmmov %vm5618_vm8 }
 0x304   : > { %v4703_v55 = vsel %vm1872_vm11, %v1874_v28, %v1870_v17  ;;  %vm2179_vm9 = vmor %vm2177_vm12, %vm2178_vm10 }
 0x305   : > { %v1877_v18 = vmul.f32 %v4633_v38, %v4703_v55  ;;  %v1876_v34 = vmul.f32 %v4629_v11, %v4703_v55  ;;  %v2174_v20 = vsub.f32 1.0, %v2173_v26  ;;  %v2184_v38 = vor.u32 1.1754944e-38, %v2183_v19  ;;  %vm5621_vm11 = vmmov %vm5618_vm8 }
 0x306   : > { %v4716_v45 = vmul.f32 %v4657_v39, %v4703_v55  ;;  %v4720_v5 = vmul.f32 %v4613_v58, %v4703_v55  ;;  %v1878_v58 = vmul.f32 %v4637_v41, %v4703_v55  ;;  %vm5622_vm10 = vmmov %vm5618_vm8 }
 0x307   : > { %v1887_v50 = vperm.slane %v1877_v18, 0  ;;  %v1886_v49 = vperm.slane %v1876_v34, 0  ;;  %v2175_v48 = vmul.f32 %v3655_v21, %v2174_v20  ;;  %v1879_v20 = vmul.f32 %v4640_v27, %v4703_v55  ;;  %vm5623_vm12 = vmmov %vm5618_vm8 }
 0x309   : > { %v1898_v62 = vmul.f32 %v1887_v50, %v3875_v14  ;;  %v1897_v12 = vmul.f32 %v1886_v49, %v3916_v9  ;;  %v1896_v22 = vmul.f32 %v1886_v49, %v3883_v42  ;;  %v2176_v40 = vadd.f32 %v3655_v21, %v2175_v48 }
 0x30a   : > { %v1899_v26 = vmul.f32 %v1887_v50, %v3905_v37 }
 0x30b   : > { %1920 = vadd.xlane.f32.xlu0 %v1898_v62  ;;  %1918 = vadd.xlane.f32.xlu1 %v1897_v12  ;;  %v2180_v11 = vsel %vm2179_vm9, %v3655_v21, %v2176_v40  ;;  %vm5624_vm9 = vmmov %vm5618_vm8 }
 0x30c   : > { %1916 = vadd.xlane.f32.xlu2 %v1896_v22  ;;  %v4712_v31 = vsel %vm2182_vm13, %v2184_v38, %v2180_v11  ;;  %v5592_v22 = vld [vmem:[#allocation11_spill] sm:$0xff]  ;;  %v1880_v11 = vmul.f32 %v4644_v36, %v4703_v55  ;;  %vm5625_vm13 = vmmov %vm5618_vm8 }
 0x30d   : > { %v2187_v13 = vmul.f32 %v4667_v44, %v4712_v31  ;;  %v2186_v25 = vmul.f32 %v4663_v16, %v4712_v31  ;;  %v4728_v3 = vmul.f32 %v4692_v4, %v4712_v31  ;;  %v1888_v44 = vperm.slane %v1878_v58, 0 }
 0x30e   : > { %v4737_v16 = vmul.f32 %v4621_v43, %v4712_v31  ;;  %v4741_v4 = vmul.f32 %v4617_v24, %v4703_v55  ;;  %v4745_v18 = vmul.f32 %v4625_v47, %v4712_v31  ;;  %v2188_v50 = vmul.f32 %v4670_v53, %v4712_v31  ;;  %v5591_v53 = vld [vmem:[#allocation15_spill] sm:$0xff] }
 0x30f   : > { %v2197_v28 = vperm.slane %v2187_v13, 0  ;;  %v2196_v21 = vperm.slane %v2186_v25, 0  ;;  %v1901_v41 = vmul.f32 %v1888_v44, %v5560_v10  ;;  %v1889_v24 = vperm.slane %v1879_v20, 0  ;;  %v5593_v13 = vld [vmem:[#allocation7_spill] sm:$0xff] }
 0x310   : > { %v2198_v49 = vperm.slane %v2188_v50, 0  ;;  %v2189_v48 = vmul.f32 %v4675_v30, %v4712_v31  ;;  %v1900_v62 = vmul.f32 %v1888_v44, %v5590_v57  ;;  %v2190_v38 = vmul.f32 %v4679_v15, %v4712_v31  ;;  %v5596_v15 = vld [vmem:[#allocation21_spill] sm:$0xff] }
 0x311   : > { %v2208_v17 = vmul.f32 %v2197_v28, %v3949_v51  ;;  %v2206_v39 = vmul.f32 %v2196_v21, %v3864_v46  ;;  %v2209_v34 = vmul.f32 %v2197_v28, %v3938_v7  ;;  %v2207_v43 = vmul.f32 %v2196_v21, %v3894_v61  ;;  %v5594_v21 = vld [vmem:[#allocation18_spill] sm:$0xff] }
 0x312   : > { %v1902_v47 = vmul.f32 %v1889_v24, %v5569_v59  ;;  %v2210_v19 = vmul.f32 %v2198_v49, %v5558_v56  ;;  %v2199_v27 = vperm.slane %v2189_v48, 0  ;;  %v1903_v40 = vmul.f32 %v1889_v24, %v5592_v22  ;;  %v5598_v24 = vld [vmem:[#allocation13_spill] sm:$0xff] }
 0x313   : > { %2230 = vadd.xlane.f32.xlu0 %v2208_v17  ;;  %2226 = vadd.xlane.f32.xlu1 %v2206_v39  ;;  %v2211_v25 = vmul.f32 %v2198_v49, %v5593_v13  ;;  %v2200_v30 = vperm.slane %v2190_v38, 0  ;;  %v1890_v28 = vperm.slane %v1880_v11, 0  ;;  %v5595_v39 = vld [vmem:[#allocation14_spill] sm:$0xff]  ;;  %v1882_v50 = vmul.f32 %v4653_v32, %v4703_v55  ;;  %v5603_v11 = vld [vmem:[#allocation23_spill] sm:$0xff] }
 0x314   : > { %1922 = vadd.xlane.f32.xlu2 %v1899_v26  ;;  %v2213_v12 = vmul.f32 %v2199_v27, %v5591_v53  ;;  %v1881_v26 = vmul.f32 %v4649_v60, %v4703_v55  ;;  %v2212_v44 = vmul.f32 %v2199_v27, %v5570_v54 }
 0x315   : > { %v2214_v17 = vmul.f32 %v2200_v30, %v5594_v21  ;;  %v1904_v58 = vmul.f32 %v1890_v28, %v5595_v39  ;;  %v1905_v49 = vmul.f32 %v1890_v28, %v5598_v24  ;;  %v1892_v60 = vperm.slane %v1882_v50, 0  ;;  %v5608_v50 = vld [vmem:[#allocation33_spill] sm:$0xff] }
 0x316   : > { %v1891_v36 = vperm.slane %v1881_v26, 0  ;;  %v5606_v26 = vld [vmem:[#allocation26_spill] sm:$0xff] }
 0x31b   : > { %1926 = vadd.xlane.f32.xlu0 %v1901_v41  ;;  %2232 = vadd.xlane.f32.xlu1 %v2209_v34  ;;  %v1907_v41 = vmul.f32 %v1891_v36, %v5596_v15  ;;  %v5597_v34 = vld [vmem:[#allocation17_spill] sm:$0xff] }
 0x31c   : > { %2228 = vadd.xlane.f32.xlu2 %v2207_v43  ;;  %v2215_v20 = vmul.f32 %v2200_v30, %v5597_v34  ;;  %v2191_v43 = vmul.f32 %v4684_v35, %v4712_v31  ;;  %v5602_v35 = vld [vmem:[#allocation27_spill] sm:$0xff] }
 0x31d   : > { %v5604_v30 = vld [vmem:[#allocation19_spill] sm:$0xff] }
 0x323   : > { %1928 = vadd.xlane.f32.xlu0 %v1902_v47  ;;  %2234 = vadd.xlane.f32.xlu1 %v2210_v19  ;;  %v2201_v47 = vperm.slane %v2191_v43, 0  ;;  %v5599_v19 = vld [vmem:[#allocation24_spill] sm:$0xff] }
 0x324   : > { %1924 = vadd.xlane.f32.xlu2 %v1900_v62  ;;  %v1908_v48 = vmul.f32 %v1892_v60, %v5599_v19  ;;  %v5600_v62 = vld [vmem:[#allocation20_spill] sm:$0xff] }
 0x325   : > { %v2216_v27 = vmul.f32 %v2201_v47, %v5600_v62  ;;  %v2217_v28 = vmul.f32 %v2201_v47, %v5604_v30  ;;  %v5610_v47 = vld [vmem:[#allocation25_spill] sm:$0xff] }
 0x32b   : > { %2240 = vadd.xlane.f32.xlu0 %v2213_v12  ;;  %1930 = vadd.xlane.f32.xlu1 %v1903_v40  ;;  %v2192_v12 = vmul.f32 %v4688_v63, %v4712_v31  ;;  %v5601_v40 = vld [vmem:[#allocation16_spill] sm:$0xff]  ;;  %v5605_v63 = vld [vmem:[#allocation30_spill] sm:$0xff] }
 0x32c   : > { %2236 = vadd.xlane.f32.xlu2 %v2211_v25  ;;  %v1906_v38 = vmul.f32 %v1891_v36, %v5601_v40  ;;  %v1909_v25 = vmul.f32 %v1892_v60, %v5603_v11  ;;  %v5607_v36 = vld [vmem:[#allocation22_spill] sm:$0xff] }
 0x32d   : > { %v2202_v32 = vperm.slane %v2192_v12, 0 }
 0x32f   : > { %v2219_v55 = vmul.f32 %v2202_v32, %v5602_v35 }
 0x333   : > { %2242 = vadd.xlane.f32.xlu0 %v2214_v17  ;;  %1932 = vadd.xlane.f32.xlu1 %v1904_v58  ;;  %v2203_v17 = vperm.slane %v4728_v3, 0  ;;  %v1893_v58 = vperm.slane %v4716_v45, 0  ;;  %v2204_v45 = vperm.slane %v4737_v16, 0  ;;  %v1895_v3 = vperm.slane %v4741_v4, 0  ;;  %v5615_v16 = vld [vmem:[#allocation34_spill] sm:$0xff] }
 0x334   : > { %2238 = vadd.xlane.f32.xlu2 %v2212_v44 }
 0x335   : > { %v2220_v31 = vmul.f32 %v2203_v17, %v5605_v63  ;;  %v1910_v44 = vmul.f32 %v1893_v58, %v5606_v26 }
 0x33b   : > { %1938 = vadd.xlane.f32.xlu0 %v1907_v41  ;;  %2244 = vadd.xlane.f32.xlu1 %v2215_v20  ;;  %v2218_v41 = vmul.f32 %v2202_v32, %v5607_v36  ;;  %v1894_v20 = vperm.slane %v4720_v5, 0  ;;  %v2205_v5 = vperm.slane %v4745_v18, 0 }
 0x33c   : > { %1934 = vadd.xlane.f32.xlu2 %v1905_v49  ;;  %v5609_v49 = vld [vmem:[#allocation29_spill] sm:$0xff] }
 0x33d   : > { %v1913_v43 = vmul.f32 %v1894_v20, %v5608_v50  ;;  %v2221_v60 = vmul.f32 %v2203_v17, %v5609_v49  ;;  %v5614_v17 = vld [vmem:[#allocation36_spill] sm:$0xff]  ;;  %v2224_v4 = vmul.f32 %v2205_v5, %v5615_v16 }
 0x343   : > { %1940 = vadd.xlane.f32.xlu0 %v1908_v48  ;;  %2246 = vadd.xlane.f32.xlu1 %v2216_v27  ;;  %v1911_v48 = vmul.f32 %v1893_v58, %v5610_v47  ;;  %v5611_v27 = vld [vmem:[#allocation38_spill] sm:$0xff]  ;;  %v2223_v58 = vmul.f32 %v2204_v45, %v5614_v17 }
 0x344   : > { %1936 = vadd.xlane.f32.xlu2 %v1906_v38  ;;  %v2222_v12 = vmul.f32 %v2204_v45, %v5611_v27  ;;  %v5612_v38 = vld [vmem:[#allocation32_spill] sm:$0xff] }
 0x345   : > { %v1914_v32 = vmul.f32 %v1895_v3, %v5612_v38 }
 0x34b   : > { %2252 = vadd.xlane.f32.xlu0 %v2219_v55  ;;  %1942 = vadd.xlane.f32.xlu1 %v1909_v25  ;;  %v5613_v55 = vld [vmem:[#allocation28_spill] sm:$0xff] }
 0x34c   : > { %2248 = vadd.xlane.f32.xlu2 %v2217_v28  ;;  %v1912_v25 = vmul.f32 %v1894_v20, %v5613_v55  ;;  %v2225_v28 = vmul.f32 %v2205_v5, %v4294_v6  ;;  %v5617_v5 = vld [vmem:[#allocation37_spill] sm:$0xff] }
 0x353   : > { %2254 = vadd.xlane.f32.xlu0 %v2220_v31  ;;  %1944 = vadd.xlane.f32.xlu1 %v1910_v44  ;;  %v1915_v31 = vmul.f32 %v1895_v3, %v4226_v1 }
 0x354   : > { %2250 = vadd.xlane.f32.xlu2 %v2218_v41 }
 0x35b   : > { %1950 = vadd.xlane.f32.xlu0 %v1913_v43  ;;  %2256 = vadd.xlane.f32.xlu1 %v2221_v60 }
 0x35c   : > { %1946 = vadd.xlane.f32.xlu2 %v1911_v48 }
 0x363   : > { %2258 = vadd.xlane.f32.xlu0 %v2222_v12  ;;  %1952 = vadd.xlane.f32.xlu1 %v1914_v32 }
 0x364   : > { %1948 = vadd.xlane.f32.xlu2 %v1912_v25 }
 0x36b   : > { %2264 = vadd.xlane.f32.xlu0 %v2225_v28  ;;  %2260 = vadd.xlane.f32.xlu1 %v2223_v58  ;;  %v5616_v58 = vld [vmem:[#allocation35_spill] sm:$0xff] }
 0x36c   : > { %1954 = vadd.xlane.f32.xlu2 %v1915_v31 }
 0x374   : > { %2262 = vadd.xlane.f32.xlu2 %v2224_v4 }
 0x37e   : > { %v1921_v44 = vpop.xlane.xlu0 %1920  ;;  %v1919_v41 = vpop.xlane.xlu1 %1918 }
 0x37f   : > { %v1917_v20 = vpop.xlane.xlu2 %1916 }
 0x386   : > { %v2231_v43 = vpop.xlane.xlu0 %2230  ;;  %v2227_v60 = vpop.xlane.xlu1 %2226 }
 0x387   : > { %v2266_v48 = vadd.f32 %v2227_v60, %v1917_v20  ;;  %v1923_v12 = vpop.xlane.xlu2 %1922  ;;  %v2268_v18 = vadd.f32 %v2231_v43, %v1921_v44 }
 0x389   : > { %v2288_v33 = vmul.f32 %v2268_v18, %v2268_v18  ;;  %v2286_v3 = vmul.f32 %v2266_v48, %v2266_v48  ;;  %v2483_v31 = vperm.slane %v2268_v18, %v5616_v58  ;;  %v2480_v63 = vperm.slane %v2266_v48, %v5616_v58 }
 0x38b   : > { %v2329_v20 = vperm.slane %v2288_v33, %v5616_v58  ;;  %v2326_v60 = vperm.slane %v2286_v3, %v5616_v58 }
 0x38e   : > { %v1927_v32 = vpop.xlane.xlu0 %1926  ;;  %v2233_v25 = vpop.xlane.xlu1 %2232 }
 0x38f   : > { %v2269_v45 = vadd.f32 %v2233_v25, %v1923_v12  ;;  %v2229_v49 = vpop.xlane.xlu2 %2228 }
 0x390   : > { %v2267_v28 = vadd.f32 %v2229_v49, %v1919_v41 }
 0x391   : > { %v2289_v47 = vmul.f32 %v2269_v45, %v2269_v45  ;;  %v2484_v4 = vperm.slane %v2269_v45, %v5617_v5 }
 0x392   : > { %v2287_v26 = vmul.f32 %v2267_v28, %v2267_v28  ;;  %v2481_v23 = vperm.slane %v2267_v28, %v5617_v5 }
 0x393   : > { %v2330_v44 = vperm.slane %v2289_v47, %v5617_v5  ;;  %v2485_v43 = vsel %vm5618_vm8, %v2484_v4, %v2483_v31 }
 0x394   : > { %v2327_v49 = vperm.slane %v2287_v26, %v5617_v5  ;;  %v2482_v41 = vsel %vm5619_vm14, %v2481_v23, %v2480_v63  ;;  %vm5626_vm14 = vmmov %vm5618_vm8 }
 0x395   : > { %v2331_v12 = vsel %vm5620_vm15, %v2330_v44, %v2329_v20  ;;  %v2510_v18 = vsel %vm1360_vm1, %v2485_v43, %v2482_v41  ;;  %vm5627_vm15 = vmmov %vm5618_vm8 }
 0x396   : > { %v2328_v48 = vsel %vm5621_vm11, %v2327_v49, %v2326_v60  ;;  %v1929_v25 = vpop.xlane.xlu0 %1928  ;;  %v2235_v45 = vpop.xlane.xlu1 %2234  ;;  %vm5628_vm11 = vmmov %vm5618_vm8 }
 0x397   : > { %v4819_v33 = vsel %vm1360_vm1, %v2331_v12, %v2328_v48  ;;  %v1925_v47 = vpop.xlane.xlu2 %1924 }
 0x398   : > { %v2270_v28 = vadd.f32 %v2235_v45, %v1925_v47 }
 0x39a   : > { %v2486_v26 = vperm.slane %v2270_v28, %v5616_v58 }
 0x39e   : > { %v2241_v31 = vpop.xlane.xlu0 %2240  ;;  %v1931_v4 = vpop.xlane.xlu1 %1930 }
 0x39f   : > { %v2237_v3 = vpop.xlane.xlu2 %2236  ;;  %v2273_v44 = vadd.f32 %v2241_v31, %v1931_v4 }
 0x3a0   : > { %v2271_v35 = vadd.f32 %v2237_v3, %v1927_v32 }
 0x3a1   : > { %v2490_v12 = vperm.slane %v2273_v44, %v5617_v5 }
 0x3a2   : > { %v2487_v23 = vperm.slane %v2271_v35, %v5617_v5  ;;  %v2291_v29 = vmul.f32 %v2271_v35, %v2271_v35 }
 0x3a4   : > { %v2488_v63 = vsel %vm5622_vm10, %v2487_v23, %v2486_v26  ;;  %vm5629_vm10 = vmmov %vm5618_vm8 }
 0x3a5   : > { %v2511_v20 = vsel %vm1362_vm2, %v2488_v63, %v2510_v18 }
 0x3a6   : > { %v2243_v43 = vpop.xlane.xlu0 %2242  ;;  %v1933_v60 = vpop.xlane.xlu1 %1932 }
 0x3a7   : > { %v2239_v49 = vpop.xlane.xlu2 %2238  ;;  %v2274_v47 = vadd.f32 %v2243_v43, %v1933_v60 }
 0x3a8   : > { %v2272_v41 = vadd.f32 %v2239_v49, %v1929_v25 }
 0x3a9   : > { %v2492_v18 = vperm.slane %v2274_v47, %v5616_v58 }
 0x3aa   : > { %v2489_v48 = vperm.slane %v2272_v41, %v5616_v58  ;;  %v2292_v0 = vmul.f32 %v2272_v41, %v2272_v41 }
 0x3ac   : > { %v2491_v45 = vsel %vm5623_vm12, %v2490_v12, %v2489_v48  ;;  %vm5630_vm12 = vmmov %vm5618_vm8 }
 0x3ad   : > { %v2512_v32 = vsel %vm1364_vm3, %v2491_v45, %v2511_v20 }
 0x3ae   : > { %v1939_v3 = vpop.xlane.xlu0 %1938  ;;  %v2245_v11 = vpop.xlane.xlu1 %2244 }
 0x3af   : > { %v1935_v36 = vpop.xlane.xlu2 %1934 }
 0x3b0   : > { %v2275_v26 = vadd.f32 %v2245_v11, %v1935_v36 }
 0x3b2   : > { %v2493_v31 = vperm.slane %v2275_v26, %v5617_v5  ;;  %v2295_v2 = vmul.f32 %v2275_v26, %v2275_v26 }
 0x3b4   : > { %v2494_v4 = vsel %vm5624_vm9, %v2493_v31, %v2492_v18  ;;  %vm5631_vm9 = vmmov %vm5618_vm8 }
 0x3b5   : > { %v2513_v25 = vsel %vm1366_vm4, %v2494_v4, %v2512_v32  ;;  %v2290_v4 = vmul.f32 %v2270_v28, %v2270_v28 }
 0x3b6   : > { %v1941_v23 = vpop.xlane.xlu0 %1940  ;;  %v2247_v63 = vpop.xlane.xlu1 %2246 }
 0x3b7   : > { %v1937_v49 = vpop.xlane.xlu2 %1936 }
 0x3b8   : > { %v2276_v19 = vadd.f32 %v2247_v63, %v1937_v49  ;;  %v2293_v49 = vmul.f32 %v2273_v44, %v2273_v44 }
 0x3ba   : > { %v2495_v60 = vperm.slane %v2276_v19, %v5616_v58  ;;  %v2336_v26 = vperm.slane %v2293_v49, %v5617_v5 }
 0x3be   : > { %v2253_v12 = vpop.xlane.xlu0 %2252  ;;  %v1943_v48 = vpop.xlane.xlu1 %1942 }
 0x3bf   : > { %v2249_v20 = vpop.xlane.xlu2 %2248  ;;  %v2279_v18 = vadd.f32 %v2253_v12, %v1943_v48  ;;  %v2335_v12 = vperm.slane %v2292_v0, %v5616_v58  ;;  %v2296_v48 = vmul.f32 %v2276_v19, %v2276_v19 }
 0x3c0   : > { %v2277_v43 = vadd.f32 %v2249_v20, %v1939_v3  ;;  %v2333_v3 = vperm.slane %v2291_v29, %v5617_v5 }
 0x3c1   : > { %v2499_v20 = vperm.slane %v2279_v18, %v5617_v5  ;;  %v2299_v44 = vmul.f32 %v2279_v18, %v2279_v18 }
 0x3c2   : > { %v2496_v11 = vperm.slane %v2277_v43, %v5617_v5  ;;  %v2297_v53 = vmul.f32 %v2277_v43, %v2277_v43 }
 0x3c4   : > { %v2497_v36 = vsel %vm5625_vm13, %v2496_v11, %v2495_v60  ;;  %v2332_v60 = vperm.slane %v2290_v4, %v5616_v58  ;;  %v2342_v43 = vperm.slane %v2297_v53, %v5617_v5  ;;  %v2345_v53 = vperm.slane %v2299_v44, %v5617_v5  ;;  %vm5632_vm13 = vmmov %vm5618_vm8 }
 0x3c5   : > { %v2514_v45 = vsel %vm1368_vm5, %v2497_v36, %v2513_v25  ;;  %v2294_v25 = vmul.f32 %v2274_v47, %v2274_v47 }
 0x3c6   : > { %v2255_v31 = vpop.xlane.xlu0 %2254  ;;  %v1945_v32 = vpop.xlane.xlu1 %1944 }
 0x3c7   : > { %v2251_v52 = vpop.xlane.xlu2 %2250  ;;  %v2280_v28 = vadd.f32 %v2255_v31, %v1945_v32  ;;  %v2338_v36 = vperm.slane %v2294_v25, %v5616_v58 }
 0x3c8   : > { %v2278_v63 = vadd.f32 %v2251_v52, %v1941_v23  ;;  %v2339_v52 = vperm.slane %v2295_v2, %v5617_v5  ;;  %v2334_v23 = vsel %vm5626_vm14, %v2333_v3, %v2332_v60  ;;  %v2341_v2 = vperm.slane %v2296_v48, %v5616_v58  ;;  %vm5634_vm14 = vmmov %vm5631_vm9 }
 0x3c9   : > { %v2300_v18 = vmul.f32 %v2280_v28, %v2280_v28  ;;  %v2501_v4 = vperm.slane %v2280_v28, %v5616_v58 }
 0x3ca   : > { %v2498_v22 = vperm.slane %v2278_v63, %v5616_v58  ;;  %v2298_v35 = vmul.f32 %v2278_v63, %v2278_v63  ;;  %v2340_v32 = vsel %vm5628_vm11, %v2339_v52, %v2338_v36  ;;  %v2343_v3 = vsel %vm5629_vm10, %v2342_v43, %v2341_v2  ;;  %vm5636_vm11 = vmmov %vm5631_vm9 }
 0x3cb   : > { %v2347_v25 = vperm.slane %v2300_v18, %v5616_v58  ;;  %vm5637_vm10 = vmmov %vm5631_vm9 }
 0x3cc   : > { %v2500_v41 = vsel %vm5618_vm8, %v2499_v20, %v2498_v22  ;;  %v2344_v0 = vperm.slane %v2298_v35, %v5616_v58  ;;  %v2337_v22 = vsel %vm5627_vm15, %v2336_v26, %v2335_v12  ;;  %vm5633_vm8 = vcmask 130048   ;;  %vm5635_vm15 = vmmov %vm5631_vm9 }
 0x3cd   : > { %v2515_v29 = vsel %vm1370_vm6, %v2500_v41, %v2514_v45  ;;  %v2357_v45 = vsel %vm1362_vm2, %v2334_v23, %v4819_v33 }
 0x3ce   : > { %v1951_v11 = vpop.xlane.xlu0 %1950  ;;  %v2257_v47 = vpop.xlane.xlu1 %2256  ;;  %v2346_v20 = vsel %vm5630_vm12, %v2345_v53, %v2344_v0  ;;  %v2358_v60 = vsel %vm1364_vm3, %v2337_v22, %v2357_v45  ;;  %vm5638_vm12 = vcmask 123904  }
 0x3cf   : > { %v1947_v19 = vpop.xlane.xlu2 %1946  ;;  %v2359_v12 = vsel %vm1366_vm4, %v2340_v32, %v2358_v60 }
 0x3d0   : > { %v2281_v31 = vadd.f32 %v2257_v47, %v1947_v19  ;;  %v2360_v28 = vsel %vm1368_vm5, %v2343_v3, %v2359_v12 }
 0x3d1   : > { %v2361_v44 = vsel %vm1370_vm6, %v2346_v20, %v2360_v28 }
 0x3d2   : > { %v2301_v63 = vmul.f32 %v2281_v31, %v2281_v31  ;;  %v2502_v49 = vperm.slane %v2281_v31, %v5617_v5 }
 0x3d4   : > { %v2348_v35 = vperm.slane %v2301_v63, %v5617_v5  ;;  %v2503_v33 = vsel %vm5631_vm9, %v2502_v49, %v2501_v4 }
 0x3d5   : > { %v4866_v48 = vsel %vm5491_vm7, %v2503_v33, %v2515_v29 }
 0x3d6   : > { %v1953_v41 = vpop.xlane.xlu1 %1952  ;;  %v2349_v52 = vsel %vm5632_vm13, %v2348_v35, %v2347_v25  ;;  %v2259_v26 = vpop.xlane.xlu0 %2258 }
 0x3d7   : > { %v1949_v23 = vpop.xlane.xlu2 %1948  ;;  %v2362_v43 = vsel %vm5491_vm7, %v2349_v52, %v2361_v44 }
 0x3d8   : > { %v2366_v47 = vsel %vm5633_vm8, %v2362_v43, 0.0  ;;  %v2282_v36 = vadd.f32 %v2259_v26, %v1949_v23 }
 0x3d9   : > { %2367 = vadd.xlane.f32.xlu1 %v2366_v47 }
 0x3da   : > { %v2504_v29 = vperm.slane %v2282_v36, %v5616_v58  ;;  %v2302_v4 = vmul.f32 %v2282_v36, %v2282_v36 }
 0x3dc   : > { %v2350_v25 = vperm.slane %v2302_v4, %v5616_v58 }
 0x3de   : > { %v2261_v0 = vpop.xlane.xlu1 %2260  ;;  %v2265_v2 = vpop.xlane.xlu0 %2264 }
 0x3df   : > { %v2283_v19 = vadd.f32 %v2261_v0, %v1951_v11  ;;  %v1955_v22 = vpop.xlane.xlu2 %1954 }
 0x3e0   : > { %v2285_v45 = vadd.f32 %v2265_v2, %v1955_v22 }
 0x3e1   : > { %v2505_v18 = vperm.slane %v2283_v19, %v5617_v5  ;;  %v2303_v32 = vmul.f32 %v2283_v19, %v2283_v19 }
 0x3e2   : > { %v2305_v63 = vmul.f32 %v2285_v45, %v2285_v45  ;;  %v2508_v20 = vperm.slane %v2285_v45, %v5617_v5 }
 0x3e3   : > { %v2506_v31 = vsel %vm5634_vm14, %v2505_v18, %v2504_v29  ;;  %v2351_v3 = vperm.slane %v2303_v32, %v5617_v5 }
 0x3e4   : > { %v2354_v35 = vperm.slane %v2305_v63, %v5617_v5 }
 0x3e7   : > { %v2263_v53 = vpop.xlane.xlu2 %2262 }
 0x3e8   : > { %v2284_v49 = vadd.f32 %v2263_v53, %v1953_v41  ;;  %v2352_v41 = vsel %vm5636_vm11, %v2351_v3, %v2350_v25 }
 0x3ea   : > { %v2304_v60 = vmul.f32 %v2284_v49, %v2284_v49  ;;  %v2507_v11 = vperm.slane %v2284_v49, %v5616_v58 }
 0x3ec   : > { %v2353_v33 = vperm.slane %v2304_v60, %v5616_v58  ;;  %v2509_v12 = vsel %vm5635_vm15, %v2508_v20, %v2507_v11 }
 0x3ed   : > { %v4884_v28 = vsel %vm1360_vm1, %v2509_v12, %v2506_v31 }
 0x3ee   : > { %v2355_v52 = vsel %vm5637_vm10, %v2354_v35, %v2353_v33 }
 0x3ef   : > { %v2363_v44 = vsel %vm1360_vm1, %v2355_v52, %v2352_v41 }
 0x3f0   : > { %v2369_v26 = vsel %vm5638_vm12, %v2363_v44, 0.0 }
 0x3f1   : > { %2370 = vadd.xlane.f32.xlu2 %v2369_v26 }
 0x44c   : > { %v4890_v23 = vpop.xlane.xlu1 %2367 }
 0x44d   : > { %3656 = vrsqrt.f32 %v4890_v23  ;;  %vm2411_vm9 = vcmp.eq.f32.partialorder %v4890_v23, inf  ;;  %v2414_v45 = vand.u32 2147483648, %v4890_v23  ;;  %vm2413_vm13 = vcmp.eq.f32.partialorder %v4890_v23, 0.0 }
 0x44e   : > { %v4905_v63 = vadd.f32 1.0, %v4890_v23 }
 0x450   : > { %vm2379_vm12 = vweird.f32 %v4905_v63 }
 0x453   : > { %v3657_v43 = vpop.eup %3656 }
 0x454   : > { %v2405_v47 = vmul.f32 %v3657_v43, %v4890_v23 }
 0x456   : > { %v2406_v36 = vmul.f32 %v3657_v43, %v2405_v47 }
 0x458   : > { %v2407_v0 = vmul.f32 0.5, %v2406_v36 }
 0x45a   : > { %v2408_v19 = vsub.f32 1.5, %v2407_v0 }
 0x45c   : > { %v2409_v22 = vmul.f32 %v3657_v43, %v2408_v19 }
 0x45e   : > { %v2410_v2 = vmul.f32 %v2409_v22, %v4890_v23 }
 0x460   : > { %v2412_v31 = vsel %vm2411_vm9, %v4890_v23, %v2410_v2 }
 0x461   : > { %v2415_v53 = vsel %vm2413_vm13, %v2414_v45, %v2412_v31 }
 0x462   : > { %v4907_v3 = vadd.f32 1e-08, %v2415_v53 }
 0x464   : > { %v4894_v29 = vpop.xlane.xlu2 %2370 }
 0x465   : > { %3658 = vrsqrt.f32 %v4894_v29  ;;  %v2373_v18 = vadd.f32 1.0, %v4894_v29  ;;  %vm2423_vm8 = vcmp.eq.f32.partialorder %v4894_v29, inf  ;;  %v2426_v41 = vand.u32 2147483648, %v4894_v29 }
 0x466   : > { %vm2425_vm14 = vcmp.eq.f32.partialorder %v4894_v29, 0.0 }
 0x467   : > { %3660 = vrcp.f32 %v2373_v18  ;;  %v2400_v53 = vand.u32 2147483648, %v2373_v18  ;;  %vm2394_vm11 = vweird.f32 %v2373_v18 }
 0x468   : > { %3662 = vrcp.f32 %v4905_v63 }
 0x469   : > { %3664 = vrcp.f32 %v4907_v3 }
 0x46b   : > { %v3659_v32 = vpop.eup %3658 }
 0x46c   : > { %v2417_v4 = vmul.f32 %v3659_v32, %v4894_v29 }
 0x46d   : > { %v3661_v60 = vpop.eup %3660 }
 0x46e   : > { %v2418_v49 = vmul.f32 %v3659_v32, %v2417_v4  ;;  %v2390_v35 = vmul.f32 %v3661_v60, %v2373_v18  ;;  %v3663_v12 = vpop.eup %3662  ;;  %vm2395_vm15 = vweird.f32 %v3661_v60  ;;  %v2398_v4 = vand.u32 2147483647, %v2373_v18 }
 0x46f   : > { %v3665_v44 = vpop.eup %3664  ;;  %v2375_v47 = vmul.f32 %v3663_v12, %v4905_v63  ;;  %vm4918_vm10 = vmor %vm2394_vm11, %vm2395_vm15  ;;  %vm2380_vm9 = vweird.f32 %v3663_v12 }
 0x470   : > { %v2419_v20 = vmul.f32 0.5, %v2418_v49  ;;  %v2391_v26 = vsub.f32 1.0, %v2390_v35  ;;  %v2431_v0 = vmul.f32 %v3665_v44, %v4907_v3  ;;  %vm2399_vm13 = vcmp.eq.f32.partialorder %v2398_v4, 8.507059e+37  ;;  %vm4929_vm15 = vmor %vm2379_vm12, %vm2380_vm9 }
 0x471   : > { %v2376_v22 = vsub.f32 1.0, %v2375_v47  ;;  %v2383_v47 = vand.u32 2147483647, %v4905_v63 }
 0x472   : > { %v2420_v11 = vsub.f32 1.5, %v2419_v20  ;;  %v2392_v19 = vmul.f32 %v3661_v60, %v2391_v26  ;;  %v2432_v2 = vsub.f32 1.0, %v2431_v0 }
 0x473   : > { %vm2384_vm9 = vcmp.eq.f32.partialorder %v2383_v47, 8.507059e+37 }
 0x474   : > { %v2421_v25 = vmul.f32 %v3659_v32, %v2420_v11  ;;  %v2393_v31 = vadd.f32 %v3661_v60, %v2392_v19  ;;  %v2377_v32 = vmul.f32 %v3663_v12, %v2376_v22  ;;  %v2433_v20 = vmul.f32 %v3665_v44, %v2432_v2 }
 0x476   : > { %v2422_v33 = vmul.f32 %v2421_v25, %v4894_v29  ;;  %v2385_v25 = vand.u32 2147483648, %v4905_v63  ;;  %v2397_v35 = vsel %vm4918_vm10, %v3661_v60, %v2393_v31  ;;  %v2434_v0 = vadd.f32 %v3665_v44, %v2433_v20 }
 0x477   : > { %v2441_v60 = vand.u32 2147483648, %v4907_v3  ;;  %vm2435_vm10 = vweird.f32 %v4907_v3 }
 0x478   : > { %v2424_v52 = vsel %vm2423_vm8, %v4894_v29, %v2422_v33  ;;  %v2386_v4 = vor.u32 1.1754944e-38, %v2385_v25 }
 0x479   : > { %v2427_v43 = vsel %vm2425_vm14, %v2426_v41, %v2424_v52  ;;  %v2378_v41 = vadd.f32 %v3663_v12, %v2377_v32  ;;  %v2401_v52 = vor.u32 1.1754944e-38, %v2400_v53  ;;  %vm2436_vm14 = vweird.f32 %v3665_v44 }
 0x47a   : > { %v2429_v36 = vadd.f32 1e-08, %v2427_v43  ;;  %v2439_v32 = vand.u32 2147483647, %v4907_v3 }
 0x47b   : > { %v2402_v19 = vsel %vm2399_vm13, %v2401_v52, %v2397_v35  ;;  %v2382_v31 = vsel %vm4929_vm15, %v3663_v12, %v2378_v41  ;;  %vm2437_vm13 = vmor %vm2435_vm10, %vm2436_vm14 }
 0x47c   : > { %3666 = vrcp.f32 %v2429_v36  ;;  %v2456_v26 = vand.u32 2147483648, %v2429_v36  ;;  %v2454_v43 = vand.u32 2147483647, %v2429_v36  ;;  %vm2450_vm11 = vweird.f32 %v2429_v36 }
 0x47d   : > { %v2403_v63 = vmul.f32 %v2402_v19, %v4894_v29  ;;  %v2438_v20 = vsel %vm2437_vm13, %v3665_v44, %v2434_v0  ;;  %v2387_v35 = vsel %vm2384_vm9, %v2386_v4, %v2382_v31  ;;  %vm2440_vm7 = vcmp.eq.f32.partialorder %v2439_v32, 8.507059e+37  ;;  %v5643_v44 = vld [vmem:[#allocation41_spill] sm:$0xff] }
 0x47e   : > { %v2457_v53 = vor.u32 1.1754944e-38, %v2456_v26  ;;  %vm2455_vm12 = vcmp.eq.f32.partialorder %v2454_v43, 8.507059e+37  ;;  %v2388_v3 = vmul.f32 %v2387_v35, %v4890_v23 }
 0x482   : > { %v3667_v45 = vpop.eup %3666 }
 0x483   : > { %v2446_v49 = vmul.f32 %v3667_v45, %v2429_v36  ;;  %vm2451_vm8 = vweird.f32 %v3667_v45  ;;  %v2442_v36 = vor.u32 1.1754944e-38, %v2441_v60 }
 0x484   : > { %vm2452_vm0 = vmor %vm2450_vm11, %vm2451_vm8 }
 0x485   : > { %v2447_v33 = vsub.f32 1.0, %v2446_v49  ;;  %v2443_v12 = vsel %vm2440_vm7, %v2442_v36, %v2438_v20  ;;  %vm5675_vm7 = vcmask 1047559  }
 0x486   : > { %v2444_v25 = vmul.f32 %v2443_v12, %v2388_v3  ;;  %vm5677_vm8 = vmmov %vm5675_vm7 }
 0x487   : > { %v2448_v18 = vmul.f32 %v3667_v45, %v2447_v33 }
 0x488   : > { %v2520_v29 = vmul.f32 %v4866_v48, %v2444_v25 }
 0x489   : > { %v2449_v2 = vadd.f32 %v3667_v45, %v2448_v18  ;;  %v5644_v18 = vld [vmem:[#allocation40_spill] sm:$0xff] }
 0x48a   : > { %v2522_v43 = vperm.slane %v2520_v29, 0  ;;  %v2574_v47 = vperm.slane %v2520_v29, 4  ;;  %v2548_v48 = vperm.slane %v2520_v29, 2  ;;  %v2600_v23 = vperm.slane %v2520_v29, 6 }
 0x48b   : > { %v2453_v49 = vsel %vm2452_vm0, %v3667_v45, %v2449_v2  ;;  %v2535_v45 = vperm.slane %v2520_v29, 1  ;;  %v2561_v0 = vperm.slane %v2520_v29, 3  ;;  %v2613_v19 = vperm.slane %v2520_v29, 7 }
 0x48c   : > { %v2458_v11 = vsel %vm2455_vm12, %v2457_v53, %v2453_v49  ;;  %vm5676_vm0 = vcmask 1041408  }
 0x48d   : > { %v2459_v33 = vmul.f32 %v2458_v11, %v2403_v63  ;;  %vm5678_vm14 = vmmov %vm5676_vm0 }
 0x48f   : > { %v2521_v41 = vmul.f32 %v4884_v28, %v2459_v33  ;;  %v2587_v28 = vperm.slane %v2520_v29, 5 }
 0x491   : > { %v2639_v52 = vperm.slane %v2521_v41, 1  ;;  %v2626_v26 = vperm.slane %v2521_v41, 0 }
 0x493   : > { %2644 = vperm.xlu1 %3589, %v2639_v52   ;;  %2637 = vperm.xlu0 %3588, %v2626_v26  }
 0x494   : > { %2631 = vperm.xlu2 %3587, %v2626_v26  }
 0x49b   : > { %3591 = vset.pattern.permute.xlu1 %v5643_v44  ;;  %3590 = vset.pattern.permute.xlu0 %v5644_v18 }
 0x49c   : > { %2540 = vperm.xlu2 %3587, %v2535_v45  }
 0x4a3   : > { %2533 = vperm.xlu1 %3591, %v2522_v43   ;;  %2527 = vperm.xlu0 %3590, %v2522_v43  }
 0x4a4   : > { %2579 = vperm.xlu2 %3587, %v2574_v47  }
 0x4ab   : > { %2546 = vperm.xlu1 %3591, %v2535_v45   ;;  %3592 = vset.pattern.permute.xlu0 %v5643_v44 }
 0x4ac   : > { %2592 = vperm.xlu2 %3587, %v2587_v28  }
 0x4b3   : > { %2585 = vperm.xlu1 %3591, %v2574_v47   ;;  %2598 = vperm.xlu0 %3592, %v2587_v28  }
 0x4b4   : > { %3594 = vset.pattern.permute.xlu2 %v5643_v44 }
 0x4bb   : > { %3593 = vset.pattern.permute.xlu1 %v5644_v18  ;;  %3595 = vset.pattern.permute.xlu0 %v5644_v18 }
 0x4bc   : > { %2559 = vperm.xlu2 %3594, %v2548_v48  }
 0x4c3   : > { %2553 = vperm.xlu1 %3593, %v2548_v48   ;;  %2605 = vperm.xlu0 %3595, %v2600_v23  }
 0x4c4   : > { %2572 = vperm.xlu2 %3594, %v2561_v0  }
 0x4cb   : > { %2566 = vperm.xlu1 %3593, %v2561_v0   ;;  %3599 = vset.pattern.permute.xlu0 %v5643_v44 }
 0x4cc   : > { %3597 = vset.pattern.permute.xlu2 %v5644_v18 }
 0x4d3   : > { %3596 = vset.pattern.permute.xlu1 %v5643_v44 }
 0x4d4   : > { %2618 = vperm.xlu2 %3597, %v2613_v19  }
 0x4db   : > { %2611 = vperm.xlu1 %3596, %v2600_v23  }
 0x4dc   : > { %3598 = vset.pattern.permute.xlu2 %v5643_v44 }
 0x4e3   : > { %2624 = vperm.xlu1 %3596, %v2613_v19  }
 0x4e4   : > { %2650 = vperm.xlu2 %3598, %v2639_v52  }
 0x4ee   : > { %v2632_v22 = vpop.permute.xlu2 %2631 }
 0x4ef   : > { %v2958_v12 = vmul.f32 %v2632_v22, %v5611_v27  ;;  %v2668_v5 = vmul.f32 %v2632_v22, %v5613_v55 }
 0x4f6   : > { %v2541_v60 = vpop.permute.xlu2 %2540 }
 0x4f7   : > { %v2944_v47 = vmul.f32 %v2541_v60, %v3949_v51  ;;  %v2654_v22 = vmul.f32 %v2541_v60, %v3875_v14 }
 0x4fe   : > { %v2580_v31 = vpop.permute.xlu2 %2579 }
 0x4ff   : > { %v2950_v52 = vmul.f32 %v2580_v31, %v5594_v21  ;;  %v2660_v55 = vmul.f32 %v2580_v31, %v5595_v39 }
 0x505   : > { %v2645_v2 = vpop.permute.xlu1 %2644  ;;  %v2638_v53 = vpop.permute.xlu0 %2637 }
 0x506   : > { %v4952_v4 = vpop.permute.xlu2 %2592  ;;  %v2959_v11 = vmul.f32 %v2638_v53, %v5614_v17 }
 0x507   : > { %v2952_v43 = vmul.f32 %v4952_v4, %v5600_v62  ;;  %v2662_v31 = vmul.f32 %v4952_v4, %v5601_v40 }
 0x508   : > { %v3018_v26 = vadd.f32 %v2959_v11, %v2958_v12  ;;  %v2669_v12 = vmul.f32 %v2638_v53, %v5608_v50 }
 0x50a   : > { %v3019_v18 = vrot.slane %v3018_v26, 4 }
 0x50c   : > { %v3020_v58 = vadd.f32 %v3019_v18, %v3018_v26 }
 0x515   : > { %v2534_v32 = vpop.permute.xlu1 %2533  ;;  %v2528_v49 = vpop.permute.xlu0 %2527 }
 0x516   : > { %v4954_v20 = vpop.permute.xlu2 %2559  ;;  %v2943_v36 = vmul.f32 %v2534_v32, %v3894_v61  ;;  %v2942_v33 = vmul.f32 %v2528_v49, %v3864_v46  ;;  %v2653_v27 = vmul.f32 %v2534_v32, %v3916_v9  ;;  %v2652_v17 = vmul.f32 %v2528_v49, %v3883_v42 }
 0x518   : > { %v2962_v25 = vadd.f32 %v2943_v36, %v2942_v33  ;;  %v2672_v18 = vadd.f32 %v2653_v27, %v2652_v17 }
 0x51a   : > { %v2963_v28 = vrot.slane %v2962_v25, 4 }
 0x51c   : > { %v2964_v11 = vadd.f32 %v2963_v28, %v2962_v25 }
 0x51d   : > { %v2547_v63 = vpop.permute.xlu1 %2546 }
 0x51e   : > { %v2945_v44 = vmul.f32 %v2547_v63, %v3938_v7  ;;  %v4967_v48 = vpop.permute.xlu2 %2572  ;;  %v2965_v62 = vrot.slane %v2964_v11, 2  ;;  %v2655_v53 = vmul.f32 %v2547_v63, %v3905_v37 }
 0x520   : > { %v2969_v19 = vadd.f32 %v2945_v44, %v2944_v47  ;;  %v2728_v44 = vadd.f32 %v2669_v12, %v2668_v5 }
 0x522   : > { %v2729_v32 = vrot.slane %v2728_v44, 4 }
 0x525   : > { %v2586_v35 = vpop.permute.xlu1 %2585  ;;  %v2599_v3 = vpop.permute.xlu0 %2598 }
 0x526   : > { %v2951_v41 = vmul.f32 %v2586_v35, %v5597_v34  ;;  %v2953_v45 = vmul.f32 %v2599_v3, %v5604_v30  ;;  %v2661_v49 = vmul.f32 %v2586_v35, %v5598_v24  ;;  %v5656_v24 = vld [vmem:[#allocation26_spill] sm:$0xff] }
 0x528   : > { %v2990_v29 = vadd.f32 %v2951_v41, %v2950_v52  ;;  %v2997_v0 = vadd.f32 %v2953_v45, %v2952_v43  ;;  %v2970_v41 = vrot.slane %v2969_v19, 4  ;;  %v3021_v52 = vrot.slane %v3020_v58, 2 }
 0x529   : > { %v2966_v43 = vadd.f32 %v2965_v62, %v2964_v11  ;;  %v2679_v62 = vadd.f32 %v2655_v53, %v2654_v22 }
 0x52a   : > { %v2991_v23 = vrot.slane %v2990_v29, 4  ;;  %v2998_v33 = vrot.slane %v2997_v0, 4  ;;  %v2971_v26 = vadd.f32 %v2970_v41, %v2969_v19  ;;  %v2960_v19 = vmul.f32 %v2645_v2, %v5615_v16 }
 0x52b   : > { %v2967_v27 = vrot.slane %v2966_v43, 1 }
 0x52c   : > { %v2992_v36 = vadd.f32 %v2991_v23, %v2990_v29  ;;  %v2999_v45 = vadd.f32 %v2998_v33, %v2997_v0  ;;  %v3022_v29 = vadd.f32 %v3021_v52, %v3020_v58  ;;  %v2972_v23 = vrot.slane %v2971_v26, 2 }
 0x52d   : > { %v2670_v0 = vmul.f32 %v2645_v2, %v5612_v38  ;;  %v2673_v58 = vrot.slane %v2672_v18, 4  ;;  %v2700_v33 = vadd.f32 %v2661_v49, %v2660_v55  ;;  %v2657_v2 = vmul.f32 %v4954_v20, %v5560_v10 }
 0x52e   : > { %v4973_v30 = vpop.permute.xlu2 %2618  ;;  %v2993_v21 = vrot.slane %v2992_v36, 2  ;;  %v3000_v28 = vrot.slane %v2999_v45, 2  ;;  %v3023_v5 = vrot.slane %v3022_v29, 1  ;;  %v2973_v35 = vadd.f32 %v2972_v23, %v2971_v26 }
 0x52f   : > { %v4990_v53 = vadd.f32 %v2673_v58, %v2672_v18 }
 0x530   : > { %v2994_v47 = vadd.f32 %v2993_v21, %v2992_v36  ;;  %v2663_v21 = vmul.f32 %v2599_v3, %v5596_v15  ;;  %v3001_v11 = vadd.f32 %v3000_v28, %v2999_v45  ;;  %v4983_v36 = vadd.f32 %v2729_v32, %v2728_v44  ;;  %v5655_v15 = vld [vmem:[#allocation59_spill] sm:$0xff] }
 0x531   : > { %v3024_v12 = vadd.f32 %v3023_v5, %v3022_v29  ;;  %v2968_v3 = vadd.f32 %v2967_v27, %v2966_v43  ;;  %v2947_v45 = vmul.f32 %v4954_v20, %v5593_v13  ;;  %v2680_v44 = vrot.slane %v2679_v62, 4 }
 0x532   : > { %v2995_v63 = vrot.slane %v2994_v47, 1  ;;  %v2707_v32 = vadd.f32 %v2663_v21, %v2662_v31  ;;  %v3002_v4 = vrot.slane %v3001_v11, 1  ;;  %v2974_v55 = vrot.slane %v2973_v35, 1  ;;  %v5647_v21 = vld [vmem:[#allocation47_spill] sm:$0xff] }
 0x533   : > { %v2701_v29 = vrot.slane %v2700_v33, 4  ;;  %v4999_v20 = vadd.f32 %v2968_v3, %v4539_v8  ;;  %v2681_v58 = vadd.f32 %v2680_v44, %v2679_v62  ;;  %v2731_v44 = vrot.slane %v4983_v36, 2 }
 0x534   : > { %v2996_v22 = vadd.f32 %v2995_v63, %v2994_v47  ;;  %v5645_v47 = vld [vmem:[#allocation11_spill] sm:$0xff]  ;;  %v3003_v31 = vadd.f32 %v3002_v4, %v3001_v11  ;;  %v2975_v16 = vadd.f32 %v2974_v55, %v2973_v35  ;;  %v5649_v35 = vld [vmem:[#allocation49_spill] sm:$0xff]  ;;  %v5650_v55 = vld [vmem:[#allocation42_spill] sm:$0xff] }
 0x535   : > { %v2554_v25 = vpop.permute.xlu1 %2553  ;;  %v2659_v27 = vmul.f32 %v4967_v48, %v5645_v47 }
 0x536   : > { %v2656_v23 = vmul.f32 %v2554_v25, %v5590_v57  ;;  %v2946_v49 = vmul.f32 %v2554_v25, %v5558_v56  ;;  %v2708_v25 = vrot.slane %v2707_v32, 4 }
 0x538   : > { %v2709_v4 = vadd.f32 %v2708_v25, %v2707_v32  ;;  %v5653_v25 = vld [vmem:[#allocation23_spill] sm:$0xff] }
 0x53d   : > { %v2567_v28 = vpop.permute.xlu1 %2566 }
 0x53e   : > { %v2651_v17 = vpop.permute.xlu2 %2650  ;;  %v2658_v5 = vmul.f32 %v2567_v28, %v5569_v59  ;;  %v2948_v18 = vmul.f32 %v2567_v28, %v5570_v54  ;;  %v2702_v28 = vadd.f32 %v2701_v29, %v2700_v33  ;;  %v5016_v33 = vadd.f32 %v3003_v31, %v5649_v35  ;;  %v5654_v35 = vld [vmem:[#allocation27_spill] sm:$0xff] }
 0x53f   : > { %v2961_v60 = vmul.f32 %v2651_v17, %v4294_v6  ;;  %v2671_v41 = vmul.f32 %v2651_v17, %v4226_v1  ;;  %v5646_v17 = vld [vmem:[#allocation15_spill] sm:$0xff]  ;;  %v5019_v29 = vadd.f32 %v2975_v16, %v5650_v55  ;;  %v2710_v16 = vrot.slane %v2709_v4, 2 }
 0x540   : > { %v2949_v63 = vmul.f32 %v4967_v48, %v5646_v17  ;;  %v2675_v48 = vrot.slane %v4990_v53, 2 }
 0x541   : > { %v3025_v52 = vadd.f32 %v2961_v60, %v2960_v19  ;;  %v2735_v43 = vadd.f32 %v2671_v41, %v2670_v0  ;;  %v5006_v60 = vadd.f32 %v2996_v22, %v5647_v21  ;;  %v2686_v0 = vadd.f32 %v2657_v2, %v2656_v23  ;;  %v2606_v2 = vpop.permute.xlu0 %2605 }
 0x542   : > { %v2976_v41 = vadd.f32 %v2947_v45, %v2946_v49  ;;  %v2983_v8 = vadd.f32 %v2949_v63, %v2948_v18  ;;  %v2682_v22 = vrot.slane %v2681_v58, 2  ;;  %v5651_v63 = vld [vmem:[#allocation24_spill] sm:$0xff]  ;;  %v3043_v55 = vmax.f32 %v5019_v29, %v5016_v33 }
 0x543   : > { %v3026_v26 = vrot.slane %v3025_v52, 4  ;;  %v2736_v3 = vrot.slane %v2735_v43, 4  ;;  %v3042_v11 = vmax.f32 %v4999_v20, %v5006_v60  ;;  %v2687_v23 = vrot.slane %v2686_v0, 4 }
 0x544   : > { %v2977_v49 = vrot.slane %v2976_v41, 4  ;;  %v2664_v21 = vmul.f32 %v2606_v2, %v5651_v63  ;;  %v2711_v39 = vadd.f32 %v2710_v16, %v2709_v4  ;;  %v5658_v4 = vld [vmem:[#allocation25_spill] sm:$0xff] }
 0x545   : > { %v3027_v19 = vadd.f32 %v3026_v26, %v3025_v52  ;;  %v2693_v52 = vadd.f32 %v2659_v27, %v2658_v5  ;;  %v5648_v26 = vld [vmem:[#allocation44_spill] sm:$0xff]  ;;  %v2984_v5 = vrot.slane %v2983_v8, 4  ;;  %v2737_v18 = vadd.f32 %v2736_v3, %v2735_v43 }
 0x546   : > { %v5010_v1 = vadd.f32 %v3024_v12, %v5648_v26  ;;  %v5652_v26 = vld [vmem:[#allocation22_spill] sm:$0xff]  ;;  %v2688_v43 = vadd.f32 %v2687_v23, %v2686_v0  ;;  %v2978_v3 = vadd.f32 %v2977_v49, %v2976_v41  ;;  %v2712_v16 = vrot.slane %v2711_v39, 1 }
 0x547   : > { %v3028_v6 = vrot.slane %v3027_v19, 2  ;;  %v2694_v12 = vrot.slane %v2693_v52, 4  ;;  %v2954_v32 = vmul.f32 %v2606_v2, %v5652_v26  ;;  %v2985_v2 = vadd.f32 %v2984_v5, %v2983_v8  ;;  %v5659_v5 = vld [vmem:[#allocation29_spill] sm:$0xff] }
 0x548   : > { %v5026_v38 = vmax.f32 %v3042_v11, %v5010_v1  ;;  %v2738_v26 = vrot.slane %v2737_v18, 2  ;;  %v2676_v11 = vadd.f32 %v2675_v48, %v4990_v53  ;;  %v2979_v49 = vrot.slane %v2978_v3, 2 }
 0x549   : > { %v3029_v62 = vadd.f32 %v3028_v6, %v3027_v19  ;;  %v2703_v6 = vrot.slane %v2702_v28, 2  ;;  %v2695_v63 = vadd.f32 %v2694_v12, %v2693_v52  ;;  %v2689_v52 = vrot.slane %v2688_v43, 2 }
 0x54a   : > { %v2986_v53 = vrot.slane %v2985_v2, 2  ;;  %v2980_v0 = vadd.f32 %v2979_v49, %v2978_v3 }
 0x54b   : > { %v3030_v45 = vrot.slane %v3029_v62, 1  ;;  %v2704_v17 = vadd.f32 %v2703_v6, %v2702_v28  ;;  %v2696_v12 = vrot.slane %v2695_v63, 2 }
 0x54d   : > { %v3031_v19 = vadd.f32 %v3030_v45, %v3029_v62  ;;  %v2612_v27 = vpop.permute.xlu1 %2611 }
 0x54e   : > { %v2665_v31 = vmul.f32 %v2612_v27, %v5653_v25  ;;  %v2955_v50 = vmul.f32 %v2612_v27, %v5654_v35  ;;  %v2683_v27 = vadd.f32 %v2682_v22, %v2681_v58  ;;  %v2739_v58 = vadd.f32 %v2738_v26, %v2737_v18 }
 0x54f   : > { %v5031_v34 = vadd.f32 %v3031_v19, %v5655_v15  ;;  %v2666_v15 = vmul.f32 %v4973_v30, %v5656_v24  ;;  %v2697_v18 = vadd.f32 %v2696_v12, %v2695_v63  ;;  %v2987_v26 = vadd.f32 %v2986_v53, %v2985_v2  ;;  %v5661_v12 = vld [vmem:[#allocation46_spill] sm:$0xff] }
 0x550   : > { %v2714_v62 = vadd.f32 %v2665_v31, %v2664_v21  ;;  %v3004_v45 = vadd.f32 %v2955_v50, %v2954_v32  ;;  %v5657_v50 = vld [vmem:[#allocation30_spill] sm:$0xff]  ;;  %v2732_v21 = vadd.f32 %v2731_v44, %v4983_v36  ;;  %v2677_v32 = vrot.slane %v2676_v11, 1 }
 0x551   : > { %v5034_v25 = vmax.f32 %v3043_v55, %v5031_v34  ;;  %v2956_v41 = vmul.f32 %v4973_v30, %v5657_v50  ;;  %v2705_v31 = vrot.slane %v2704_v17, 1  ;;  %v2740_v50 = vrot.slane %v2739_v58, 1 }
 0x552   : > { %v2715_v35 = vrot.slane %v2714_v62, 4  ;;  %v3005_v40 = vrot.slane %v3004_v45, 4  ;;  %v2678_v47 = vadd.f32 %v2677_v32, %v2676_v11  ;;  %v5662_v11 = vld [vmem:[#allocation48_spill] sm:$0xff] }
 0x554   : > { %v2716_v8 = vadd.f32 %v2715_v35, %v2714_v62  ;;  %v3006_v23 = vadd.f32 %v3005_v40, %v3004_v45  ;;  %v2684_v62 = vrot.slane %v2683_v27, 1  ;;  %v2690_v45 = vadd.f32 %v2689_v52, %v2688_v43  ;;  %v5660_v52 = vld [vmem:[#allocation45_spill] sm:$0xff] }
 0x555   : > { %v2625_v48 = vpop.permute.xlu1 %2624  ;;  %v2741_v43 = vadd.f32 %v2740_v50, %v2739_v58  ;;  %v2742_v49 = vadd.f32 %v2678_v47, %v5660_v52  ;;  %v5664_v50 = vld [vmem:[#allocation58_spill] sm:$0xff] }
 0x556   : > { %v2717_v22 = vrot.slane %v2716_v8, 2  ;;  %v3007_v28 = vrot.slane %v3006_v23, 2  ;;  %v2667_v6 = vmul.f32 %v2625_v48, %v5658_v4  ;;  %v2957_v19 = vmul.f32 %v2625_v48, %v5659_v5 }
 0x557   : > { %v2733_v4 = vrot.slane %v2732_v21, 1  ;;  %v2706_v48 = vadd.f32 %v2705_v31, %v2704_v17  ;;  %v2713_v5 = vadd.f32 %v2712_v16, %v2711_v39  ;;  %v2751_v58 = vadd.f32 %v2741_v43, %v5664_v50  ;;  %v5673_v43 = vld [vmem:[#allocation51_spill] sm:$0xff] }
 0x558   : > { %v2718_v30 = vadd.f32 %v2717_v22, %v2716_v8  ;;  %v3008_v55 = vadd.f32 %v3007_v28, %v3006_v23  ;;  %v2721_v35 = vadd.f32 %v2667_v6, %v2666_v15  ;;  %v3011_v40 = vadd.f32 %v2957_v19, %v2956_v41 }
 0x559   : > { %v2685_v8 = vadd.f32 %v2684_v62, %v2683_v27  ;;  %v2691_v23 = vrot.slane %v2690_v45, 1  ;;  %v2981_v15 = vrot.slane %v2980_v0, 1  ;;  %v2698_v41 = vrot.slane %v2697_v18, 1 }
 0x55a   : > { %v2722_v24 = vrot.slane %v2721_v35, 4  ;;  %v3012_v59 = vrot.slane %v3011_v40, 4  ;;  %v2719_v36 = vrot.slane %v2718_v30, 1  ;;  %v3009_v44 = vrot.slane %v3008_v55, 1 }
 0x55b   : > { %v2988_v22 = vrot.slane %v2987_v26, 1  ;;  %v2734_v2 = vadd.f32 %v2733_v4, %v2732_v21  ;;  %v2746_v53 = vadd.f32 %v2706_v48, %v5661_v12  ;;  %v2747_v17 = vadd.f32 %v2713_v5, %v5662_v11  ;;  %v5666_v48 = vld [vmem:[#allocation57_spill] sm:$0xff] }
 0x55c   : > { %v2723_v54 = vadd.f32 %v2722_v24, %v2721_v35  ;;  %v3013_v10 = vadd.f32 %v3012_v59, %v3011_v40  ;;  %v2720_v39 = vadd.f32 %v2719_v36, %v2718_v30  ;;  %v3010_v28 = vadd.f32 %v3009_v44, %v3008_v55  ;;  %v5663_v59 = vld [vmem:[#allocation8_spill] sm:$0xff] }
 0x55d   : > { %v2743_v27 = vadd.f32 %v2685_v8, %v5663_v59  ;;  %v2692_v19 = vadd.f32 %v2691_v23, %v2690_v45  ;;  %v2982_v32 = vadd.f32 %v2981_v15, %v2980_v0  ;;  %v2699_v31 = vadd.f32 %v2698_v41, %v2697_v18  ;;  %v5665_v40 = vld [vmem:[#allocation56_spill] sm:$0xff]  ;;  %v5669_v0 = vld [vmem:[#allocation53_spill] sm:$0xff]  ;;  %v5671_v8 = vld [vmem:[#allocation55_spill] sm:$0xff] }
 0x55e   : > { %v2724_v3 = vrot.slane %v2723_v54, 2  ;;  %v3014_v63 = vrot.slane %v3013_v10, 2  ;;  %v2989_v16 = vadd.f32 %v2988_v22, %v2987_v26  ;;  %v2752_v21 = vmax.f32 %v2742_v49, %v2746_v53  ;;  %v5668_v36 = vld [vmem:[#allocation52_spill] sm:$0xff]  ;;  %v5670_v26 = vld [vmem:[#allocation54_spill] sm:$0xff] }
 0x55f   : > { %v2753_v47 = vmax.f32 %v2743_v27, %v2747_v17  ;;  %v2748_v62 = vadd.f32 %v2720_v39, %v5665_v40  ;;  %v5053_v5 = vadd.f32 %v3010_v28, %v5666_v48  ;;  %v2744_v45 = vadd.f32 %v2692_v19, %v5668_v36  ;;  %v5672_v41 = vld [vmem:[#allocation50_spill] sm:$0xff] }
 0x560   : > { %v2725_v6 = vadd.f32 %v2724_v3, %v2723_v54  ;;  %v3015_v24 = vadd.f32 %v3014_v63, %v3013_v10  ;;  %v5667_v10 = vld [vmem:[#allocation43_spill] sm:$0xff]  ;;  %v5058_v18 = vadd.f32 %v2982_v32, %v5669_v0  ;;  %v2745_v44 = vadd.f32 %v2699_v31, %v5670_v26 }
 0x561   : > { %v2750_v55 = vadd.f32 %v2734_v2, %v5667_v10  ;;  %v5062_v23 = vadd.f32 %v2989_v16, %v5671_v8  ;;  %v2757_v15 = vmax.f32 %v2753_v47, %v2751_v58  ;;  %v2754_v52 = vmax.f32 %v2744_v45, %v2748_v62 }
 0x562   : > { %v2726_v35 = vrot.slane %v2725_v6, 1  ;;  %v3016_v4 = vrot.slane %v3015_v24, 1  ;;  %v3044_v2 = vmax.f32 %v5058_v18, %v5053_v5  ;;  %v5674_v59 = vmax.f32 %v5026_v38, %v5034_v25 }
 0x563   : > { %v2756_v63 = vmax.f32 %v2752_v21, %v2750_v55 }
 0x564   : > { %v2727_v30 = vadd.f32 %v2726_v35, %v2725_v6  ;;  %v3017_v54 = vadd.f32 %v3016_v4, %v3015_v24 }
 0x565   : > { %v2758_v39 = vmax.f32 %v2756_v63, %v2757_v15 }
 0x566   : > { %v2749_v22 = vadd.f32 %v2727_v30, %v5672_v41  ;;  %v3039_v3 = vadd.f32 %v3017_v54, %v5673_v43 }
 0x568   : > { %v2755_v12 = vmax.f32 %v2745_v44, %v2749_v22  ;;  %v3045_v11 = vmax.f32 %v5062_v23, %v3039_v3 }
 0x56a   : > { %v2759_v28 = vmax.f32 %v2754_v52, %v2755_v12  ;;  %v3049_v6 = vmax.f32 %v3044_v2, %v3045_v11 }
 0x56c   : > { %v2760_v24 = vmax.f32 %v2758_v39, %v2759_v28  ;;  %v5072_v19 = vmax.f32 %v5674_v59, %v3049_v6 }
 0x56e   : > { %v2768_v32 = vsub.f32 %v2749_v22, %v2760_v24  ;;  %v3058_v31 = vsub.f32 %v3039_v3, %v5072_v19  ;;  %v2761_v16 = vsub.f32 %v2742_v49, %v2760_v24  ;;  %v2762_v50 = vsub.f32 %v2743_v27, %v2760_v24 }
 0x56f   : > { %v2763_v35 = vsub.f32 %v2744_v45, %v2760_v24  ;;  %v2764_v4 = vsub.f32 %v2745_v44, %v2760_v24  ;;  %v2765_v40 = vsub.f32 %v2746_v53, %v2760_v24  ;;  %v2766_v48 = vsub.f32 %v2747_v17, %v2760_v24 }
 0x570   : > { %v2785_v21 = vmul.f32 1.442695, %v2768_v32  ;;  %v3075_v47 = vmul.f32 1.442695, %v3058_v31  ;;  %v2767_v30 = vsub.f32 %v2748_v62, %v2760_v24  ;;  %v2771_v54 = vmul.f32 1.442695, %v2761_v16 }
 0x571   : > { %v2773_v10 = vmul.f32 1.442695, %v2762_v50  ;;  %v2775_v36 = vmul.f32 1.442695, %v2763_v35  ;;  %v2769_v38 = vsub.f32 %v2750_v55, %v2760_v24  ;;  %v2777_v25 = vmul.f32 1.442695, %v2764_v4 }
 0x572   : > { %3668 = vpow2.f32 %v2785_v21  ;;  %v2770_v0 = vsub.f32 %v2751_v58, %v2760_v24  ;;  %v2779_v26 = vmul.f32 1.442695, %v2765_v40  ;;  %v2781_v49 = vmul.f32 1.442695, %v2766_v48 }
 0x573   : > { %3670 = vpow2.f32 %v3075_v47  ;;  %v2783_v27 = vmul.f32 1.442695, %v2767_v30  ;;  %v3051_v45 = vsub.f32 %v4999_v20, %v5072_v19  ;;  %v3052_v53 = vsub.f32 %v5019_v29, %v5072_v19 }
 0x574   : > { %3672 = vpow2.f32 %v2771_v54  ;;  %v3059_v17 = vsub.f32 %v5010_v1, %v5072_v19  ;;  %v3060_v62 = vsub.f32 %v5031_v34, %v5072_v19  ;;  %v2787_v58 = vmul.f32 1.442695, %v2769_v38 }
 0x575   : > { %3674 = vpow2.f32 %v2773_v10  ;;  %v3053_v55 = vsub.f32 %v5058_v18, %v5072_v19  ;;  %v2789_v8 = vmul.f32 1.442695, %v2770_v0  ;;  %v3054_v20 = vsub.f32 %v5062_v23, %v5072_v19 }
 0x576   : > { %3676 = vpow2.f32 %v2775_v36  ;;  %v3055_v1 = vsub.f32 %v5006_v60, %v5072_v19  ;;  %v3061_v29 = vmul.f32 1.442695, %v3051_v45  ;;  %v3056_v18 = vsub.f32 %v5016_v33, %v5072_v19 }
 0x577   : > { %3678 = vpow2.f32 %v2777_v25  ;;  %v3063_v41 = vmul.f32 1.442695, %v3052_v53  ;;  %v3057_v23 = vsub.f32 %v5053_v5, %v5072_v19  ;;  %v3065_v43 = vmul.f32 1.442695, %v3053_v55 }
 0x578   : > { %v5085_v44 = vpop.eup %3668  ;;  %3680 = vpow2.f32 %v2779_v26  ;;  %v3067_v63 = vmul.f32 1.442695, %v3054_v20  ;;  %v3069_v33 = vmul.f32 1.442695, %v3055_v1  ;;  %v3071_v39 = vmul.f32 1.442695, %v3056_v18 }
 0x579   : > { %v5089_v15 = vpop.eup %3670  ;;  %3682 = vpow2.f32 %v2781_v49  ;;  %v3073_v59 = vmul.f32 1.442695, %v3057_v23  ;;  %v3079_v4 = vmul.f32 1.442695, %v3060_v62  ;;  %v2813_v47 = vrot.slane %v5085_v44, 1 }
 0x57a   : > { %v5093_v34 = vpop.eup %3672  ;;  %3684 = vpow2.f32 %v2783_v27  ;;  %v3077_v10 = vmul.f32 1.442695, %v3059_v17 }
 0x57b   : > { %v5097_v22 = vpop.eup %3674  ;;  %3686 = vpow2.f32 %v2787_v58 }
 0x57c   : > { %v5101_v3 = vpop.eup %3676  ;;  %3688 = vpow2.f32 %v2789_v8  ;;  %v2801_v60 = vrot.slane %v5097_v22, 7 }
 0x57d   : > { %v5104_v52 = vpop.eup %3678  ;;  %v2803_v2 = vrot.slane %v5101_v3, 6  ;;  %3690 = vpow2.f32 %v3061_v29 }
 0x57e   : > { %v5107_v12 = vpop.eup %3680  ;;  %v2802_v11 = vsel %vm1360_vm1, %v2801_v60, %v5093_v34  ;;  %v2805_v5 = vrot.slane %v5104_v52, 5  ;;  %3692 = vpow2.f32 %v3063_v41 }
 0x57f   : > { %v5112_v28 = vpop.eup %3682  ;;  %v2804_v6 = vsel %vm1362_vm2, %v2803_v2, %v2802_v11  ;;  %v2807_v24 = vrot.slane %v5107_v12, 4  ;;  %3694 = vpow2.f32 %v3065_v43 }
 0x580   : > { %v5116_v19 = vpop.eup %3684  ;;  %v2806_v32 = vsel %vm1364_vm3, %v2805_v5, %v2804_v6  ;;  %v2809_v31 = vrot.slane %v5112_v28, 3  ;;  %3696 = vpow2.f32 %v3067_v63  ;;  %v3103_v63 = vrot.slane %v5089_v15, 1 }
 0x581   : > { %v5120_v16 = vpop.eup %3686  ;;  %v2808_v50 = vsel %vm1366_vm4, %v2807_v24, %v2806_v32  ;;  %v2811_v35 = vrot.slane %v5116_v19, 2  ;;  %3698 = vpow2.f32 %v3069_v33 }
 0x582   : > { %v5124_v21 = vpop.eup %3688  ;;  %v2810_v40 = vsel %vm1368_vm5, %v2809_v31, %v2808_v50  ;;  %3700 = vpow2.f32 %v3071_v39 }
 0x583   : > { %v5128_v48 = vpop.eup %3690  ;;  %v2812_v30 = vsel %vm1370_vm6, %v2811_v35, %v2810_v40  ;;  %v2815_v54 = vrot.slane %v5124_v21, 7  ;;  %3702 = vpow2.f32 %v3073_v59 }
 0x584   : > { %v5132_v36 = vpop.eup %3692  ;;  %v2814_v38 = vsel %vm5675_vm7, %v2813_v47, %v2812_v30  ;;  %3704 = vpow2.f32 %v3079_v4 }
 0x585   : > { %v5135_v25 = vpop.eup %3694  ;;  %v2816_v0 = vsel %vm1360_vm1, %v2815_v54, %v5120_v16  ;;  %v3091_v26 = vrot.slane %v5132_v36, 7  ;;  %3706 = vpow2.f32 %v3077_v10 }
 0x586   : > { %v5140_v49 = vpop.eup %3696  ;;  %v2819_v27 = vsel %vm5676_vm0, %v2816_v0, 0.0  ;;  %v3093_v45 = vrot.slane %v5135_v25, 6 }
 0x587   : > { %v5144_v53 = vpop.eup %3698  ;;  %v2820_v17 = vadd.f32 %v2819_v27, %v2814_v38  ;;  %v3092_v62 = vsel %vm1360_vm1, %v3091_v26, %v5128_v48  ;;  %v3095_v58 = vrot.slane %v5140_v49, 5 }
 0x588   : > { %v5149_v55 = vpop.eup %3700  ;;  %v3094_v8 = vsel %vm1362_vm2, %v3093_v45, %v3092_v62  ;;  %v3097_v20 = vrot.slane %v5144_v53, 4 }
 0x589   : > { %v5153_v1 = vpop.eup %3702  ;;  %v2821_v29 = vrot.slane %v2820_v17, 4  ;;  %v3096_v18 = vsel %vm1364_vm3, %v3095_v58, %v3094_v8  ;;  %v3099_v41 = vrot.slane %v5149_v55, 3 }
 0x58a   : > { %v3098_v23 = vsel %vm1366_vm4, %v3097_v20, %v3096_v18  ;;  %v3101_v43 = vrot.slane %v5153_v1, 2  ;;  %v5159_v60 = vpop.eup %3704 }
 0x58b   : > { %v2822_v2 = vadd.f32 %v2821_v29, %v2820_v17  ;;  %v3100_v33 = vsel %vm1368_vm5, %v3099_v41, %v3098_v23  ;;  %v3105_v5 = vrot.slane %v5159_v60, 7  ;;  %v5165_v39 = vpop.eup %3706 }
 0x58c   : > { %v3102_v11 = vsel %vm1370_vm6, %v3101_v43, %v3100_v33 }
 0x58d   : > { %v2823_v6 = vrot.slane %v2822_v2, 2  ;;  %v3104_v24 = vsel %vm5677_vm8, %v3103_v63, %v3102_v11  ;;  %v3106_v59 = vsel %vm1360_vm1, %v3105_v5, %v5165_v39  ;;  %vm5710_vm8 = vcmask 130112  }
 0x58e   : > { %v3109_v31 = vsel %vm5678_vm14, %v3106_v59, 0.0  ;;  %vm5711_vm14 = vmmov %vm5710_vm8 }
 0x58f   : > { %v2824_v32 = vadd.f32 %v2823_v6, %v2822_v2  ;;  %v3110_v50 = vadd.f32 %v3109_v31, %v3104_v24 }
 0x591   : > { %v2825_v35 = vrot.slane %v2824_v32, 1  ;;  %v3111_v4 = vrot.slane %v3110_v50, 4 }
 0x593   : > { %v2826_v47 = vadd.f32 %v2825_v35, %v2824_v32  ;;  %v3112_v40 = vadd.f32 %v3111_v4, %v3110_v50 }
 0x595   : > { %v2827_v30 = vperm.slane %v2826_v47, 0  ;;  %v3113_v54 = vrot.slane %v3112_v40, 2 }
 0x597   : > { %3708 = vrcp.f32 %v2827_v30  ;;  %v3114_v10 = vadd.f32 %v3113_v54, %v3112_v40  ;;  %v2839_v62 = vand.u32 2147483648, %v2827_v30  ;;  %v2837_v8 = vand.u32 2147483647, %v2827_v30 }
 0x598   : > { %vm2833_vm11 = vweird.f32 %v2827_v30 }
 0x599   : > { %v3115_v38 = vrot.slane %v3114_v10, 1  ;;  %v2840_v29 = vor.u32 1.1754944e-38, %v2839_v62  ;;  %vm2838_vm13 = vcmp.eq.f32.partialorder %v2837_v8, 8.507059e+37 }
 0x59b   : > { %v3116_v0 = vadd.f32 %v3115_v38, %v3114_v10 }
 0x59d   : > { %v3709_v26 = vpop.eup %3708  ;;  %v3117_v45 = vperm.slane %v3116_v0, 0 }
 0x59e   : > { %v2829_v27 = vmul.f32 %v3709_v26, %v2827_v30  ;;  %vm2834_vm15 = vweird.f32 %v3709_v26 }
 0x59f   : > { %3710 = vrcp.f32 %v3117_v45  ;;  %vm2835_vm10 = vmor %vm2833_vm11, %vm2834_vm15  ;;  %v3129_v24 = vand.u32 2147483648, %v3117_v45  ;;  %v3127_v32 = vand.u32 2147483647, %v3117_v45  ;;  %vm3123_vm9 = vweird.f32 %v3117_v45 }
 0x5a0   : > { %v2830_v17 = vsub.f32 1.0, %v2829_v27  ;;  %v5679_v27 = vld [vmem:[#allocation9_spill] sm:$0xff]  ;;  %vm5712_vm15 = vmmov %vm5710_vm8 }
 0x5a1   : > { %vm3128_vm0 = vcmp.eq.f32.partialorder %v3127_v32, 8.507059e+37  ;;  %vm5713_vm11 = vmmov %vm5710_vm8 }
 0x5a2   : > { %v2831_v58 = vmul.f32 %v3709_v26, %v2830_v17  ;;  %v5681_v17 = vld [vmem:[#allocation11_spill] sm:$0xff] }
 0x5a4   : > { %v2832_v20 = vadd.f32 %v3709_v26, %v2831_v58 }
 0x5a5   : > { %v3711_v18 = vpop.eup %3710 }
 0x5a6   : > { %v2836_v41 = vsel %vm2835_vm10, %v3709_v26, %v2832_v20  ;;  %v3119_v43 = vmul.f32 %v3711_v18, %v3117_v45  ;;  %vm3124_vm12 = vweird.f32 %v3711_v18  ;;  %v5680_v45 = vld [vmem:[#allocation10_spill] sm:$0xff]  ;;  %vm5714_vm10 = vmmov %vm5710_vm8 }
 0x5a7   : > { %v5171_v23 = vsel %vm2838_vm13, %v2840_v29, %v2836_v41  ;;  %vm3125_vm7 = vmor %vm3123_vm9, %vm3124_vm12  ;;  %v5684_v29 = vld [vmem:[#allocation14_spill] sm:$0xff] }
 0x5a8   : > { %v2843_v63 = vmul.f32 %v5097_v22, %v5171_v23  ;;  %v2842_v2 = vmul.f32 %v5093_v34, %v5171_v23  ;;  %v3120_v33 = vsub.f32 1.0, %v3119_v43  ;;  %v5179_v11 = vmul.f32 %v5116_v19, %v5171_v23  ;;  %v5685_v43 = vld [vmem:[#allocation15_spill] sm:$0xff]  ;;  %vm5715_vm13 = vmmov %vm5710_vm8 }
 0x5a9   : > { %v3130_v34 = vor.u32 1.1754944e-38, %v3129_v24  ;;  %v5186_v47 = vmul.f32 %v5085_v44, %v5171_v23  ;;  %v2846_v58 = vmul.f32 %v5107_v12, %v5171_v23  ;;  %v2847_v41 = vmul.f32 %v5112_v28, %v5171_v23  ;;  %v5690_v28 = vld [vmem:[#allocation20_spill] sm:$0xff]  ;;  %vm5716_vm12 = vmmov %vm5710_vm8 }
 0x5aa   : > { %v2853_v5 = vperm.slane %v2843_v63, 0  ;;  %v2852_v6 = vperm.slane %v2842_v2, 0  ;;  %v3121_v59 = vmul.f32 %v3711_v18, %v3120_v33  ;;  %v5686_v33 = vld [vmem:[#allocation16_spill] sm:$0xff] }
 0x5ab   : > { %v2857_v2 = vperm.slane %v2847_v41, 0 }
 0x5ac   : > { %v2864_v31 = vmul.f32 %v2853_v5, %v3875_v14  ;;  %v2863_v50 = vmul.f32 %v2852_v6, %v3916_v9  ;;  %v2862_v22 = vmul.f32 %v2852_v6, %v3883_v42  ;;  %v3122_v35 = vadd.f32 %v3711_v18, %v3121_v59  ;;  %v5687_v6 = vld [vmem:[#allocation17_spill] sm:$0xff]  ;;  %v5688_v59 = vld [vmem:[#allocation18_spill] sm:$0xff] }
 0x5ad   : > { %v5190_v14 = vmul.f32 %v5124_v21, %v5171_v23 }
 0x5ae   : > { %2886 = vadd.xlane.f32.xlu0 %v2864_v31  ;;  %2884 = vadd.xlane.f32.xlu2 %v2863_v50  ;;  %v3126_v19 = vsel %vm3125_vm7, %v3711_v18, %v3122_v35  ;;  %v5689_v50 = vld [vmem:[#allocation19_spill] sm:$0xff]  ;;  %v5691_v35 = vld [vmem:[#allocation21_spill] sm:$0xff] }
 0x5af   : > { %2882 = vadd.xlane.f32.xlu1 %v2862_v22  ;;  %v3131_v4 = vsel %vm3128_vm0, %v3130_v34, %v3126_v19  ;;  %v2873_v34 = vmul.f32 %v2857_v2, %v5691_v35 }
 0x5b0   : > { %v3132_v42 = vmul.f32 %v5128_v48, %v3131_v4  ;;  %v3133_v9 = vmul.f32 %v5132_v36, %v3131_v4  ;;  %v3134_v40 = vmul.f32 %v5135_v25, %v3131_v4  ;;  %v3135_v30 = vmul.f32 %v5140_v49, %v3131_v4 }
 0x5b1   : > { %v3136_v54 = vmul.f32 %v5144_v53, %v3131_v4  ;;  %v3137_v10 = vmul.f32 %v5149_v55, %v3131_v4  ;;  %v5199_v38 = vmul.f32 %v5153_v1, %v3131_v4  ;;  %v2844_v48 = vmul.f32 %v5101_v3, %v5171_v23 }
 0x5b2   : > { %v3142_v44 = vperm.slane %v3132_v42, 0  ;;  %v2865_v36 = vmul.f32 %v2853_v5, %v3905_v37  ;;  %v3143_v49 = vperm.slane %v3133_v9, 0  ;;  %v5208_v53 = vmul.f32 %v5120_v16, %v5171_v23  ;;  %v5692_v42 = vld [vmem:[#allocation22_spill] sm:$0xff] }
 0x5b3   : > { %v2854_v25 = vperm.slane %v2844_v48, 0  ;;  %v5211_v55 = vmul.f32 %v5089_v15, %v3131_v4  ;;  %v3144_v16 = vperm.slane %v3134_v40, 0  ;;  %v3146_v12 = vperm.slane %v3136_v54, 0  ;;  %v5693_v40 = vld [vmem:[#allocation23_spill] sm:$0xff]  ;;  %v5694_v54 = vld [vmem:[#allocation24_spill] sm:$0xff]  ;;  %v5696_v48 = vld [vmem:[#allocation26_spill] sm:$0xff] }
 0x5b4   : > { %v3153_v0 = vmul.f32 %v3142_v44, %v3894_v61  ;;  %v3152_v21 = vmul.f32 %v3142_v44, %v3864_v46  ;;  %v5214_v61 = vmul.f32 %v5159_v60, %v3131_v4  ;;  %v5217_v46 = vmul.f32 %v5165_v39, %v3131_v4 }
 0x5b5   : > { %v2866_v37 = vmul.f32 %v2854_v25, %v5590_v57  ;;  %v3155_v3 = vmul.f32 %v3143_v49, %v3938_v7  ;;  %v3154_v1 = vmul.f32 %v3143_v49, %v3949_v51  ;;  %v3157_v26 = vmul.f32 %v3144_v16, %v5593_v13  ;;  %v5682_v13 = vld [vmem:[#allocation12_spill] sm:$0xff] }
 0x5b6   : > { %3174 = vadd.xlane.f32.xlu0 %v3153_v0  ;;  %3172 = vadd.xlane.f32.xlu2 %v3152_v21  ;;  %v3156_v15 = vmul.f32 %v3144_v16, %v5558_v56  ;;  %v2845_v60 = vmul.f32 %v5104_v52, %v5171_v23  ;;  %v2867_v39 = vmul.f32 %v2854_v25, %v5679_v27  ;;  %v3145_v57 = vperm.slane %v3135_v30, 0  ;;  %v5683_v52 = vld [vmem:[#allocation13_spill] sm:$0xff]  ;;  %v5697_v25 = vld [vmem:[#allocation27_spill] sm:$0xff] }
 0x5b7   : > { %2888 = vadd.xlane.f32.xlu1 %v2865_v36  ;;  %v2856_v56 = vperm.slane %v2846_v58, 0  ;;  %v2872_v5 = vmul.f32 %v2857_v2, %v5686_v33  ;;  %v3161_v24 = vmul.f32 %v3146_v12, %v5687_v6  ;;  %v3160_v32 = vmul.f32 %v3146_v12, %v5688_v59  ;;  %v5695_v0 = vld [vmem:[#allocation25_spill] sm:$0xff] }
 0x5b8   : > { %v2855_v7 = vperm.slane %v2845_v60, 0  ;;  %v3158_v51 = vmul.f32 %v3145_v57, %v5680_v45  ;;  %v3159_v63 = vmul.f32 %v3145_v57, %v5685_v43  ;;  %v3147_v31 = vperm.slane %v3137_v10, 0  ;;  %v5701_v60 = vld [vmem:[#allocation29_spill] sm:$0xff] }
 0x5b9   : > { %v2871_v20 = vmul.f32 %v2856_v56, %v5683_v52  ;;  %v2870_v18 = vmul.f32 %v2856_v56, %v5684_v29  ;;  %v3148_v19 = vperm.slane %v5199_v38, 0  ;;  %v2858_v4 = vperm.slane %v5179_v11, 0  ;;  %v5708_v2 = vld [vmem:[#allocation37_spill] sm:$0xff] }
 0x5ba   : > { %v2869_v62 = vmul.f32 %v2855_v7, %v5681_v17  ;;  %v2868_v8 = vmul.f32 %v2855_v7, %v5682_v13  ;;  %v3163_v22 = vmul.f32 %v3147_v31, %v5689_v50  ;;  %v3162_v23 = vmul.f32 %v3147_v31, %v5690_v28  ;;  %v5703_v7 = vld [vmem:[#allocation31_spill] sm:$0xff]  ;;  %v5706_v13 = vld [vmem:[#allocation38_spill] sm:$0xff] }
 0x5bb   : > { %v3164_v9 = vmul.f32 %v3148_v19, %v5692_v42  ;;  %v2875_v30 = vmul.f32 %v2858_v4, %v5693_v40  ;;  %v2874_v44 = vmul.f32 %v2858_v4, %v5694_v54  ;;  %v2859_v10 = vperm.slane %v5186_v47, 0 }
 0x5bc   : > { %v3165_v49 = vmul.f32 %v3148_v19, %v5697_v25  ;;  %v2861_v11 = vperm.slane %v5190_v14, 0  ;;  %v2860_v38 = vperm.slane %v5208_v53, 0  ;;  %v3149_v47 = vperm.slane %v5211_v55, 0  ;;  %v5707_v55 = vld [vmem:[#allocation39_spill] sm:$0xff] }
 0x5bd   : > { %v2877_v21 = vmul.f32 %v2859_v10, %v5695_v0  ;;  %v2876_v36 = vmul.f32 %v2859_v10, %v5696_v48  ;;  %v3151_v14 = vperm.slane %v5214_v61, 0  ;;  %v3150_v53 = vperm.slane %v5217_v46, 0 }
 0x5be   : > { %2890 = vadd.xlane.f32.xlu0 %v2866_v37  ;;  %3178 = vadd.xlane.f32.xlu2 %v3155_v3  ;;  %v5698_v37 = vld [vmem:[#allocation32_spill] sm:$0xff]  ;;  %v3167_v27 = vmul.f32 %v3149_v47, %v5701_v60  ;;  %v2881_v45 = vmul.f32 %v2861_v11, %v5703_v7 }
 0x5bf   : > { %3176 = vadd.xlane.f32.xlu1 %v3154_v1  ;;  %v2880_v3 = vmul.f32 %v2861_v11, %v5698_v37  ;;  %v5699_v1 = vld [vmem:[#allocation33_spill] sm:$0xff]  ;;  %v3171_v56 = vmul.f32 %v3151_v14, %v5707_v55 }
 0x5c0   : > { %v2879_v16 = vmul.f32 %v2860_v38, %v5699_v1 }
 0x5c6   : > { %3182 = vadd.xlane.f32.xlu0 %v3157_v26  ;;  %3180 = vadd.xlane.f32.xlu2 %v3156_v15  ;;  %v5700_v26 = vld [vmem:[#allocation28_spill] sm:$0xff] }
 0x5c7   : > { %2892 = vadd.xlane.f32.xlu1 %v2867_v39  ;;  %v2878_v15 = vmul.f32 %v2860_v38, %v5700_v26  ;;  %v5702_v39 = vld [vmem:[#allocation30_spill] sm:$0xff] }
 0x5c8   : > { %v3166_v57 = vmul.f32 %v3149_v47, %v5702_v39 }
 0x5ce   : > { %3184 = vadd.xlane.f32.xlu0 %v3158_v51  ;;  %2896 = vadd.xlane.f32.xlu2 %v2869_v62  ;;  %v5704_v51 = vld [vmem:[#allocation34_spill] sm:$0xff]  ;;  %v5705_v62 = vld [vmem:[#allocation36_spill] sm:$0xff] }
 0x5cf   : > { %2894 = vadd.xlane.f32.xlu1 %v2868_v8  ;;  %v3170_v17 = vmul.f32 %v3151_v14, %v5704_v51  ;;  %v3169_v58 = vmul.f32 %v3150_v53, %v5705_v62  ;;  %v3168_v8 = vmul.f32 %v3150_v53, %v5706_v13 }
 0x5d6   : > { %2900 = vadd.xlane.f32.xlu0 %v2871_v20  ;;  %2898 = vadd.xlane.f32.xlu2 %v2870_v18 }
 0x5d7   : > { %3186 = vadd.xlane.f32.xlu1 %v3159_v63 }
 0x5de   : > { %2902 = vadd.xlane.f32.xlu0 %v2872_v5  ;;  %3190 = vadd.xlane.f32.xlu2 %v3161_v24  ;;  %v5709_v5 = vld [vmem:[#allocation35_spill] sm:$0xff] }
 0x5df   : > { %3188 = vadd.xlane.f32.xlu1 %v3160_v32 }
 0x5e6   : > { %3194 = vadd.xlane.f32.xlu0 %v3163_v22  ;;  %3192 = vadd.xlane.f32.xlu2 %v3162_v23 }
 0x5e7   : > { %2904 = vadd.xlane.f32.xlu1 %v2873_v34 }
 0x5ee   : > { %3196 = vadd.xlane.f32.xlu0 %v3164_v9  ;;  %2908 = vadd.xlane.f32.xlu2 %v2875_v30 }
 0x5ef   : > { %2906 = vadd.xlane.f32.xlu1 %v2874_v44 }
 0x5f6   : > { %2912 = vadd.xlane.f32.xlu0 %v2877_v21  ;;  %2910 = vadd.xlane.f32.xlu2 %v2876_v36 }
 0x5f7   : > { %3198 = vadd.xlane.f32.xlu1 %v3165_v49 }
 0x5fe   : > { %2918 = vadd.xlane.f32.xlu0 %v2880_v3  ;;  %2916 = vadd.xlane.f32.xlu2 %v2879_v16 }
 0x5ff   : > { %2914 = vadd.xlane.f32.xlu1 %v2878_v15 }
 0x606   : > { %3202 = vadd.xlane.f32.xlu0 %v3167_v27  ;;  %3200 = vadd.xlane.f32.xlu2 %v3166_v57 }
 0x607   : > { %2920 = vadd.xlane.f32.xlu1 %v2881_v45 }
 0x60e   : > { %3208 = vadd.xlane.f32.xlu0 %v3170_v17  ;;  %3206 = vadd.xlane.f32.xlu2 %v3169_v58 }
 0x60f   : > { %3204 = vadd.xlane.f32.xlu1 %v3168_v8 }
 0x617   : > { %3210 = vadd.xlane.f32.xlu1 %v3171_v56 }
 0x621   : > { %v2887_v52 = vpop.xlane.xlu0 %2886  ;;  %v2885_v20 = vpop.xlane.xlu2 %2884 }
 0x622   : > { %v2883_v29 = vpop.xlane.xlu1 %2882 }
 0x629   : > { %v3175_v18 = vpop.xlane.xlu0 %3174  ;;  %v3173_v41 = vpop.xlane.xlu2 %3172 }
 0x62a   : > { %v3213_v61 = vadd.f32 %v3175_v18, %v2885_v20  ;;  %v3212_v43 = vadd.f32 %v3173_v41, %v2883_v29  ;;  %v2889_v46 = vpop.xlane.xlu1 %2888 }
 0x62c   : > { %v3233_v63 = vmul.f32 %v3213_v61, %v3213_v61  ;;  %v3427_v12 = vperm.slane %v3213_v61, %v5708_v2  ;;  %v3232_v33 = vmul.f32 %v3212_v43, %v3212_v43  ;;  %v3426_v6 = vperm.slane %v3212_v43, %v5709_v5 }
 0x62e   : > { %v3273_v24 = vperm.slane %v3233_v63, %v5708_v2  ;;  %v3272_v59 = vperm.slane %v3232_v33, %v5709_v5  ;;  %v3428_v32 = vsel %vm5710_vm8, %v3427_v12, %v3426_v6 }
 0x630   : > { %v3274_v31 = vsel %vm5711_vm14, %v3273_v24, %v3272_v59 }
 0x631   : > { %v2891_v50 = vpop.xlane.xlu0 %2890  ;;  %v3179_v22 = vpop.xlane.xlu2 %3178 }
 0x632   : > { %v3215_v28 = vadd.f32 %v3179_v22, %v2889_v46  ;;  %v3177_v23 = vpop.xlane.xlu1 %3176 }
 0x633   : > { %v3214_v35 = vadd.f32 %v3177_v23, %v2887_v52 }
 0x634   : > { %v3235_v34 = vmul.f32 %v3215_v28, %v3215_v28  ;;  %v3430_v19 = vperm.slane %v3215_v28, %v5708_v2 }
 0x635   : > { %v3234_v4 = vmul.f32 %v3214_v35, %v3214_v35  ;;  %v3429_v42 = vperm.slane %v3214_v35, %v5709_v5 }
 0x636   : > { %v3276_v9 = vperm.slane %v3235_v34, %v5708_v2 }
 0x637   : > { %v3275_v40 = vperm.slane %v3234_v4, %v5709_v5  ;;  %v3431_v30 = vsel %vm5712_vm15, %v3430_v19, %v3429_v42 }
 0x638   : > { %v3456_v54 = vsel %vm1360_vm1, %v3431_v30, %v3428_v32 }
 0x639   : > { %v3277_v44 = vsel %vm5713_vm11, %v3276_v9, %v3275_v40  ;;  %v3183_v10 = vpop.xlane.xlu0 %3182  ;;  %v3181_v0 = vpop.xlane.xlu2 %3180 }
 0x63a   : > { %v3302_v21 = vsel %vm1360_vm1, %v3277_v44, %v3274_v31  ;;  %v3216_v48 = vadd.f32 %v3181_v0, %v2891_v50  ;;  %v2893_v36 = vpop.xlane.xlu1 %2892 }
 0x63b   : > { %v3217_v25 = vadd.f32 %v3183_v10, %v2893_v36 }
 0x63c   : > { %v3236_v49 = vmul.f32 %v3216_v48, %v3216_v48  ;;  %v3432_v11 = vperm.slane %v3216_v48, %v5709_v5 }
 0x63d   : > { %v3237_v38 = vmul.f32 %v3217_v25, %v3217_v25  ;;  %v3433_v37 = vperm.slane %v3217_v25, %v5708_v2 }
 0x63e   : > { %v3278_v3 = vperm.slane %v3236_v49, %v5709_v5 }
 0x63f   : > { %v3279_v1 = vperm.slane %v3237_v38, %v5708_v2  ;;  %v3434_v16 = vsel %vm5714_vm10, %v3433_v37, %v3432_v11  ;;  %vm5725_vm10 = vcmask 1047559  }
 0x640   : > { %v3457_v26 = vsel %vm1362_vm2, %v3434_v16, %v3456_v54 }
 0x641   : > { %v3280_v15 = vsel %vm5715_vm13, %v3279_v1, %v3278_v3  ;;  %v3185_v47 = vpop.xlane.xlu0 %3184  ;;  %v2897_v60 = vpop.xlane.xlu2 %2896 }
 0x642   : > { %v5289_v27 = vsel %vm1362_vm2, %v3280_v15, %v3302_v21  ;;  %v2895_v39 = vpop.xlane.xlu1 %2894  ;;  %vm5717_vm2 = vmmov %vm5710_vm8 }
 0x643   : > { %v3218_v57 = vadd.f32 %v3185_v47, %v2895_v39  ;;  %vm5718_vm9 = vmmov %vm5717_vm2 }
 0x644   : > { %vm5719_vm7 = vmmov %vm5717_vm2 }
 0x645   : > { %v3435_v51 = vperm.slane %v3218_v57, %v5709_v5  ;;  %v3238_v36 = vmul.f32 %v3218_v57, %v3218_v57  ;;  %vm5720_vm0 = vmmov %vm5717_vm2 }
 0x646   : > { %vm5721_vm8 = vmmov %vm5720_vm0 }
 0x647   : > { %v3281_v16 = vperm.slane %v3238_v36, %v5709_v5  ;;  %vm5722_vm14 = vmmov %vm5720_vm0 }
 0x648   : > { %vm5723_vm15 = vmmov %vm5720_vm0 }
 0x649   : > { %v2901_v7 = vpop.xlane.xlu0 %2900  ;;  %v2899_v45 = vpop.xlane.xlu2 %2898  ;;  %vm5724_vm11 = vmmov %vm5720_vm0 }
 0x64a   : > { %v3187_v14 = vpop.xlane.xlu1 %3186  ;;  %vm5726_vm13 = vmmov %vm5720_vm0 }
 0x64b   : > { %v3219_v53 = vadd.f32 %v3187_v14, %v2897_v60 }
 0x64d   : > { %v3436_v17 = vperm.slane %v3219_v53, %v5708_v2  ;;  %v3239_v54 = vmul.f32 %v3219_v53, %v3219_v53 }
 0x64f   : > { %v3437_v62 = vsel %vm5716_vm12, %v3436_v17, %v3435_v51  ;;  %v3282_v49 = vperm.slane %v3239_v54, %v5708_v2  ;;  %vm5728_vm12 = vcmask 130048  }
 0x650   : > { %v3458_v58 = vsel %vm1364_vm3, %v3437_v62, %v3457_v26 }
 0x651   : > { %v2903_v13 = vpop.xlane.xlu0 %2902  ;;  %v3191_v8 = vpop.xlane.xlu2 %3190  ;;  %v3283_v60 = vsel %vm5720_vm0, %v3282_v49, %v3281_v16 }
 0x652   : > { %v3221_v55 = vadd.f32 %v3191_v8, %v2901_v7  ;;  %v3189_v56 = vpop.xlane.xlu1 %3188 }
 0x653   : > { %v3220_v52 = vadd.f32 %v3189_v56, %v2899_v45 }
 0x654   : > { %v3439_v20 = vperm.slane %v3221_v55, %v5708_v2  ;;  %v3241_v44 = vmul.f32 %v3221_v55, %v3221_v55 }
 0x655   : > { %v3438_v29 = vperm.slane %v3220_v52, %v5709_v5  ;;  %v3240_v0 = vmul.f32 %v3220_v52, %v3220_v52 }
 0x656   : > { %v3285_v11 = vperm.slane %v3241_v44, %v5708_v2 }
 0x657   : > { %v3440_v18 = vsel %vm5717_vm2, %v3439_v20, %v3438_v29  ;;  %v3284_v38 = vperm.slane %v3240_v0, %v5709_v5  ;;  %vm5732_vm2 = vmmov %vm5720_vm0 }
 0x658   : > { %v3459_v41 = vsel %vm1366_vm4, %v3440_v18, %v3458_v58 }
 0x659   : > { %v3195_v61 = vpop.xlane.xlu0 %3194  ;;  %v3193_v43 = vpop.xlane.xlu2 %3192  ;;  %v3286_v45 = vsel %vm5721_vm8, %v3285_v11, %v3284_v38 }
 0x65a   : > { %v3222_v46 = vadd.f32 %v3193_v43, %v2903_v13  ;;  %v2905_v63 = vpop.xlane.xlu1 %2904  ;;  %v3304_v13 = vsel %vm1364_vm3, %v3283_v60, %v5289_v27  ;;  %vm5727_vm3 = vmmov %vm5725_vm10 }
 0x65b   : > { %v3223_v12 = vadd.f32 %v3195_v61, %v2905_v63  ;;  %v3305_v20 = vsel %vm1366_vm4, %v3286_v45, %v3304_v13  ;;  %vm5729_vm4 = vmmov %vm5720_vm0 }
 0x65c   : > { %v3441_v33 = vperm.slane %v3222_v46, %v5709_v5  ;;  %v3242_v21 = vmul.f32 %v3222_v46, %v3222_v46 }
 0x65d   : > { %v3442_v6 = vperm.slane %v3223_v12, %v5708_v2  ;;  %v3243_v48 = vmul.f32 %v3223_v12, %v3223_v12 }
 0x65e   : > { %v3287_v37 = vperm.slane %v3242_v21, %v5709_v5 }
 0x65f   : > { %v3443_v24 = vsel %vm5718_vm9, %v3442_v6, %v3441_v33  ;;  %v3288_v3 = vperm.slane %v3243_v48, %v5708_v2  ;;  %vm5733_vm9 = vcmask 123904  }
 0x660   : > { %v3460_v59 = vsel %vm1368_vm5, %v3443_v24, %v3459_v41 }
 0x661   : > { %v3197_v32 = vpop.xlane.xlu0 %3196  ;;  %v2909_v31 = vpop.xlane.xlu2 %2908  ;;  %v3289_v14 = vsel %vm5722_vm14, %v3288_v3, %v3287_v37 }
 0x662   : > { %v2907_v50 = vpop.xlane.xlu1 %2906  ;;  %v3306_v18 = vsel %vm1368_vm5, %v3289_v14, %v3305_v20  ;;  %vm5730_vm5 = vmmov %vm5720_vm0 }
 0x663   : > { %v3224_v22 = vadd.f32 %v3197_v32, %v2907_v50 }
 0x665   : > { %v3444_v19 = vperm.slane %v3224_v22, %v5709_v5  ;;  %v3244_v1 = vmul.f32 %v3224_v22, %v3224_v22 }
 0x667   : > { %v3290_v53 = vperm.slane %v3244_v1, %v5709_v5 }
 0x669   : > { %v2913_v28 = vpop.xlane.xlu0 %2912  ;;  %v2911_v23 = vpop.xlane.xlu2 %2910 }
 0x66a   : > { %v3199_v35 = vpop.xlane.xlu1 %3198 }
 0x66b   : > { %v3225_v34 = vadd.f32 %v3199_v35, %v2909_v31 }
 0x66d   : > { %v3445_v4 = vperm.slane %v3225_v34, %v5708_v2  ;;  %v3245_v25 = vmul.f32 %v3225_v34, %v3225_v34 }
 0x66f   : > { %v3446_v42 = vsel %vm5719_vm7, %v3445_v4, %v3444_v19  ;;  %v3291_v26 = vperm.slane %v3245_v25, %v5708_v2 }
 0x670   : > { %v3461_v9 = vsel %vm1370_vm6, %v3446_v42, %v3460_v59 }
 0x671   : > { %v2919_v40 = vpop.xlane.xlu0 %2918  ;;  %v2917_v30 = vpop.xlane.xlu2 %2916  ;;  %v3292_v8 = vsel %vm5723_vm15, %v3291_v26, %v3290_v53 }
 0x672   : > { %v2915_v10 = vpop.xlane.xlu1 %2914  ;;  %v3307_v61 = vsel %vm1370_vm6, %v3292_v8, %v3306_v18  ;;  %vm5731_vm6 = vmmov %vm5720_vm0 }
 0x679   : > { %v3203_v15 = vpop.xlane.xlu0 %3202  ;;  %v3201_v47 = vpop.xlane.xlu2 %3200 }
 0x67a   : > { %v3227_v39 = vadd.f32 %v3203_v15, %v2913_v28  ;;  %v3226_v57 = vadd.f32 %v3201_v47, %v2911_v23  ;;  %v2921_v7 = vpop.xlane.xlu1 %2920 }
 0x67c   : > { %v3247_v51 = vmul.f32 %v3227_v39, %v3227_v39  ;;  %v3448_v17 = vperm.slane %v3227_v39, %v5708_v2  ;;  %v3246_v62 = vmul.f32 %v3226_v57, %v3226_v57  ;;  %v3447_v58 = vperm.slane %v3226_v57, %v5709_v5 }
 0x67e   : > { %v3294_v55 = vperm.slane %v3247_v51, %v5708_v2  ;;  %v3293_v56 = vperm.slane %v3246_v62, %v5709_v5  ;;  %v3449_v52 = vsel %vm5724_vm11, %v3448_v17, %v3447_v58 }
 0x67f   : > { %v5328_v29 = vsel %vm5725_vm10, %v3449_v52, %v3461_v9 }
 0x680   : > { %v3295_v41 = vsel %vm5726_vm13, %v3294_v55, %v3293_v56 }
 0x681   : > { %v3207_v27 = vpop.xlane.xlu2 %3206  ;;  %v3308_v43 = vsel %vm5727_vm3, %v3295_v41, %v3307_v61  ;;  %v3209_v6 = vpop.xlane.xlu0 %3208 }
 0x682   : > { %v3229_v46 = vadd.f32 %v3207_v27, %v2917_v30  ;;  %v3205_v63 = vpop.xlane.xlu1 %3204  ;;  %v3312_v12 = vsel %vm5728_vm12, %v3308_v43, 0.0  ;;  %v3230_v32 = vadd.f32 %v3209_v6, %v2919_v40 }
 0x683   : > { %v3228_v33 = vadd.f32 %v3205_v63, %v2915_v10  ;;  %3313 = vadd.xlane.f32.xlu2 %v3312_v12 }
 0x684   : > { %v3451_v24 = vperm.slane %v3229_v46, %v5708_v2  ;;  %v3249_v50 = vmul.f32 %v3229_v46, %v3229_v46  ;;  %v3250_v23 = vmul.f32 %v3230_v32, %v3230_v32  ;;  %v3453_v34 = vperm.slane %v3230_v32, %v5709_v5 }
 0x685   : > { %v3450_v59 = vperm.slane %v3228_v33, %v5709_v5  ;;  %v3248_v22 = vmul.f32 %v3228_v33, %v3228_v33 }
 0x686   : > { %v3297_v19 = vperm.slane %v3249_v50, %v5708_v2  ;;  %v3299_v30 = vperm.slane %v3250_v23, %v5709_v5 }
 0x687   : > { %v3452_v31 = vsel %vm5729_vm4, %v3451_v24, %v3450_v59  ;;  %v3296_v4 = vperm.slane %v3248_v22, %v5709_v5 }
 0x689   : > { %v3298_v10 = vsel %vm5731_vm6, %v3297_v19, %v3296_v4 }
 0x68a   : > { %v3211_v28 = vpop.xlane.xlu1 %3210 }
 0x68b   : > { %v3231_v35 = vadd.f32 %v3211_v28, %v2921_v7 }
 0x68d   : > { %v3251_v42 = vmul.f32 %v3231_v35, %v3231_v35  ;;  %v3454_v9 = vperm.slane %v3231_v35, %v5708_v2 }
 0x68f   : > { %v3300_v40 = vperm.slane %v3251_v42, %v5708_v2  ;;  %v3455_v54 = vsel %vm5730_vm5, %v3454_v9, %v3453_v34  ;;  %vm5734_vm5 = vcmask 130048  }
 0x690   : > { %v5346_v44 = vsel %vm1360_vm1, %v3455_v54, %v3452_v31 }
 0x691   : > { %v3301_v0 = vsel %vm5732_vm2, %v3300_v40, %v3299_v30 }
 0x692   : > { %v3309_v21 = vsel %vm1360_vm1, %v3301_v0, %v3298_v10 }
 0x693   : > { %v3315_v48 = vsel %vm5733_vm9, %v3309_v21, 0.0 }
 0x694   : > { %3316 = vadd.xlane.f32.xlu0 %v3315_v48 }
 0x6f6   : > { %v5352_v36 = vpop.xlane.xlu2 %3313 }
 0x6f7   : > { %3712 = vrsqrt.f32 %v5352_v36  ;;  %v3318_v2 = vadd.f32 1.0, %v5352_v36  ;;  %vm3357_vm1 = vcmp.eq.f32.partialorder %v5352_v36, inf  ;;  %v3360_v15 = vand.u32 2147483648, %v5352_v36 }
 0x6f8   : > { %vm3359_vm7 = vcmp.eq.f32.partialorder %v5352_v36, 0.0 }
 0x6f9   : > { %3714 = vrcp.f32 %v3318_v2  ;;  %v3329_v13 = vand.u32 2147483647, %v3318_v2  ;;  %v3331_v8 = vand.u32 2147483648, %v3318_v2  ;;  %vm3325_vm8 = vweird.f32 %v3318_v2 }
 0x6fb   : > { %vm3330_vm15 = vcmp.eq.f32.partialorder %v3329_v13, 8.507059e+37  ;;  %v3332_v61 = vor.u32 1.1754944e-38, %v3331_v8 }
 0x6fd   : > { %v3713_v5 = vpop.eup %3712 }
 0x6fe   : > { %v3351_v25 = vmul.f32 %v3713_v5, %v5352_v36 }
 0x6ff   : > { %v3715_v38 = vpop.eup %3714 }
 0x700   : > { %v3352_v49 = vmul.f32 %v3713_v5, %v3351_v25  ;;  %v3321_v1 = vmul.f32 %v3715_v38, %v3318_v2  ;;  %vm3326_vm0 = vweird.f32 %v3715_v38 }
 0x701   : > { %vm3327_vm14 = vmor %vm3325_vm8, %vm3326_vm0 }
 0x702   : > { %v3353_v11 = vmul.f32 0.5, %v3352_v49  ;;  %v3322_v60 = vsub.f32 1.0, %v3321_v1 }
 0x704   : > { %v3354_v37 = vsub.f32 1.5, %v3353_v11  ;;  %v3323_v14 = vmul.f32 %v3715_v38, %v3322_v60 }
 0x706   : > { %v3355_v3 = vmul.f32 %v3713_v5, %v3354_v37  ;;  %v3324_v17 = vadd.f32 %v3715_v38, %v3323_v14 }
 0x707   : > { %v5357_v16 = vpop.xlane.xlu0 %3316 }
 0x708   : > { %v3356_v26 = vmul.f32 %v3355_v3, %v5352_v36  ;;  %3716 = vrsqrt.f32 %v5357_v16  ;;  %v5366_v57 = vadd.f32 1.0, %v5357_v16  ;;  %v3328_v20 = vsel %vm3327_vm14, %v3715_v38, %v3324_v17 }
 0x709   : > { %v3333_v33 = vsel %vm3330_vm15, %v3332_v61, %v3328_v20  ;;  %vm3369_vm10 = vcmp.eq.f32.partialorder %v5357_v16, inf  ;;  %v3372_v6 = vand.u32 2147483648, %v5357_v16  ;;  %vm3371_vm3 = vcmp.eq.f32.partialorder %v5357_v16, 0.0 }
 0x70a   : > { %v3358_v47 = vsel %vm3357_vm1, %v5352_v36, %v3356_v26  ;;  %v3334_v22 = vmul.f32 %v3333_v33, %v5352_v36  ;;  %v3346_v30 = vand.u32 2147483648, %v5366_v57  ;;  %vm3340_vm2 = vweird.f32 %v5366_v57 }
 0x70b   : > { %v3361_v39 = vsel %vm3359_vm7, %v3360_v15, %v3358_v47  ;;  %v3344_v40 = vand.u32 2147483647, %v5366_v57  ;;  %vm5735_vm15 = vcmask 123904  }
 0x70c   : > { %v3374_v7 = vadd.f32 1e-08, %v3361_v39  ;;  %v3347_v21 = vor.u32 1.1754944e-38, %v3346_v30 }
 0x70d   : > { %vm3345_vm1 = vcmp.eq.f32.partialorder %v3344_v40, 8.507059e+37 }
 0x70e   : > { %v3717_v45 = vpop.eup %3716  ;;  %3718 = vrcp.f32 %v3374_v7  ;;  %v3387_v27 = vand.u32 2147483648, %v3374_v7  ;;  %v3385_v63 = vand.u32 2147483647, %v3374_v7  ;;  %vm3381_vm13 = vweird.f32 %v3374_v7 }
 0x70f   : > { %3720 = vrcp.f32 %v5366_v57  ;;  %v3363_v53 = vmul.f32 %v3717_v45, %v5357_v16 }
 0x710   : > { %v3388_v32 = vor.u32 1.1754944e-38, %v3387_v27  ;;  %vm3386_vm4 = vcmp.eq.f32.partialorder %v3385_v63, 8.507059e+37 }
 0x711   : > { %v3364_v51 = vmul.f32 %v3717_v45, %v3363_v53 }
 0x713   : > { %v3365_v62 = vmul.f32 0.5, %v3364_v51 }
 0x714   : > { %v3719_v58 = vpop.eup %3718 }
 0x715   : > { %v3721_v55 = vpop.eup %3720  ;;  %v3377_v56 = vmul.f32 %v3719_v58, %v3374_v7  ;;  %v3366_v52 = vsub.f32 1.5, %v3365_v62  ;;  %vm3382_vm11 = vweird.f32 %v3719_v58 }
 0x716   : > { %v3336_v43 = vmul.f32 %v3721_v55, %v5366_v57  ;;  %vm3383_vm12 = vmor %vm3381_vm13, %vm3382_vm11  ;;  %vm3341_vm6 = vweird.f32 %v3721_v55 }
 0x717   : > { %v3378_v18 = vsub.f32 1.0, %v3377_v56  ;;  %v3367_v41 = vmul.f32 %v3717_v45, %v3366_v52  ;;  %vm3342_vm9 = vmor %vm3340_vm2, %vm3341_vm6 }
 0x718   : > { %v3337_v31 = vsub.f32 1.0, %v3336_v43 }
 0x719   : > { %v3379_v46 = vmul.f32 %v3719_v58, %v3378_v18  ;;  %v3368_v12 = vmul.f32 %v3367_v41, %v5357_v16 }
 0x71a   : > { %v3338_v19 = vmul.f32 %v3721_v55, %v3337_v31 }
 0x71b   : > { %v3380_v24 = vadd.f32 %v3719_v58, %v3379_v46  ;;  %v3370_v59 = vsel %vm3369_vm10, %v5357_v16, %v3368_v12 }
 0x71c   : > { %v3373_v50 = vsel %vm3371_vm3, %v3372_v6, %v3370_v59  ;;  %v3339_v42 = vadd.f32 %v3721_v55, %v3338_v19 }
 0x71d   : > { %v3384_v28 = vsel %vm3383_vm12, %v3719_v58, %v3380_v24  ;;  %v3375_v23 = vadd.f32 1e-08, %v3373_v50 }
 0x71e   : > { %v3389_v35 = vsel %vm3386_vm4, %v3388_v32, %v3384_v28  ;;  %v3343_v10 = vsel %vm3342_vm9, %v3721_v55, %v3339_v42 }
 0x71f   : > { %v3390_v34 = vmul.f32 %v3389_v35, %v3334_v22  ;;  %3722 = vrcp.f32 %v3375_v23  ;;  %v3402_v48 = vand.u32 2147483648, %v3375_v23  ;;  %v3400_v36 = vand.u32 2147483647, %v3375_v23 }
 0x720   : > { %v3348_v2 = vsel %vm3345_vm1, %v3347_v21, %v3343_v10  ;;  %vm3396_vm0 = vweird.f32 %v3375_v23 }
 0x721   : > { %v3466_v4 = vmul.f32 %v5328_v29, %v3390_v34  ;;  %v3403_v25 = vor.u32 1.1754944e-38, %v3402_v48  ;;  %v3349_v49 = vmul.f32 %v3348_v2, %v5357_v16  ;;  %vm3401_vm14 = vcmp.eq.f32.partialorder %v3400_v36, 8.507059e+37 }
 0x723   : > { %3468 = vst.msk [vmem:[%s5382_s24] sm:$0xff] %vm5734_vm5, %v3466_v4 }
 0x725   : > { %v3723_v9 = vpop.eup %3722 }
 0x726   : > { %v3392_v54 = vmul.f32 %v3723_v9, %v3375_v23  ;;  %vm3397_vm7 = vweird.f32 %v3723_v9 }
 0x727   : > { %vm3398_vm8 = vmor %vm3396_vm0, %vm3397_vm7 }
 0x728   : > { %v3393_v0 = vsub.f32 1.0, %v3392_v54 }
 0x72a   : > { %v3394_v29 = vmul.f32 %v3723_v9, %v3393_v0 }
 0x72c   : > { %v3395_v5 = vadd.f32 %v3723_v9, %v3394_v29 }
 0x72e   : > { %v3399_v11 = vsel %vm3398_vm8, %v3723_v9, %v3395_v5 }
 0x72f   : > { %v3404_v38 = vsel %vm3401_vm14, %v3403_v25, %v3399_v11 }
 0x730   : > { %v3405_v37 = vmul.f32 %v3404_v38, %v3349_v49 }
 0x732   : > { %v3467_v3 = vmul.f32 %v5346_v44, %v3405_v37 }
 0x734   : > { %3469 = vst.msk [vmem:[%s5382_s24 + $0x8] sm:$0x3] %vm5735_vm15, %v3467_v3 }
 0x735 PF: > { %s13_s9 = sadd.s32 1, %s3764_s9  }
 0x736   : > { %p10_p7 = scmp.ge.s32.totalorder %s13_s9, 4  }
 0x738   :  { %12 = sbr.rel (!%p10_p7) target bundleno = 1 (0x1), region = 70 }
 0x73d   :  { %3491 = vsyncpa [#allocation4], 1 }
 0x73e   :  { %3493 = vsyncpa [#allocation4 + $0x1], 1 }

</bundles_post_ra>
